<compile_context>
chip_gen: v6e
topology: v6e:2x2x1
jax: 0.10.0
libtpu: 0.0.40
codegen_flags: <defaults>
</compile_context>

<pallas_src>
import functools
import math

import jax
import jax.numpy as jnp
from jax.experimental import pallas as pl
from jax.experimental.pallas import tpu as pltpu


def _vmem_limit_bytes():
    """Per-generation scoped-VMEM limit: ~3/4 of physical, capped at 100 MiB."""
    try:
        cap = int(pltpu.get_tpu_info().vmem_capacity_bytes)
    except Exception:                       # conservative fallback (v7x = 64 MiB)
        cap = 64 * 1024 * 1024
    return max(32 * 1024 * 1024, min(cap * 3 // 4, 100 * 1024 * 1024))


VMEM_LIMIT = _vmem_limit_bytes()
_TM, _TN, _TK, _TF, _TQ = 512, 512, 512, 512, 256


def _fit_sublane(dim, cap):
    """Largest multiple-of-8 divisor of dim <= cap, preferring >=2 blocks
    (pipelining + v7x megacore); falls back to the full dim."""
    start = (min(cap, dim) // 8) * 8
    best = None
    for t in range(start, 7, -8):
        if dim % t == 0:
            if best is None:
                best = t
            if dim // t >= 2:
                return t
    return best if best is not None else dim


def _fit_lane(dim, cap):
    """Largest multiple-of-128 divisor of dim <= cap, else the full dim."""
    t = (min(cap, dim) // 128) * 128
    while t >= 128:
        if dim % t == 0:
            return t
        t -= 128
    return dim   # TODO(synk): edge-pad awkward lane dims instead of one full block.


def _pad_rows(x, mult=8):
    m = x.shape[0]
    pad = (-m) % mult
    if pad:
        x = jnp.pad(x, ((0, pad), (0, 0)))
    return x, m


# ----------------------------------------------------------------------------
# Pallas kernels
# ----------------------------------------------------------------------------
def _matmul_kernel(x_ref, w_ref, b_ref, o_ref, acc_ref):
    @pl.when(pl.program_id(2) == 0)
    def _():
        acc_ref[...] = jnp.zeros_like(acc_ref)

    acc_ref[...] += jnp.dot(x_ref[...].astype(jnp.bfloat16),
                            w_ref[...].astype(jnp.bfloat16),
                            preferred_element_type=jnp.float32)

    @pl.when(pl.program_id(2) == pl.num_programs(2) - 1)
    def _():
        o_ref[...] = (acc_ref[...] + b_ref[...]).astype(o_ref.dtype)


def linear(x, w, b):
    """y = x @ w + b.  x: (M, K) f32, w: (K, N) bf16, b: (1, N) f32 -> (M, N) f32."""
    x, m_true = _pad_rows(x)
    M, K = x.shape
    N = w.shape[1]
    tm = _fit_sublane(M, _TM)
    tn = _fit_lane(N, _TN)
    tk = _fit_lane(K, _TK)
    out = pl.pallas_call(
        _matmul_kernel,
        out_shape=jax.ShapeDtypeStruct((M, N), jnp.float32),
        grid=(M // tm, N // tn, K // tk),
        in_specs=[
            pl.BlockSpec((tm, tk), lambda i, j, k: (i, k)),
            pl.BlockSpec((tk, tn), lambda i, j, k: (k, j)),
            pl.BlockSpec((1, tn), lambda i, j, k: (0, j)),
        ],
        out_specs=pl.BlockSpec((tm, tn), lambda i, j, k: (i, j)),
        scratch_shapes=[pltpu.VMEM((tm, tn), jnp.float32)],
        compiler_params=pltpu.CompilerParams(
            dimension_semantics=("parallel", "parallel", "arbitrary"),
            vmem_limit_bytes=VMEM_LIMIT),
    )(x, w, b)
    return out[:m_true] if M != m_true else out


def _ln(h, g, b):
    mean = jnp.mean(h, axis=-1, keepdims=True)
    var = jnp.mean(jnp.square(h - mean), axis=-1, keepdims=True)
    return (h - mean) * jax.lax.rsqrt(var + 1e-5) * g + b


def _ln_kernel(x_ref, g_ref, b_ref, o_ref):
    o_ref[...] = _ln(x_ref[...], g_ref[...], b_ref[...])


def layernorm(x, gamma, beta):
    """LayerNorm over last dim.  x: (M, D) f32."""
    x, m_true = _pad_rows(x)
    M, D = x.shape
    tm = _fit_sublane(M, _TM)
    out = pl.pallas_call(
        _ln_kernel,
        out_shape=jax.ShapeDtypeStruct((M, D), jnp.float32),
        grid=(M // tm,),
        in_specs=[pl.BlockSpec((tm, D), lambda i: (i, 0)),
                  pl.BlockSpec((1, D), lambda i: (0, 0)),
                  pl.BlockSpec((1, D), lambda i: (0, 0))],
        out_specs=pl.BlockSpec((tm, D), lambda i: (i, 0)),
        compiler_params=pltpu.CompilerParams(
            dimension_semantics=("parallel",), vmem_limit_bytes=VMEM_LIMIT),
    )(x, gamma, beta)
    return out[:m_true] if M != m_true else out


def _ffn_res_ln_kernel(x_ref, w1_ref, b1_ref, w2_ref, b2_ref, g_ref, be_ref,
                       o_ref, acc_ref):
    @pl.when(pl.program_id(1) == 0)
    def _():
        acc_ref[...] = jnp.zeros_like(acc_ref)

    x = x_ref[...]                                      # (tm, D) f32, loaded once per i
    h = jnp.maximum(
        jnp.dot(x.astype(jnp.bfloat16), w1_ref[...],
                preferred_element_type=jnp.float32) + b1_ref[...], 0.0)
    acc_ref[...] += jnp.dot(h.astype(jnp.bfloat16), w2_ref[...],
                            preferred_element_type=jnp.float32)

    @pl.when(pl.program_id(1) == pl.num_programs(1) - 1)
    def _():
        o_ref[...] = _ln(acc_ref[...] + b2_ref[...] + x, g_ref[...], be_ref[...])


def ffn_res_ln(x, w1, b1, w2, b2, gamma, beta):
    """LN(relu(x@w1+b1)@w2 + b2 + x); ff dim tiled as an accumulated reduction."""
    x, m_true = _pad_rows(x)
    M, D = x.shape
    F = w1.shape[1]
    tm = _fit_sublane(M, _TM)
    tf = _fit_lane(F, _TF)
    out = pl.pallas_call(
        _ffn_res_ln_kernel,
        out_shape=jax.ShapeDtypeStruct((M, D), jnp.float32),
        grid=(M // tm, F // tf),
        in_specs=[
            pl.BlockSpec((tm, D), lambda i, f: (i, 0)),
            pl.BlockSpec((D, tf), lambda i, f: (0, f)),
            pl.BlockSpec((1, tf), lambda i, f: (0, f)),
            pl.BlockSpec((tf, D), lambda i, f: (f, 0)),
            pl.BlockSpec((1, D), lambda i, f: (0, 0)),
            pl.BlockSpec((1, D), lambda i, f: (0, 0)),
            pl.BlockSpec((1, D), lambda i, f: (0, 0)),
        ],
        out_specs=pl.BlockSpec((tm, D), lambda i, f: (i, 0)),
        scratch_shapes=[pltpu.VMEM((tm, D), jnp.float32)],
        compiler_params=pltpu.CompilerParams(
            dimension_semantics=("parallel", "arbitrary"),
            vmem_limit_bytes=VMEM_LIMIT),
    )(x, w1, b1, w2, b2, gamma, beta)
    return out[:m_true] if M != m_true else out


def _attn_block_kernel(xq_ref, xkv_ref, wq_ref, bq_ref, wkv_ref, bkv_ref,
                       wo_ref, bo_ref, g_ref, be_ref, o_ref,
                       k_scr, v_scr, *, num_heads):
    D = k_scr.shape[-1]
    hd = D // num_heads

    # KV projection: computed once per batch element; query tiles reuse scratch.
    @pl.when(pl.program_id(1) == 0)
    def _():
        kv = jnp.dot(xkv_ref[0].astype(jnp.bfloat16), wkv_ref[...],
                     preferred_element_type=jnp.float32) + bkv_ref[...]
        k_scr[...] = kv[:, :D]
        v_scr[...] = kv[:, D:]

    xq = xq_ref[0]                                          # (tq, D) f32
    # softmax scale is pre-folded into w_q / b_q at init.
    q = jnp.dot(xq.astype(jnp.bfloat16), wq_ref[...],
                preferred_element_type=jnp.float32) + bq_ref[...]
    k = k_scr[...]
    v = v_scr[...]
    wo = wo_ref[...]

    acc = jnp.zeros((xq.shape[0], D), jnp.float32)
    for h in range(num_heads):                              # static unroll over heads
        sl = slice(h * hd, (h + 1) * hd)
        s = jax.lax.dot_general(                            # (tq, Skv) f32
            q[:, sl].astype(jnp.bfloat16), k[:, sl].astype(jnp.bfloat16),
            (((1,), (1,)), ((), ())), preferred_element_type=jnp.float32)
        m = jnp.max(s, axis=-1, keepdims=True)
        p = jnp.exp(s - m)
        p = p * pl.reciprocal(jnp.sum(p, axis=-1, keepdims=True), approx=True)
        oh = jnp.dot(p.astype(jnp.bfloat16), v[:, sl].astype(jnp.bfloat16),
                     preferred_element_type=jnp.float32)    # (tq, hd)
        # out-projection accumulated per head -> no head packing / concat needed
        acc = acc + jnp.dot(oh.astype(jnp.bfloat16), wo[sl, :],
                            preferred_element_type=jnp.float32)

    o_ref[0] = _ln(acc + bo_ref[...] + xq, g_ref[...], be_ref[...])


def attn_block(x_q, x_kv, ap, gamma, beta, num_heads):
    """Fused attention block: LN(out_proj(SDPA(Q(x_q), KV(x_kv))) + x_q)."""
    B, Sq, D = x_q.shape
    Skv = x_kv.shape[1]
    tq = _fit_sublane(Sq, _TQ)
    return pl.pallas_call(
        functools.partial(_attn_block_kernel, num_heads=num_heads),
        out_shape=jax.ShapeDtypeStruct((B, Sq, D), jnp.float32),
        grid=(B, Sq // tq),
        in_specs=[
            pl.BlockSpec((1, tq, D), lambda b, qi: (b, qi, 0)),    # x_q tile
            pl.BlockSpec((1, Skv, D), lambda b, qi: (b, 0, 0)),    # x_kv (per batch)
            pl.BlockSpec((D, D), lambda b, qi: (0, 0)),            # w_q (scaled)
            pl.BlockSpec((1, D), lambda b, qi: (0, 0)),            # b_q (scaled)
            pl.BlockSpec((D, 2 * D), lambda b, qi: (0, 0)),        # w_kv
            pl.BlockSpec((1, 2 * D), lambda b, qi: (0, 0)),        # b_kv
            pl.BlockSpec((D, D), lambda b, qi: (0, 0)),            # w_o
            pl.BlockSpec((1, D), lambda b, qi: (0, 0)),            # b_o
            pl.BlockSpec((1, D), lambda b, qi: (0, 0)),            # ln gamma
            pl.BlockSpec((1, D), lambda b, qi: (0, 0)),            # ln beta
        ],
        out_specs=pl.BlockSpec((1, tq, D), lambda b, qi: (b, qi, 0)),
        scratch_shapes=[pltpu.VMEM((Skv, D), jnp.float32),         # K
                        pltpu.VMEM((Skv, D), jnp.float32)],        # V
        compiler_params=pltpu.CompilerParams(
            dimension_semantics=("parallel", "arbitrary"),
            vmem_limit_bytes=VMEM_LIMIT),
    )(x_q, x_kv, ap["wq"], ap["bq"], ap["w_kv"], ap["b_kv"],
      ap["wo"], ap["bo"], gamma, beta)


# ----------------------------------------------------------------------------
# Model pieces (thin JAX glue around the Pallas kernels)
# ----------------------------------------------------------------------------
def positional_encoding_sinusoidal(model_dim, seq_len=24 * 24, temp=10000):
    # assumes even model_dim (as the reference does)
    position = jnp.arange(seq_len, dtype=jnp.float32)[:, None]
    div_term = jnp.exp(jnp.arange(0, model_dim, 2, dtype=jnp.float32)
                       * -(math.log(temp) / model_dim))
    pe = jnp.zeros((seq_len, model_dim), jnp.float32)
    pe = pe.at[:, 0::2].set(jnp.sin(position * div_term))
    pe = pe.at[:, 1::2].set(jnp.cos(position * div_term))
    return pe                                              # (seq_len, model_dim)


def encoder_block(x, p, num_heads):
    B, S, D = x.shape
    x1 = attn_block(x, x, p["attn"], p["ln1_g"], p["ln1_b"], num_heads)
    out = ffn_res_ln(x1.reshape(B * S, D), p["ff"]["w1"], p["ff"]["b1"],
                     p["ff"]["w2"], p["ff"]["b2"], p["ln2_g"], p["ln2_b"])
    return out.reshape(B, S, D)


def decoder_block(x, p, num_heads):
    B, S, D = x.shape
    x1 = attn_block(x, x, p["self_attn"], p["ln1_g"], p["ln1_b"], num_heads)
    # cross-attention: query = x1, key/value memory = the block input x
    # (matches the reference DecoderTransformerBlock.forward).
    x2 = attn_block(x1, x, p["cross_attn"], p["ln2_g"], p["ln2_b"], num_heads)
    out = ffn_res_ln(x2.reshape(B * S, D), p["ff"]["w1"], p["ff"]["b1"],
                     p["ff"]["w2"], p["ff"]["b2"], p["ln3_g"], p["ln3_b"])
    return out.reshape(B, S, D)


def astro_image2spec_forward(x, params):
    """x: (B, S, img_depth) -> (B, S, spectrum_range)."""
    B, S, C = x.shape
    D, H = params["D"], params["H"]

    # embedding + positional encoding
    h = linear(x.reshape(B * S, C), params["emb_w"], params["emb_b"])
    h = h.reshape(B, S, D) + params["pe"][:S][None, :, :]

    # encoder (pre-LayerNorm then blocks)
    # TODO(synk): reference TransformerEncoder.forward iterates a nonexistent
    # `self.encoderLayers`; implemented with the intended `self.layers`.
    h = layernorm(h.reshape(B * S, D),
                  params["enc_ln_g"], params["enc_ln_b"]).reshape(B, S, D)
    for p in params["enc_layers"]:
        h = encoder_block(h, p, H)

    # decoder (pre-LayerNorm then blocks)
    h = layernorm(h.reshape(B * S, D),
                  params["dec_ln_g"], params["dec_ln_b"]).reshape(B, S, D)
    for p in params["dec_layers"]:
        h = decoder_block(h, p, H)

    # final projection (use_log_softmax=False); drop lane padding
    out = linear(h.reshape(B * S, D), params["out_w"], params["out_b"])
    out = out[:, :params["spec"]]
    return out.reshape(B, S, params["spec"])


# ----------------------------------------------------------------------------
# Deterministic parameter initialization (weights stored bf16 for the MXU)
# ----------------------------------------------------------------------------
def _dense(key, fan_in, fan_out):
    kw, kb = jax.random.split(key)
    bound = 1.0 / math.sqrt(fan_in)
    w = jax.random.uniform(kw, (fan_in, fan_out), jnp.float32, -bound, bound)
    b = jax.random.uniform(kb, (1, fan_out), jnp.float32, -bound, bound)
    return w, b


def _attn_params(key, D, H):
    kq, kk, kv, ko = jax.random.split(key, 4)
    wq, bq = _dense(kq, D, D)
    wk, bk = _dense(kk, D, D)
    wv, bv = _dense(kv, D, D)
    wo, bo = _dense(ko, D, D)
    scale = 1.0 / math.sqrt(D // H)
    return {
        "wq": (wq * scale).astype(jnp.bfloat16),           # softmax scale folded in
        "bq": bq * scale,
        "w_kv": jnp.concatenate([wk, wv], axis=1).astype(jnp.bfloat16),
        "b_kv": jnp.concatenate([bk, bv], axis=1),
        "wo": wo.astype(jnp.bfloat16),
        "bo": bo,
    }


def _ff_params(key, D, F):
    k1, k2 = jax.random.split(key)
    w1, b1 = _dense(k1, D, F)
    w2, b2 = _dense(k2, F, D)
    return {"w1": w1.astype(jnp.bfloat16), "b1": b1,
            "w2": w2.astype(jnp.bfloat16), "b2": b2}


def _ln_params(D):
    return jnp.ones((1, D), jnp.float32), jnp.zeros((1, D), jnp.float32)


def _enc_layer(key, D, H, F):
    k1, k2 = jax.random.split(key)
    g1, b1 = _ln_params(D)
    g2, b2 = _ln_params(D)
    return {"attn": _attn_params(k1, D, H), "ff": _ff_params(k2, D, F),
            "ln1_g": g1, "ln1_b": b1, "ln2_g": g2, "ln2_b": b2}


def _dec_layer(key, D, H, F):
    k1, k2, k3 = jax.random.split(key, 3)
    g1, b1 = _ln_params(D)
    g2, b2 = _ln_params(D)
    g3, b3 = _ln_params(D)
    return {"self_attn": _attn_params(k1, D, H),
            "cross_attn": _attn_params(k2, D, H),
            "ff": _ff_params(k3, D, F),
            "ln1_g": g1, "ln1_b": b1, "ln2_g": g2, "ln2_b": b2,
            "ln3_g": g3, "ln3_b": b3}


def init_params(key, img_depth, D, H, F, n_enc, n_dec, spectrum_range):
    keys = jax.random.split(key, 2 + n_enc + n_dec)
    emb_w, emb_b = _dense(keys[0], img_depth, D)
    out_w, out_b = _dense(keys[1], D, spectrum_range)
    spec_pad = ((spectrum_range + 127) // 128) * 128        # lane-dense output store
    if spec_pad != spectrum_range:
        out_w = jnp.pad(out_w, ((0, 0), (0, spec_pad - spectrum_range)))
        out_b = jnp.pad(out_b, ((0, 0), (0, spec_pad - spectrum_range)))
    enc_g, enc_b = _ln_params(D)
    dec_g, dec_b = _ln_params(D)
    return {
        "D": D, "H": H, "spec": spectrum_range,
        "pe": positional_encoding_sinusoidal(D),
        "emb_w": emb_w.astype(jnp.bfloat16), "emb_b": emb_b,
        "enc_ln_g": enc_g, "enc_ln_b": enc_b,
        "dec_ln_g": dec_g, "dec_ln_b": dec_b,
        "out_w": out_w.astype(jnp.bfloat16), "out_b": out_b,
        "enc_layers": [_enc_layer(keys[2 + i], D, H, F) for i in range(n_enc)],
        "dec_layers": [_dec_layer(keys[2 + n_enc + i], D, H, F)
                       for i in range(n_dec)],
    }


# ----------------------------------------------------------------------------
if __name__ == "__main__":
    # Small, forward-consistent shapes (lane-dense model width; spectrum
    # exercises the 128-lane padding path).
    B, S = 2, 64                      # 64 flattened patches (PE supports 24*24)
    img_depth = 5
    embedding_dim = 128
    head_num = 4                      # head_dim = 32
    ff_dim = 256
    num_enc_layers = 2
    num_dec_layers = 2
    spectrum_range = 96

    key = jax.random.PRNGKey(0)
    k_params, k_x = jax.random.split(key)
    params = init_params(k_params, img_depth, embedding_dim, head_num, ff_dim,
                         num_enc_layers, num_dec_layers, spectrum_range)

    x = jax.random.normal(k_x, (B, S, img_depth), jnp.float32)

    fwd = jax.jit(lambda inp: astro_image2spec_forward(inp, params))
    out = jax.block_until_ready(fwd(x))
    assert out.shape == (B, S, spectrum_range), out.shape
    assert bool(jnp.all(jnp.isfinite(out)))
    print("KERNEL_OK")
</pallas_src>

<mosaic_0001>
module attributes {stable_mosaic.version = 11 : i64} {
  func.func @_matmul_kernel(%arg0: i32, %arg1: i32, %arg2: i32, %arg3: memref<64x5xf32, #tpu.memory_space<vmem>>, %arg4: memref<5x128xbf16, #tpu.memory_space<vmem>>, %arg5: memref<1x128xf32, #tpu.memory_space<vmem>>, %arg6: memref<64x128xf32, #tpu.memory_space<vmem>>, %arg7: memref<64x128xf32, #tpu.memory_space<vmem>>) attributes {dimension_semantics = [#tpu.dimension_semantics<parallel>, #tpu.dimension_semantics<parallel>, #tpu.dimension_semantics<arbitrary>], iteration_bounds = array<i64: 2, 1, 1>, scalar_prefetch = 0 : i64, scratch_operands = 1 : i64, tpu.core_type = #tpu.core_type<tc>, window_params = [{transform_indices = @transform_0, window_bounds = array<i64: 64, 5>}, {transform_indices = @transform_1, window_bounds = array<i64: 5, 128>}, {transform_indices = @transform_2, window_bounds = array<i64: 1, 128>}, {transform_indices = @transform_3, window_bounds = array<i64: 64, 128>}]} {
    %c0_i32 = arith.constant 0 : i32
    %0 = arith.cmpi eq, %arg2, %c0_i32 : i32
    %1 = arith.extui %0 : i1 to i32
    %c0_i32_0 = arith.constant 0 : i32
    %2 = arith.cmpi ne, %1, %c0_i32_0 : i32
    scf.if %2 {
      %cst_10 = arith.constant 0.000000e+00 : f32
      %13 = vector.broadcast %cst_10 : f32 to vector<64x128xf32>
      %c0_11 = arith.constant 0 : index
      %c0_12 = arith.constant 0 : index
      %14 = vector.load %arg7[%c0_11, %c0_12] : memref<64x128xf32, #tpu.memory_space<vmem>>, vector<64x128xf32>
      tpu.vector_store %arg7[%c0_11, %c0_12], %13 {strides = array<i32>} : memref<64x128xf32, #tpu.memory_space<vmem>>, vector<64x128xf32>,
    } else {
    }
    %c0 = arith.constant 0 : index
    %c0_1 = arith.constant 0 : index
    %3 = vector.load %arg7[%c0, %c0_1] : memref<64x128xf32, #tpu.memory_space<vmem>>, vector<64x128xf32>
    %c0_2 = arith.constant 0 : index
    %c0_3 = arith.constant 0 : index
    %4 = vector.load %arg3[%c0_2, %c0_3] : memref<64x5xf32, #tpu.memory_space<vmem>>, vector<64x5xf32>
    %5 = arith.truncf %4 : vector<64x5xf32> to vector<64x5xbf16>
    %c0_4 = arith.constant 0 : index
    %c0_5 = arith.constant 0 : index
    %6 = vector.load %arg4[%c0_4, %c0_5] : memref<5x128xbf16, #tpu.memory_space<vmem>>, vector<5x128xbf16>
    %cst = arith.constant dense<0.000000e+00> : vector<64x128xf32>
    %7 = tpu.matmul %5, %6, %cst {dimension_numbers = #tpu.dot_dimension_numbers<[1], [0], [0], [1], [0, 0, 1, 1], [], []>} : vector<64x5xbf16>, vector<5x128xbf16>, vector<64x128xf32> -> vector<64x128xf32>
    %8 = arith.addf %3, %7 : vector<64x128xf32>
    %c0_6 = arith.constant 0 : index
    %c0_7 = arith.constant 0 : index
    %9 = vector.load %arg7[%c0_6, %c0_7] : memref<64x128xf32, #tpu.memory_space<vmem>>, vector<64x128xf32>
    tpu.vector_store %arg7[%c0_6, %c0_7], %8 {strides = array<i32>} : memref<64x128xf32, #tpu.memory_space<vmem>>, vector<64x128xf32>,
    %c0_i32_8 = arith.constant 0 : i32
    %10 = arith.cmpi eq, %arg2, %c0_i32_8 : i32
    %11 = arith.extui %10 : i1 to i32
    %c0_i32_9 = arith.constant 0 : i32
    %12 = arith.cmpi ne, %11, %c0_i32_9 : i32
    scf.if %12 {
      %c0_10 = arith.constant 0 : index
      %c0_11 = arith.constant 0 : index
      %13 = vector.load %arg7[%c0_10, %c0_11] : memref<64x128xf32, #tpu.memory_space<vmem>>, vector<64x128xf32>
      %c0_12 = arith.constant 0 : index
      %c0_13 = arith.constant 0 : index
      %14 = vector.load %arg5[%c0_12, %c0_13] : memref<1x128xf32, #tpu.memory_space<vmem>>, vector<1x128xf32>
      %15 = vector.broadcast %14 : vector<1x128xf32> to vector<64x128xf32>
      %16 = arith.addf %13, %15 : vector<64x128xf32>
      %c0_14 = arith.constant 0 : index
      %c0_15 = arith.constant 0 : index
      %17 = vector.load %arg6[%c0_14, %c0_15] : memref<64x128xf32, #tpu.memory_space<vmem>>, vector<64x128xf32>
      tpu.vector_store %arg6[%c0_14, %c0_15], %16 {strides = array<i32>} : memref<64x128xf32, #tpu.memory_space<vmem>>, vector<64x128xf32>,
    } else {
    }
    return
  }
  func.func @transform_0(%arg0: i32, %arg1: i32, %arg2: i32) -> (i32, i32) {
    %c0_i32 = arith.constant 0 : i32
    return %arg0, %arg2 : i32, i32
  }
  func.func @transform_1(%arg0: i32, %arg1: i32, %arg2: i32) -> (i32, i32) {
    %c0_i32 = arith.constant 0 : i32
    return %arg2, %arg1 : i32, i32
  }
  func.func @transform_2(%arg0: i32, %arg1: i32, %arg2: i32) -> (i32, i32) {
    %c0_i32 = arith.constant 0 : i32
    %c0_i32_0 = arith.constant 0 : i32
    return %c0_i32, %arg1 : i32, i32
  }
  func.func @transform_3(%arg0: i32, %arg1: i32, %arg2: i32) -> (i32, i32) {
    %c0_i32 = arith.constant 0 : i32
    return %arg0, %arg1 : i32, i32
  }
}

module attributes {stable_mosaic.version = 11 : i64} {
  func.func @_ln_kernel(%arg0: i32, %arg1: memref<64x128xf32, #tpu.memory_space<vmem>>, %arg2: memref<1x128xf32, #tpu.memory_space<vmem>>, %arg3: memref<1x128xf32, #tpu.memory_space<vmem>>, %arg4: memref<64x128xf32, #tpu.memory_space<vmem>>) attributes {dimension_semantics = [#tpu.dimension_semantics<parallel>], iteration_bounds = array<i64: 2>, scalar_prefetch = 0 : i64, scratch_operands = 0 : i64, tpu.core_type = #tpu.core_type<tc>, window_params = [{transform_indices = @transform_0, window_bounds = array<i64: 64, 128>}, {pipeline_mode = #tpu.pipeline_mode<synchronous>, transform_indices = @transform_1, window_bounds = array<i64: 1, 128>}, {pipeline_mode = #tpu.pipeline_mode<synchronous>, transform_indices = @transform_2, window_bounds = array<i64: 1, 128>}, {transform_indices = @transform_3, window_bounds = array<i64: 64, 128>}]} {
    %c0 = arith.constant 0 : index
    %c0_0 = arith.constant 0 : index
    %0 = vector.load %arg1[%c0, %c0_0] : memref<64x128xf32, #tpu.memory_space<vmem>>, vector<64x128xf32>
    %c0_1 = arith.constant 0 : index
    %c0_2 = arith.constant 0 : index
    %1 = vector.load %arg2[%c0_1, %c0_2] : memref<1x128xf32, #tpu.memory_space<vmem>>, vector<1x128xf32>
    %c0_3 = arith.constant 0 : index
    %c0_4 = arith.constant 0 : index
    %2 = vector.load %arg3[%c0_3, %c0_4] : memref<1x128xf32, #tpu.memory_space<vmem>>, vector<1x128xf32>
    %cst = arith.constant dense<0.000000e+00> : vector<64xf32>
    %3 = vector.multi_reduction <add>, %0, %cst [1] : vector<64x128xf32> to vector<64xf32>
    %4 = vector.shape_cast %3 : vector<64xf32> to vector<64x1xf32>
    %cst_5 = arith.constant 1.280000e+02 : f32
    %5 = vector.broadcast %cst_5 : f32 to vector<64x1xf32>
    %6 = arith.divf %4, %5 : vector<64x1xf32>
    %7 = vector.broadcast %6 : vector<64x1xf32> to vector<64x128xf32>
    %8 = arith.subf %0, %7 : vector<64x128xf32>
    %9 = arith.mulf %8, %8 : vector<64x128xf32>
    %cst_6 = arith.constant dense<0.000000e+00> : vector<64xf32>
    %10 = vector.multi_reduction <add>, %9, %cst_6 [1] : vector<64x128xf32> to vector<64xf32>
    %11 = vector.shape_cast %10 : vector<64xf32> to vector<64x1xf32>
    %cst_7 = arith.constant 1.280000e+02 : f32
    %12 = vector.broadcast %cst_7 : f32 to vector<64x1xf32>
    %13 = arith.divf %11, %12 : vector<64x1xf32>
    %14 = vector.broadcast %6 : vector<64x1xf32> to vector<64x128xf32>
    %15 = arith.subf %0, %14 : vector<64x128xf32>
    %cst_8 = arith.constant 9.99999974E-6 : f32
    %16 = vector.broadcast %cst_8 : f32 to vector<64x1xf32>
    %17 = arith.addf %13, %16 : vector<64x1xf32>
    %18 = math.rsqrt %17 : vector<64x1xf32>
    %19 = vector.broadcast %18 : vector<64x1xf32> to vector<64x128xf32>
    %20 = arith.mulf %15, %19 : vector<64x128xf32>
    %21 = vector.broadcast %1 : vector<1x128xf32> to vector<64x128xf32>
    %22 = arith.mulf %20, %21 : vector<64x128xf32>
    %23 = vector.broadcast %2 : vector<1x128xf32> to vector<64x128xf32>
    %24 = arith.addf %22, %23 : vector<64x128xf32>
    %c0_9 = arith.constant 0 : index
    %c0_10 = arith.constant 0 : index
    %25 = vector.load %arg4[%c0_9, %c0_10] : memref<64x128xf32, #tpu.memory_space<vmem>>, vector<64x128xf32>
    tpu.vector_store %arg4[%c0_9, %c0_10], %24 {strides = array<i32>} : memref<64x128xf32, #tpu.memory_space<vmem>>, vector<64x128xf32>,
    return
  }
  func.func @transform_0(%arg0: i32) -> (i32, i32) {
    %c0_i32 = arith.constant 0 : i32
    %c0_i32_0 = arith.constant 0 : i32
    return %arg0, %c0_i32 : i32, i32
  }
  func.func @transform_1(%arg0: i32) -> (i32, i32) {
    %c0_i32 = arith.constant 0 : i32
    %c0_i32_0 = arith.constant 0 : i32
    %c0_i32_1 = arith.constant 0 : i32
    return %c0_i32, %c0_i32_0 : i32, i32
  }
  func.func @transform_2(%arg0: i32) -> (i32, i32) {
    %c0_i32 = arith.constant 0 : i32
    %c0_i32_0 = arith.constant 0 : i32
    %c0_i32_1 = arith.constant 0 : i32
    return %c0_i32, %c0_i32_0 : i32, i32
  }
  func.func @transform_3(%arg0: i32) -> (i32, i32) {
    %c0_i32 = arith.constant 0 : i32
    %c0_i32_0 = arith.constant 0 : i32
    return %arg0, %c0_i32 : i32, i32
  }
}

module attributes {stable_mosaic.version = 11 : i64} {
  func.func @_ffn_res_ln_kernel(%arg0: i32, %arg1: i32, %arg2: memref<64x128xf32, #tpu.memory_space<vmem>>, %arg3: memref<128x256xbf16, #tpu.memory_space<vmem>>, %arg4: memref<1x256xf32, #tpu.memory_space<vmem>>, %arg5: memref<256x128xbf16, #tpu.memory_space<vmem>>, %arg6: memref<1x128xf32, #tpu.memory_space<vmem>>, %arg7: memref<1x128xf32, #tpu.memory_space<vmem>>, %arg8: memref<1x128xf32, #tpu.memory_space<vmem>>, %arg9: memref<64x128xf32, #tpu.memory_space<vmem>>, %arg10: memref<64x128xf32, #tpu.memory_space<vmem>>) attributes {dimension_semantics = [#tpu.dimension_semantics<parallel>, #tpu.dimension_semantics<arbitrary>], iteration_bounds = array<i64: 2, 1>, scalar_prefetch = 0 : i64, scratch_operands = 1 : i64, tpu.core_type = #tpu.core_type<tc>, window_params = [{transform_indices = @transform_0, window_bounds = array<i64: 64, 128>}, {transform_indices = @transform_1, window_bounds = array<i64: 128, 256>}, {transform_indices = @transform_2, window_bounds = array<i64: 1, 256>}, {transform_indices = @transform_3, window_bounds = array<i64: 256, 128>}, {pipeline_mode = #tpu.pipeline_mode<synchronous>, transform_indices = @transform_4, window_bounds = array<i64: 1, 128>}, {pipeline_mode = #tpu.pipeline_mode<synchronous>, transform_indices = @transform_5, window_bounds = array<i64: 1, 128>}, {pipeline_mode = #tpu.pipeline_mode<synchronous>, transform_indices = @transform_6, window_bounds = array<i64: 1, 128>}, {transform_indices = @transform_7, window_bounds = array<i64: 64, 128>}]} {
    %c0_i32 = arith.constant 0 : i32
    %0 = arith.cmpi eq, %arg1, %c0_i32 : i32
    %1 = arith.extui %0 : i1 to i32
    %c0_i32_0 = arith.constant 0 : i32
    %2 = arith.cmpi ne, %1, %c0_i32_0 : i32
    scf.if %2 {
      %cst_16 = arith.constant 0.000000e+00 : f32
      %21 = vector.broadcast %cst_16 : f32 to vector<64x128xf32>
      %c0_17 = arith.constant 0 : index
      %c0_18 = arith.constant 0 : index
      %22 = vector.load %arg10[%c0_17, %c0_18] : memref<64x128xf32, #tpu.memory_space<vmem>>, vector<64x128xf32>
      tpu.vector_store %arg10[%c0_17, %c0_18], %21 {strides = array<i32>} : memref<64x128xf32, #tpu.memory_space<vmem>>, vector<64x128xf32>,
    } else {
    }
    %c0 = arith.constant 0 : index
    %c0_1 = arith.constant 0 : index
    %3 = vector.load %arg2[%c0, %c0_1] : memref<64x128xf32, #tpu.memory_space<vmem>>, vector<64x128xf32>
    %4 = arith.truncf %3 : vector<64x128xf32> to vector<64x128xbf16>
    %c0_2 = arith.constant 0 : index
    %c0_3 = arith.constant 0 : index
    %5 = vector.load %arg3[%c0_2, %c0_3] : memref<128x256xbf16, #tpu.memory_space<vmem>>, vector<128x256xbf16>
    %cst = arith.constant dense<0.000000e+00> : vector<64x256xf32>
    %6 = tpu.matmul %4, %5, %cst {dimension_numbers = #tpu.dot_dimension_numbers<[1], [0], [0], [1], [0, 0, 1, 1], [], []>} : vector<64x128xbf16>, vector<128x256xbf16>, vector<64x256xf32> -> vector<64x256xf32>
    %c0_4 = arith.constant 0 : index
    %c0_5 = arith.constant 0 : index
    %7 = vector.load %arg4[%c0_4, %c0_5] : memref<1x256xf32, #tpu.memory_space<vmem>>, vector<1x256xf32>
    %8 = vector.broadcast %7 : vector<1x256xf32> to vector<64x256xf32>
    %9 = arith.addf %6, %8 : vector<64x256xf32>
    %cst_6 = arith.constant 0.000000e+00 : f32
    %10 = vector.broadcast %cst_6 : f32 to vector<64x256xf32>
    %11 = arith.maximumf %9, %10 : vector<64x256xf32>
    %c0_7 = arith.constant 0 : index
    %c0_8 = arith.constant 0 : index
    %12 = vector.load %arg10[%c0_7, %c0_8] : memref<64x128xf32, #tpu.memory_space<vmem>>, vector<64x128xf32>
    %13 = arith.truncf %11 : vector<64x256xf32> to vector<64x256xbf16>
    %c0_9 = arith.constant 0 : index
    %c0_10 = arith.constant 0 : index
    %14 = vector.load %arg5[%c0_9, %c0_10] : memref<256x128xbf16, #tpu.memory_space<vmem>>, vector<256x128xbf16>
    %cst_11 = arith.constant dense<0.000000e+00> : vector<64x128xf32>
    %15 = tpu.matmul %13, %14, %cst_11 {dimension_numbers = #tpu.dot_dimension_numbers<[1], [0], [0], [1], [0, 0, 1, 1], [], []>} : vector<64x256xbf16>, vector<256x128xbf16>, vector<64x128xf32> -> vector<64x128xf32>
    %16 = arith.addf %12, %15 : vector<64x128xf32>
    %c0_12 = arith.constant 0 : index
    %c0_13 = arith.constant 0 : index
    %17 = vector.load %arg10[%c0_12, %c0_13] : memref<64x128xf32, #tpu.memory_space<vmem>>, vector<64x128xf32>
    tpu.vector_store %arg10[%c0_12, %c0_13], %16 {strides = array<i32>} : memref<64x128xf32, #tpu.memory_space<vmem>>, vector<64x128xf32>,
    %c0_i32_14 = arith.constant 0 : i32
    %18 = arith.cmpi eq, %arg1, %c0_i32_14 : i32
    %19 = arith.extui %18 : i1 to i32
    %c0_i32_15 = arith.constant 0 : i32
    %20 = arith.cmpi ne, %19, %c0_i32_15 : i32
    scf.if %20 {
      %c0_16 = arith.constant 0 : index
      %c0_17 = arith.constant 0 : index
      %21 = vector.load %arg10[%c0_16, %c0_17] : memref<64x128xf32, #tpu.memory_space<vmem>>, vector<64x128xf32>
      %c0_18 = arith.constant 0 : index
      %c0_19 = arith.constant 0 : index
      %22 = vector.load %arg6[%c0_18, %c0_19] : memref<1x128xf32, #tpu.memory_space<vmem>>, vector<1x128xf32>
      %23 = vector.broadcast %22 : vector<1x128xf32> to vector<64x128xf32>
      %24 = arith.addf %21, %23 : vector<64x128xf32>
      %25 = arith.addf %24, %3 : vector<64x128xf32>
      %c0_20 = arith.constant 0 : index
      %c0_21 = arith.constant 0 : index
      %26 = vector.load %arg7[%c0_20, %c0_21] : memref<1x128xf32, #tpu.memory_space<vmem>>, vector<1x128xf32>
      %c0_22 = arith.constant 0 : index
      %c0_23 = arith.constant 0 : index
      %27 = vector.load %arg8[%c0_22, %c0_23] : memref<1x128xf32, #tpu.memory_space<vmem>>, vector<1x128xf32>
      %cst_24 = arith.constant dense<0.000000e+00> : vector<64xf32>
      %28 = vector.multi_reduction <add>, %25, %cst_24 [1] : vector<64x128xf32> to vector<64xf32>
      %29 = vector.shape_cast %28 : vector<64xf32> to vector<64x1xf32>
      %cst_25 = arith.constant 1.280000e+02 : f32
      %30 = vector.broadcast %cst_25 : f32 to vector<64x1xf32>
      %31 = arith.divf %29, %30 : vector<64x1xf32>
      %32 = vector.broadcast %31 : vector<64x1xf32> to vector<64x128xf32>
      %33 = arith.subf %25, %32 : vector<64x128xf32>
      %34 = arith.mulf %33, %33 : vector<64x128xf32>
      %cst_26 = arith.constant dense<0.000000e+00> : vector<64xf32>
      %35 = vector.multi_reduction <add>, %34, %cst_26 [1] : vector<64x128xf32> to vector<64xf32>
      %36 = vector.shape_cast %35 : vector<64xf32> to vector<64x1xf32>
      %cst_27 = arith.constant 1.280000e+02 : f32
      %37 = vector.broadcast %cst_27 : f32 to vector<64x1xf32>
      %38 = arith.divf %36, %37 : vector<64x1xf32>
      %39 = vector.broadcast %31 : vector<64x1xf32> to vector<64x128xf32>
      %40 = arith.subf %25, %39 : vector<64x128xf32>
      %cst_28 = arith.constant 9.99999974E-6 : f32
      %41 = vector.broadcast %cst_28 : f32 to vector<64x1xf32>
      %42 = arith.addf %38, %41 : vector<64x1xf32>
      %43 = math.rsqrt %42 : vector<64x1xf32>
      %44 = vector.broadcast %43 : vector<64x1xf32> to vector<64x128xf32>
      %45 = arith.mulf %40, %44 : vector<64x128xf32>
      %46 = vector.broadcast %26 : vector<1x128xf32> to vector<64x128xf32>
      %47 = arith.mulf %45, %46 : vector<64x128xf32>
      %48 = vector.broadcast %27 : vector<1x128xf32> to vector<64x128xf32>
      %49 = arith.addf %47, %48 : vector<64x128xf32>
      %c0_29 = arith.constant 0 : index
      %c0_30 = arith.constant 0 : index
      %50 = vector.load %arg9[%c0_29, %c0_30] : memref<64x128xf32, #tpu.memory_space<vmem>>, vector<64x128xf32>
      tpu.vector_store %arg9[%c0_29, %c0_30], %49 {strides = array<i32>} : memref<64x128xf32, #tpu.memory_space<vmem>>, vector<64x128xf32>,
    } else {
    }
    return
  }
  func.func @transform_0(%arg0: i32, %arg1: i32) -> (i32, i32) {
    %c0_i32 = arith.constant 0 : i32
    %c0_i32_0 = arith.constant 0 : i32
    return %arg0, %c0_i32 : i32, i32
  }
  func.func @transform_1(%arg0: i32, %arg1: i32) -> (i32, i32) {
    %c0_i32 = arith.constant 0 : i32
    %c0_i32_0 = arith.constant 0 : i32
    return %c0_i32, %arg1 : i32, i32
  }
  func.func @transform_2(%arg0: i32, %arg1: i32) -> (i32, i32) {
    %c0_i32 = arith.constant 0 : i32
    %c0_i32_0 = arith.constant 0 : i32
    return %c0_i32, %arg1 : i32, i32
  }
  func.func @transform_3(%arg0: i32, %arg1: i32) -> (i32, i32) {
    %c0_i32 = arith.constant 0 : i32
    %c0_i32_0 = arith.constant 0 : i32
    return %arg1, %c0_i32 : i32, i32
  }
  func.func @transform_4(%arg0: i32, %arg1: i32) -> (i32, i32) {
    %c0_i32 = arith.constant 0 : i32
    %c0_i32_0 = arith.constant 0 : i32
    %c0_i32_1 = arith.constant 0 : i32
    return %c0_i32, %c0_i32_0 : i32, i32
  }
  func.func @transform_5(%arg0: i32, %arg1: i32) -> (i32, i32) {
    %c0_i32 = arith.constant 0 : i32
    %c0_i32_0 = arith.constant 0 : i32
    %c0_i32_1 = arith.constant 0 : i32
    return %c0_i32, %c0_i32_0 : i32, i32
  }
  func.func @transform_6(%arg0: i32, %arg1: i32) -> (i32, i32) {
    %c0_i32 = arith.constant 0 : i32
    %c0_i32_0 = arith.constant 0 : i32
    %c0_i32_1 = arith.constant 0 : i32
    return %c0_i32, %c0_i32_0 : i32, i32
  }
  func.func @transform_7(%arg0: i32, %arg1: i32) -> (i32, i32) {
    %c0_i32 = arith.constant 0 : i32
    %c0_i32_0 = arith.constant 0 : i32
    return %arg0, %c0_i32 : i32, i32
  }
}

module attributes {stable_mosaic.version = 11 : i64} {
  func.func @_attn_block_kernel(%arg0: i32, %arg1: i32, %arg2: memref<1x32x128xf32, #tpu.memory_space<vmem>>, %arg3: memref<1x64x128xf32, #tpu.memory_space<vmem>>, %arg4: memref<128x128xbf16, #tpu.memory_space<vmem>>, %arg5: memref<1x128xf32, #tpu.memory_space<vmem>>, %arg6: memref<128x256xbf16, #tpu.memory_space<vmem>>, %arg7: memref<1x256xf32, #tpu.memory_space<vmem>>, %arg8: memref<128x128xbf16, #tpu.memory_space<vmem>>, %arg9: memref<1x128xf32, #tpu.memory_space<vmem>>, %arg10: memref<1x128xf32, #tpu.memory_space<vmem>>, %arg11: memref<1x128xf32, #tpu.memory_space<vmem>>, %arg12: memref<1x32x128xf32, #tpu.memory_space<vmem>>, %arg13: memref<64x128xf32, #tpu.memory_space<vmem>>, %arg14: memref<64x128xf32, #tpu.memory_space<vmem>>) attributes {dimension_semantics = [#tpu.dimension_semantics<parallel>, #tpu.dimension_semantics<arbitrary>], iteration_bounds = array<i64: 2, 2>, scalar_prefetch = 0 : i64, scratch_operands = 2 : i64, tpu.core_type = #tpu.core_type<tc>, window_params = [{transform_indices = @transform_0, window_bounds = array<i64: 1, 32, 128>}, {transform_indices = @transform_1, window_bounds = array<i64: 1, 64, 128>}, {pipeline_mode = #tpu.pipeline_mode<synchronous>, transform_indices = @transform_2, window_bounds = array<i64: 128, 128>}, {pipeline_mode = #tpu.pipeline_mode<synchronous>, transform_indices = @transform_3, window_bounds = array<i64: 1, 128>}, {pipeline_mode = #tpu.pipeline_mode<synchronous>, transform_indices = @transform_4, window_bounds = array<i64: 128, 256>}, {pipeline_mode = #tpu.pipeline_mode<synchronous>, transform_indices = @transform_5, window_bounds = array<i64: 1, 256>}, {pipeline_mode = #tpu.pipeline_mode<synchronous>, transform_indices = @transform_6, window_bounds = array<i64: 128, 128>}, {pipeline_mode = #tpu.pipeline_mode<synchronous>, transform_indices = @transform_7, window_bounds = array<i64: 1, 128>}, {pipeline_mode = #tpu.pipeline_mode<synchronous>, transform_indices = @transform_8, window_bounds = array<i64: 1, 128>}, {pipeline_mode = #tpu.pipeline_mode<synchronous>, transform_indices = @transform_9, window_bounds = array<i64: 1, 128>}, {transform_indices = @transform_10, window_bounds = array<i64: 1, 32, 128>}]} {
    %c0_i32 = arith.constant 0 : i32
    %0 = arith.cmpi eq, %arg1, %c0_i32 : i32
    %1 = arith.extui %0 : i1 to i32
    %c0_i32_0 = arith.constant 0 : i32
    %2 = arith.cmpi ne, %1, %c0_i32_0 : i32
    scf.if %2 {
      %c0_48 = arith.constant 0 : index
      %c0_49 = arith.constant 0 : index
      %c0_50 = arith.constant 0 : index
      %138 = vector.load %arg3[%c0_48, %c0_49, %c0_50] : memref<1x64x128xf32, #tpu.memory_space<vmem>>, vector<1x64x128xf32>
      %139 = vector.shape_cast %138 : vector<1x64x128xf32> to vector<64x128xf32>
      %140 = arith.truncf %139 : vector<64x128xf32> to vector<64x128xbf16>
      %c0_51 = arith.constant 0 : index
      %c0_52 = arith.constant 0 : index
      %141 = vector.load %arg6[%c0_51, %c0_52] : memref<128x256xbf16, #tpu.memory_space<vmem>>, vector<128x256xbf16>
      %cst_53 = arith.constant dense<0.000000e+00> : vector<64x256xf32>
      %142 = tpu.matmul %140, %141, %cst_53 {dimension_numbers = #tpu.dot_dimension_numbers<[1], [0], [0], [1], [0, 0, 1, 1], [], []>} : vector<64x128xbf16>, vector<128x256xbf16>, vector<64x256xf32> -> vector<64x256xf32>
      %c0_54 = arith.constant 0 : index
      %c0_55 = arith.constant 0 : index
      %143 = vector.load %arg7[%c0_54, %c0_55] : memref<1x256xf32, #tpu.memory_space<vmem>>, vector<1x256xf32>
      %144 = vector.broadcast %143 : vector<1x256xf32> to vector<64x256xf32>
      %145 = arith.addf %142, %144 : vector<64x256xf32>
      %146 = vector.extract_strided_slice %145 {offsets = [0, 0], sizes = [64, 128], strides = [1, 1]} : vector<64x256xf32> to vector<64x128xf32>
      %c0_56 = arith.constant 0 : index
      %c0_57 = arith.constant 0 : index
      %147 = vector.load %arg13[%c0_56, %c0_57] : memref<64x128xf32, #tpu.memory_space<vmem>>, vector<64x128xf32>
      tpu.vector_store %arg13[%c0_56, %c0_57], %146 {strides = array<i32>} : memref<64x128xf32, #tpu.memory_space<vmem>>, vector<64x128xf32>,
      %148 = vector.extract_strided_slice %145 {offsets = [0, 128], sizes = [64, 128], strides = [1, 1]} : vector<64x256xf32> to vector<64x128xf32>
      %c0_58 = arith.constant 0 : index
      %c0_59 = arith.constant 0 : index
      %149 = vector.load %arg14[%c0_58, %c0_59] : memref<64x128xf32, #tpu.memory_space<vmem>>, vector<64x128xf32>
      tpu.vector_store %arg14[%c0_58, %c0_59], %148 {strides = array<i32>} : memref<64x128xf32, #tpu.memory_space<vmem>>, vector<64x128xf32>,
    } else {
    }
    %c0 = arith.constant 0 : index
    %c0_1 = arith.constant 0 : index
    %c0_2 = arith.constant 0 : index
    %3 = vector.load %arg2[%c0, %c0_1, %c0_2] : memref<1x32x128xf32, #tpu.memory_space<vmem>>, vector<1x32x128xf32>
    %4 = vector.shape_cast %3 : vector<1x32x128xf32> to vector<32x128xf32>
    %5 = arith.truncf %4 : vector<32x128xf32> to vector<32x128xbf16>
    %c0_3 = arith.constant 0 : index
    %c0_4 = arith.constant 0 : index
    %6 = vector.load %arg4[%c0_3, %c0_4] : memref<128x128xbf16, #tpu.memory_space<vmem>>, vector<128x128xbf16>
    %cst = arith.constant dense<0.000000e+00> : vector<32x128xf32>
    %7 = tpu.matmul %5, %6, %cst {dimension_numbers = #tpu.dot_dimension_numbers<[1], [0], [0], [1], [0, 0, 1, 1], [], []>} : vector<32x128xbf16>, vector<128x128xbf16>, vector<32x128xf32> -> vector<32x128xf32>
    %c0_5 = arith.constant 0 : index
    %c0_6 = arith.constant 0 : index
    %8 = vector.load %arg5[%c0_5, %c0_6] : memref<1x128xf32, #tpu.memory_space<vmem>>, vector<1x128xf32>
    %9 = vector.broadcast %8 : vector<1x128xf32> to vector<32x128xf32>
    %10 = arith.addf %7, %9 : vector<32x128xf32>
    %c0_7 = arith.constant 0 : index
    %c0_8 = arith.constant 0 : index
    %11 = vector.load %arg13[%c0_7, %c0_8] : memref<64x128xf32, #tpu.memory_space<vmem>>, vector<64x128xf32>
    %c0_9 = arith.constant 0 : index
    %c0_10 = arith.constant 0 : index
    %12 = vector.load %arg14[%c0_9, %c0_10] : memref<64x128xf32, #tpu.memory_space<vmem>>, vector<64x128xf32>
    %c0_11 = arith.constant 0 : index
    %c0_12 = arith.constant 0 : index
    %13 = vector.load %arg8[%c0_11, %c0_12] : memref<128x128xbf16, #tpu.memory_space<vmem>>, vector<128x128xbf16>
    %cst_13 = arith.constant 0.000000e+00 : f32
    %14 = vector.broadcast %cst_13 : f32 to vector<32x128xf32>
    %15 = vector.extract_strided_slice %10 {offsets = [0, 0], sizes = [32, 32], strides = [1, 1]} : vector<32x128xf32> to vector<32x32xf32>
    %16 = arith.truncf %15 : vector<32x32xf32> to vector<32x32xbf16>
    %17 = vector.extract_strided_slice %11 {offsets = [0, 0], sizes = [64, 32], strides = [1, 1]} : vector<64x128xf32> to vector<64x32xf32>
    %18 = arith.truncf %17 : vector<64x32xf32> to vector<64x32xbf16>
    %cst_14 = arith.constant dense<0.000000e+00> : vector<32x64xf32>
    %19 = tpu.matmul %16, %18, %cst_14 {dimension_numbers = #tpu.dot_dimension_numbers<[1], [1], [0], [0], [0, 0, 1, 0], [], []>} : vector<32x32xbf16>, vector<64x32xbf16>, vector<32x64xf32> -> vector<32x64xf32>
    %cst_15 = arith.constant dense<0xFF800000> : vector<32xf32>
    %20 = vector.multi_reduction <maximumf>, %19, %cst_15 [1] : vector<32x64xf32> to vector<32xf32>
    %21 = vector.shape_cast %20 : vector<32xf32> to vector<32x1xf32>
    %22 = vector.broadcast %21 : vector<32x1xf32> to vector<32x64xf32>
    %23 = arith.subf %19, %22 : vector<32x64xf32>
    %24 = math.exp %23 : vector<32x64xf32>
    %cst_16 = arith.constant dense<0.000000e+00> : vector<32xf32>
    %25 = vector.multi_reduction <add>, %24, %cst_16 [1] : vector<32x64xf32> to vector<32xf32>
    %26 = vector.shape_cast %25 : vector<32xf32> to vector<32x1xf32>
    %27 = tpu.reciprocal %26 {approx = true} : vector<32x1xf32> -> vector<32x1xf32>
    %28 = vector.broadcast %27 : vector<32x1xf32> to vector<32x64xf32>
    %29 = arith.mulf %24, %28 : vector<32x64xf32>
    %30 = arith.truncf %29 : vector<32x64xf32> to vector<32x64xbf16>
    %31 = vector.extract_strided_slice %12 {offsets = [0, 0], sizes = [64, 32], strides = [1, 1]} : vector<64x128xf32> to vector<64x32xf32>
    %32 = arith.truncf %31 : vector<64x32xf32> to vector<64x32xbf16>
    %cst_17 = arith.constant dense<0.000000e+00> : vector<32x32xf32>
    %33 = tpu.matmul %30, %32, %cst_17 {dimension_numbers = #tpu.dot_dimension_numbers<[1], [0], [0], [1], [0, 0, 1, 1], [], []>} : vector<32x64xbf16>, vector<64x32xbf16>, vector<32x32xf32> -> vector<32x32xf32>
    %34 = arith.truncf %33 : vector<32x32xf32> to vector<32x32xbf16>
    %35 = vector.extract_strided_slice %13 {offsets = [0, 0], sizes = [32, 128], strides = [1, 1]} : vector<128x128xbf16> to vector<32x128xbf16>
    %cst_18 = arith.constant dense<0.000000e+00> : vector<32x128xf32>
    %36 = tpu.matmul %34, %35, %cst_18 {dimension_numbers = #tpu.dot_dimension_numbers<[1], [0], [0], [1], [0, 0, 1, 1], [], []>} : vector<32x32xbf16>, vector<32x128xbf16>, vector<32x128xf32> -> vector<32x128xf32>
    %37 = arith.addf %14, %36 : vector<32x128xf32>
    %38 = vector.extract_strided_slice %10 {offsets = [0, 32], sizes = [32, 32], strides = [1, 1]} : vector<32x128xf32> to vector<32x32xf32>
    %39 = arith.truncf %38 : vector<32x32xf32> to vector<32x32xbf16>
    %40 = vector.extract_strided_slice %11 {offsets = [0, 32], sizes = [64, 32], strides = [1, 1]} : vector<64x128xf32> to vector<64x32xf32>
    %41 = arith.truncf %40 : vector<64x32xf32> to vector<64x32xbf16>
    %cst_19 = arith.constant dense<0.000000e+00> : vector<32x64xf32>
    %42 = tpu.matmul %39, %41, %cst_19 {dimension_numbers = #tpu.dot_dimension_numbers<[1], [1], [0], [0], [0, 0, 1, 0], [], []>} : vector<32x32xbf16>, vector<64x32xbf16>, vector<32x64xf32> -> vector<32x64xf32>
    %cst_20 = arith.constant dense<0xFF800000> : vector<32xf32>
    %43 = vector.multi_reduction <maximumf>, %42, %cst_20 [1] : vector<32x64xf32> to vector<32xf32>
    %44 = vector.shape_cast %43 : vector<32xf32> to vector<32x1xf32>
    %45 = vector.broadcast %44 : vector<32x1xf32> to vector<32x64xf32>
    %46 = arith.subf %42, %45 : vector<32x64xf32>
    %47 = math.exp %46 : vector<32x64xf32>
    %cst_21 = arith.constant dense<0.000000e+00> : vector<32xf32>
    %48 = vector.multi_reduction <add>, %47, %cst_21 [1] : vector<32x64xf32> to vector<32xf32>
    %49 = vector.shape_cast %48 : vector<32xf32> to vector<32x1xf32>
    %50 = tpu.reciprocal %49 {approx = true} : vector<32x1xf32> -> vector<32x1xf32>
    %51 = vector.broadcast %50 : vector<32x1xf32> to vector<32x64xf32>
    %52 = arith.mulf %47, %51 : vector<32x64xf32>
    %53 = arith.truncf %52 : vector<32x64xf32> to vector<32x64xbf16>
    %54 = vector.extract_strided_slice %12 {offsets = [0, 32], sizes = [64, 32], strides = [1, 1]} : vector<64x128xf32> to vector<64x32xf32>
    %55 = arith.truncf %54 : vector<64x32xf32> to vector<64x32xbf16>
    %cst_22 = arith.constant dense<0.000000e+00> : vector<32x32xf32>
    %56 = tpu.matmul %53, %55, %cst_22 {dimension_numbers = #tpu.dot_dimension_numbers<[1], [0], [0], [1], [0, 0, 1, 1], [], []>} : vector<32x64xbf16>, vector<64x32xbf16>, vector<32x32xf32> -> vector<32x32xf32>
    %57 = arith.truncf %56 : vector<32x32xf32> to vector<32x32xbf16>
    %58 = vector.extract_strided_slice %13 {offsets = [32, 0], sizes = [32, 128], strides = [1, 1]} : vector<128x128xbf16> to vector<32x128xbf16>
    %cst_23 = arith.constant dense<0.000000e+00> : vector<32x128xf32>
    %59 = tpu.matmul %57, %58, %cst_23 {dimension_numbers = #tpu.dot_dimension_numbers<[1], [0], [0], [1], [0, 0, 1, 1], [], []>} : vector<32x32xbf16>, vector<32x128xbf16>, vector<32x128xf32> -> vector<32x128xf32>
    %60 = arith.addf %37, %59 : vector<32x128xf32>
    %61 = vector.extract_strided_slice %10 {offsets = [0, 64], sizes = [32, 32], strides = [1, 1]} : vector<32x128xf32> to vector<32x32xf32>
    %62 = arith.truncf %61 : vector<32x32xf32> to vector<32x32xbf16>
    %63 = vector.extract_strided_slice %11 {offsets = [0, 64], sizes = [64, 32], strides = [1, 1]} : vector<64x128xf32> to vector<64x32xf32>
    %64 = arith.truncf %63 : vector<64x32xf32> to vector<64x32xbf16>
    %cst_24 = arith.constant dense<0.000000e+00> : vector<32x64xf32>
    %65 = tpu.matmul %62, %64, %cst_24 {dimension_numbers = #tpu.dot_dimension_numbers<[1], [1], [0], [0], [0, 0, 1, 0], [], []>} : vector<32x32xbf16>, vector<64x32xbf16>, vector<32x64xf32> -> vector<32x64xf32>
    %cst_25 = arith.constant dense<0xFF800000> : vector<32xf32>
    %66 = vector.multi_reduction <maximumf>, %65, %cst_25 [1] : vector<32x64xf32> to vector<32xf32>
    %67 = vector.shape_cast %66 : vector<32xf32> to vector<32x1xf32>
    %68 = vector.broadcast %67 : vector<32x1xf32> to vector<32x64xf32>
    %69 = arith.subf %65, %68 : vector<32x64xf32>
    %70 = math.exp %69 : vector<32x64xf32>
    %cst_26 = arith.constant dense<0.000000e+00> : vector<32xf32>
    %71 = vector.multi_reduction <add>, %70, %cst_26 [1] : vector<32x64xf32> to vector<32xf32>
    %72 = vector.shape_cast %71 : vector<32xf32> to vector<32x1xf32>
    %73 = tpu.reciprocal %72 {approx = true} : vector<32x1xf32> -> vector<32x1xf32>
    %74 = vector.broadcast %73 : vector<32x1xf32> to vector<32x64xf32>
    %75 = arith.mulf %70, %74 : vector<32x64xf32>
    %76 = arith.truncf %75 : vector<32x64xf32> to vector<32x64xbf16>
    %77 = vector.extract_strided_slice %12 {offsets = [0, 64], sizes = [64, 32], strides = [1, 1]} : vector<64x128xf32> to vector<64x32xf32>
    %78 = arith.truncf %77 : vector<64x32xf32> to vector<64x32xbf16>
    %cst_27 = arith.constant dense<0.000000e+00> : vector<32x32xf32>
    %79 = tpu.matmul %76, %78, %cst_27 {dimension_numbers = #tpu.dot_dimension_numbers<[1], [0], [0], [1], [0, 0, 1, 1], [], []>} : vector<32x64xbf16>, vector<64x32xbf16>, vector<32x32xf32> -> vector<32x32xf32>
    %80 = arith.truncf %79 : vector<32x32xf32> to vector<32x32xbf16>
    %81 = vector.extract_strided_slice %13 {offsets = [64, 0], sizes = [32, 128], strides = [1, 1]} : vector<128x128xbf16> to vector<32x128xbf16>
    %cst_28 = arith.constant dense<0.000000e+00> : vector<32x128xf32>
    %82 = tpu.matmul %80, %81, %cst_28 {dimension_numbers = #tpu.dot_dimension_numbers<[1], [0], [0], [1], [0, 0, 1, 1], [], []>} : vector<32x32xbf16>, vector<32x128xbf16>, vector<32x128xf32> -> vector<32x128xf32>
    %83 = arith.addf %60, %82 : vector<32x128xf32>
    %84 = vector.extract_strided_slice %10 {offsets = [0, 96], sizes = [32, 32], strides = [1, 1]} : vector<32x128xf32> to vector<32x32xf32>
    %85 = arith.truncf %84 : vector<32x32xf32> to vector<32x32xbf16>
    %86 = vector.extract_strided_slice %11 {offsets = [0, 96], sizes = [64, 32], strides = [1, 1]} : vector<64x128xf32> to vector<64x32xf32>
    %87 = arith.truncf %86 : vector<64x32xf32> to vector<64x32xbf16>
    %cst_29 = arith.constant dense<0.000000e+00> : vector<32x64xf32>
    %88 = tpu.matmul %85, %87, %cst_29 {dimension_numbers = #tpu.dot_dimension_numbers<[1], [1], [0], [0], [0, 0, 1, 0], [], []>} : vector<32x32xbf16>, vector<64x32xbf16>, vector<32x64xf32> -> vector<32x64xf32>
    %cst_30 = arith.constant dense<0xFF800000> : vector<32xf32>
    %89 = vector.multi_reduction <maximumf>, %88, %cst_30 [1] : vector<32x64xf32> to vector<32xf32>
    %90 = vector.shape_cast %89 : vector<32xf32> to vector<32x1xf32>
    %91 = vector.broadcast %90 : vector<32x1xf32> to vector<32x64xf32>
    %92 = arith.subf %88, %91 : vector<32x64xf32>
    %93 = math.exp %92 : vector<32x64xf32>
    %cst_31 = arith.constant dense<0.000000e+00> : vector<32xf32>
    %94 = vector.multi_reduction <add>, %93, %cst_31 [1] : vector<32x64xf32> to vector<32xf32>
    %95 = vector.shape_cast %94 : vector<32xf32> to vector<32x1xf32>
    %96 = tpu.reciprocal %95 {approx = true} : vector<32x1xf32> -> vector<32x1xf32>
    %97 = vector.broadcast %96 : vector<32x1xf32> to vector<32x64xf32>
    %98 = arith.mulf %93, %97 : vector<32x64xf32>
    %99 = arith.truncf %98 : vector<32x64xf32> to vector<32x64xbf16>
    %100 = vector.extract_strided_slice %12 {offsets = [0, 96], sizes = [64, 32], strides = [1, 1]} : vector<64x128xf32> to vector<64x32xf32>
    %101 = arith.truncf %100 : vector<64x32xf32> to vector<64x32xbf16>
    %cst_32 = arith.constant dense<0.000000e+00> : vector<32x32xf32>
    %102 = tpu.matmul %99, %101, %cst_32 {dimension_numbers = #tpu.dot_dimension_numbers<[1], [0], [0], [1], [0, 0, 1, 1], [], []>} : vector<32x64xbf16>, vector<64x32xbf16>, vector<32x32xf32> -> vector<32x32xf32>
    %103 = arith.truncf %102 : vector<32x32xf32> to vector<32x32xbf16>
    %104 = vector.extract_strided_slice %13 {offsets = [96, 0], sizes = [32, 128], strides = [1, 1]} : vector<128x128xbf16> to vector<32x128xbf16>
    %cst_33 = arith.constant dense<0.000000e+00> : vector<32x128xf32>
    %105 = tpu.matmul %103, %104, %cst_33 {dimension_numbers = #tpu.dot_dimension_numbers<[1], [0], [0], [1], [0, 0, 1, 1], [], []>} : vector<32x32xbf16>, vector<32x128xbf16>, vector<32x128xf32> -> vector<32x128xf32>
    %106 = arith.addf %83, %105 : vector<32x128xf32>
    %c0_34 = arith.constant 0 : index
    %c0_35 = arith.constant 0 : index
    %107 = vector.load %arg9[%c0_34, %c0_35] : memref<1x128xf32, #tpu.memory_space<vmem>>, vector<1x128xf32>
    %108 = vector.broadcast %107 : vector<1x128xf32> to vector<32x128xf32>
    %109 = arith.addf %106, %108 : vector<32x128xf32>
    %110 = arith.addf %109, %4 : vector<32x128xf32>
    %c0_36 = arith.constant 0 : index
    %c0_37 = arith.constant 0 : index
    %111 = vector.load %arg10[%c0_36, %c0_37] : memref<1x128xf32, #tpu.memory_space<vmem>>, vector<1x128xf32>
    %c0_38 = arith.constant 0 : index
    %c0_39 = arith.constant 0 : index
    %112 = vector.load %arg11[%c0_38, %c0_39] : memref<1x128xf32, #tpu.memory_space<vmem>>, vector<1x128xf32>
    %cst_40 = arith.constant dense<0.000000e+00> : vector<32xf32>
    %113 = vector.multi_reduction <add>, %110, %cst_40 [1] : vector<32x128xf32> to vector<32xf32>
    %114 = vector.shape_cast %113 : vector<32xf32> to vector<32x1xf32>
    %cst_41 = arith.constant 1.280000e+02 : f32
    %115 = vector.broadcast %cst_41 : f32 to vector<32x1xf32>
    %116 = arith.divf %114, %115 : vector<32x1xf32>
    %117 = vector.broadcast %116 : vector<32x1xf32> to vector<32x128xf32>
    %118 = arith.subf %110, %117 : vector<32x128xf32>
    %119 = arith.mulf %118, %118 : vector<32x128xf32>
    %cst_42 = arith.constant dense<0.000000e+00> : vector<32xf32>
    %120 = vector.multi_reduction <add>, %119, %cst_42 [1] : vector<32x128xf32> to vector<32xf32>
    %121 = vector.shape_cast %120 : vector<32xf32> to vector<32x1xf32>
    %cst_43 = arith.constant 1.280000e+02 : f32
    %122 = vector.broadcast %cst_43 : f32 to vector<32x1xf32>
    %123 = arith.divf %121, %122 : vector<32x1xf32>
    %124 = vector.broadcast %116 : vector<32x1xf32> to vector<32x128xf32>
    %125 = arith.subf %110, %124 : vector<32x128xf32>
    %cst_44 = arith.constant 9.99999974E-6 : f32
    %126 = vector.broadcast %cst_44 : f32 to vector<32x1xf32>
    %127 = arith.addf %123, %126 : vector<32x1xf32>
    %128 = math.rsqrt %127 : vector<32x1xf32>
    %129 = vector.broadcast %128 : vector<32x1xf32> to vector<32x128xf32>
    %130 = arith.mulf %125, %129 : vector<32x128xf32>
    %131 = vector.broadcast %111 : vector<1x128xf32> to vector<32x128xf32>
    %132 = arith.mulf %130, %131 : vector<32x128xf32>
    %133 = vector.broadcast %112 : vector<1x128xf32> to vector<32x128xf32>
    %134 = arith.addf %132, %133 : vector<32x128xf32>
    %c0_45 = arith.constant 0 : index
    %c0_46 = arith.constant 0 : index
    %c0_47 = arith.constant 0 : index
    %135 = vector.load %arg12[%c0_45, %c0_46, %c0_47] : memref<1x32x128xf32, #tpu.memory_space<vmem>>, vector<1x32x128xf32>
    %136 = vector.shape_cast %135 : vector<1x32x128xf32> to vector<32x128xf32>
    %137 = vector.shape_cast %134 : vector<32x128xf32> to vector<1x32x128xf32>
    tpu.vector_store %arg12[%c0_45, %c0_46, %c0_47], %137 {strides = array<i32>} : memref<1x32x128xf32, #tpu.memory_space<vmem>>, vector<1x32x128xf32>,
    return
  }
  func.func @transform_0(%arg0: i32, %arg1: i32) -> (i32, i32, i32) {
    %c0_i32 = arith.constant 0 : i32
    %c0_i32_0 = arith.constant 0 : i32
    return %arg0, %arg1, %c0_i32 : i32, i32, i32
  }
  func.func @transform_1(%arg0: i32, %arg1: i32) -> (i32, i32, i32) {
    %c0_i32 = arith.constant 0 : i32
    %c0_i32_0 = arith.constant 0 : i32
    %c0_i32_1 = arith.constant 0 : i32
    return %arg0, %c0_i32, %c0_i32_0 : i32, i32, i32
  }
  func.func @transform_2(%arg0: i32, %arg1: i32) -> (i32, i32) {
    %c0_i32 = arith.constant 0 : i32
    %c0_i32_0 = arith.constant 0 : i32
    %c0_i32_1 = arith.constant 0 : i32
    return %c0_i32, %c0_i32_0 : i32, i32
  }
  func.func @transform_3(%arg0: i32, %arg1: i32) -> (i32, i32) {
    %c0_i32 = arith.constant 0 : i32
    %c0_i32_0 = arith.constant 0 : i32
    %c0_i32_1 = arith.constant 0 : i32
    return %c0_i32, %c0_i32_0 : i32, i32
  }
  func.func @transform_4(%arg0: i32, %arg1: i32) -> (i32, i32) {
    %c0_i32 = arith.constant 0 : i32
    %c0_i32_0 = arith.constant 0 : i32
    %c0_i32_1 = arith.constant 0 : i32
    return %c0_i32, %c0_i32_0 : i32, i32
  }
  func.func @transform_5(%arg0: i32, %arg1: i32) -> (i32, i32) {
    %c0_i32 = arith.constant 0 : i32
    %c0_i32_0 = arith.constant 0 : i32
    %c0_i32_1 = arith.constant 0 : i32
    return %c0_i32, %c0_i32_0 : i32, i32
  }
  func.func @transform_6(%arg0: i32, %arg1: i32) -> (i32, i32) {
    %c0_i32 = arith.constant 0 : i32
    %c0_i32_0 = arith.constant 0 : i32
    %c0_i32_1 = arith.constant 0 : i32
    return %c0_i32, %c0_i32_0 : i32, i32
  }
  func.func @transform_7(%arg0: i32, %arg1: i32) -> (i32, i32) {
    %c0_i32 = arith.constant 0 : i32
    %c0_i32_0 = arith.constant 0 : i32
    %c0_i32_1 = arith.constant 0 : i32
    return %c0_i32, %c0_i32_0 : i32, i32
  }
  func.func @transform_8(%arg0: i32, %arg1: i32) -> (i32, i32) {
    %c0_i32 = arith.constant 0 : i32
    %c0_i32_0 = arith.constant 0 : i32
    %c0_i32_1 = arith.constant 0 : i32
    return %c0_i32, %c0_i32_0 : i32, i32
  }
  func.func @transform_9(%arg0: i32, %arg1: i32) -> (i32, i32) {
    %c0_i32 = arith.constant 0 : i32
    %c0_i32_0 = arith.constant 0 : i32
    %c0_i32_1 = arith.constant 0 : i32
    return %c0_i32, %c0_i32_0 : i32, i32
  }
  func.func @transform_10(%arg0: i32, %arg1: i32) -> (i32, i32, i32) {
    %c0_i32 = arith.constant 0 : i32
    %c0_i32_0 = arith.constant 0 : i32
    return %arg0, %arg1, %c0_i32 : i32, i32, i32
  }
}

module attributes {stable_mosaic.version = 11 : i64} {
  func.func @_matmul_kernel(%arg0: i32, %arg1: i32, %arg2: i32, %arg3: memref<64x128xf32, #tpu.memory_space<vmem>>, %arg4: memref<128x128xbf16, #tpu.memory_space<vmem>>, %arg5: memref<1x128xf32, #tpu.memory_space<vmem>>, %arg6: memref<64x128xf32, #tpu.memory_space<vmem>>, %arg7: memref<64x128xf32, #tpu.memory_space<vmem>>) attributes {dimension_semantics = [#tpu.dimension_semantics<parallel>, #tpu.dimension_semantics<parallel>, #tpu.dimension_semantics<arbitrary>], iteration_bounds = array<i64: 2, 1, 1>, scalar_prefetch = 0 : i64, scratch_operands = 1 : i64, tpu.core_type = #tpu.core_type<tc>, window_params = [{transform_indices = @transform_0, window_bounds = array<i64: 64, 128>}, {transform_indices = @transform_1, window_bounds = array<i64: 128, 128>}, {transform_indices = @transform_2, window_bounds = array<i64: 1, 128>}, {transform_indices = @transform_3, window_bounds = array<i64: 64, 128>}]} {
    %c0_i32 = arith.constant 0 : i32
    %0 = arith.cmpi eq, %arg2, %c0_i32 : i32
    %1 = arith.extui %0 : i1 to i32
    %c0_i32_0 = arith.constant 0 : i32
    %2 = arith.cmpi ne, %1, %c0_i32_0 : i32
    scf.if %2 {
      %cst_10 = arith.constant 0.000000e+00 : f32
      %13 = vector.broadcast %cst_10 : f32 to vector<64x128xf32>
      %c0_11 = arith.constant 0 : index
      %c0_12 = arith.constant 0 : index
      %14 = vector.load %arg7[%c0_11, %c0_12] : memref<64x128xf32, #tpu.memory_space<vmem>>, vector<64x128xf32>
      tpu.vector_store %arg7[%c0_11, %c0_12], %13 {strides = array<i32>} : memref<64x128xf32, #tpu.memory_space<vmem>>, vector<64x128xf32>,
    } else {
    }
    %c0 = arith.constant 0 : index
    %c0_1 = arith.constant 0 : index
    %3 = vector.load %arg7[%c0, %c0_1] : memref<64x128xf32, #tpu.memory_space<vmem>>, vector<64x128xf32>
    %c0_2 = arith.constant 0 : index
    %c0_3 = arith.constant 0 : index
    %4 = vector.load %arg3[%c0_2, %c0_3] : memref<64x128xf32, #tpu.memory_space<vmem>>, vector<64x128xf32>
    %5 = arith.truncf %4 : vector<64x128xf32> to vector<64x128xbf16>
    %c0_4 = arith.constant 0 : index
    %c0_5 = arith.constant 0 : index
    %6 = vector.load %arg4[%c0_4, %c0_5] : memref<128x128xbf16, #tpu.memory_space<vmem>>, vector<128x128xbf16>
    %cst = arith.constant dense<0.000000e+00> : vector<64x128xf32>
    %7 = tpu.matmul %5, %6, %cst {dimension_numbers = #tpu.dot_dimension_numbers<[1], [0], [0], [1], [0, 0, 1, 1], [], []>} : vector<64x128xbf16>, vector<128x128xbf16>, vector<64x128xf32> -> vector<64x128xf32>
    %8 = arith.addf %3, %7 : vector<64x128xf32>
    %c0_6 = arith.constant 0 : index
    %c0_7 = arith.constant 0 : index
    %9 = vector.load %arg7[%c0_6, %c0_7] : memref<64x128xf32, #tpu.memory_space<vmem>>, vector<64x128xf32>
    tpu.vector_store %arg7[%c0_6, %c0_7], %8 {strides = array<i32>} : memref<64x128xf32, #tpu.memory_space<vmem>>, vector<64x128xf32>,
    %c0_i32_8 = arith.constant 0 : i32
    %10 = arith.cmpi eq, %arg2, %c0_i32_8 : i32
    %11 = arith.extui %10 : i1 to i32
    %c0_i32_9 = arith.constant 0 : i32
    %12 = arith.cmpi ne, %11, %c0_i32_9 : i32
    scf.if %12 {
      %c0_10 = arith.constant 0 : index
      %c0_11 = arith.constant 0 : index
      %13 = vector.load %arg7[%c0_10, %c0_11] : memref<64x128xf32, #tpu.memory_space<vmem>>, vector<64x128xf32>
      %c0_12 = arith.constant 0 : index
      %c0_13 = arith.constant 0 : index
      %14 = vector.load %arg5[%c0_12, %c0_13] : memref<1x128xf32, #tpu.memory_space<vmem>>, vector<1x128xf32>
      %15 = vector.broadcast %14 : vector<1x128xf32> to vector<64x128xf32>
      %16 = arith.addf %13, %15 : vector<64x128xf32>
      %c0_14 = arith.constant 0 : index
      %c0_15 = arith.constant 0 : index
      %17 = vector.load %arg6[%c0_14, %c0_15] : memref<64x128xf32, #tpu.memory_space<vmem>>, vector<64x128xf32>
      tpu.vector_store %arg6[%c0_14, %c0_15], %16 {strides = array<i32>} : memref<64x128xf32, #tpu.memory_space<vmem>>, vector<64x128xf32>,
    } else {
    }
    return
  }
  func.func @transform_0(%arg0: i32, %arg1: i32, %arg2: i32) -> (i32, i32) {
    %c0_i32 = arith.constant 0 : i32
    return %arg0, %arg2 : i32, i32
  }
  func.func @transform_1(%arg0: i32, %arg1: i32, %arg2: i32) -> (i32, i32) {
    %c0_i32 = arith.constant 0 : i32
    return %arg2, %arg1 : i32, i32
  }
  func.func @transform_2(%arg0: i32, %arg1: i32, %arg2: i32) -> (i32, i32) {
    %c0_i32 = arith.constant 0 : i32
    %c0_i32_0 = arith.constant 0 : i32
    return %c0_i32, %arg1 : i32, i32
  }
  func.func @transform_3(%arg0: i32, %arg1: i32, %arg2: i32) -> (i32, i32) {
    %c0_i32 = arith.constant 0 : i32
    return %arg0, %arg1 : i32, i32
  }
}

</mosaic_0001>

<bundles_post_ra>
// kernel: _lambda_.15
= control target key start
LH: loop header
LB: loop body
LE: loop exit
PB: predicated region body
PF: predicated region fallthrough
CT: control target
= control target key end

     0   :  { %s430_s12 = smov 0   ;;  %s510_s0 = inlined_call_operand.vmem [shape: f32[128,128], index: 0, kind: input, shape index: {}]   ;;  %s511_s1 = inlined_call_operand.vmem [shape: f32[1,128], index: 1, kind: input, shape index: {}]   ;;  %s512_s2 = inlined_call_operand.vmem [shape: f32[1,128], index: 2, kind: input, shape index: {}]   ;;  %s513_s3 = inlined_call_operand.vmem [shape: f32[128,128], index: 3, kind: output, shape index: {}]  }
   0x1 LB: > { %s365_s13 = sadd.s32 4294967295, %s408_s12   ;;  %p369_p0 = scmp.ge.s32.totalorder %s408_s12, 1  ;;  %s408_s12 = sphi %s430_s12, %s13_s12  }
   0x2   : > { %p138_p1 = scmp.lt.s32.totalorder %s408_s12, 3 }
   0x4   : > { %p139_p2 = pnand %p369_p0, %p138_p1 }
   0x5   : > { %s370_s14 = sshll.u32 (!%p139_p2), %s365_s13, 3 }
   0x6   : > { %142 = sbr.rel (%p139_p2) target bundleno = 338 (0x152), region = 32  ;;  %p163_p3 = scmp.lt.s32.totalorder (!%p139_p2), %s370_s14, 15 }
   0xb   : > { %s515_s14 = smov (!%p163_p3, %s370_s14), 15 }
   0xc   : > { %s371_s15 = sshll.u32 %s515_s14, 3 }
   0xd   : > { %s166_s18 = scalar_lea.vmem %s510_s0, %s371_s15  ;;  %s490_s25 = scalar_lea.vmem %s513_s3, %s371_s15 }
   0xe   : > { %v174_v0 = vld [vmem:[%s166_s18] sm:$0xff]  ;;  %v176_v1 = vld [vmem:[%s166_s18 + $0x10] sm:$0xff]  ;;  %v175_v2 = vld [vmem:[%s166_s18 + $0x8] sm:$0xff] }
   0xf   : > { %184 = vadd.xlane.f32.xlu0 %v174_v0  ;;  %188 = vadd.xlane.f32.xlu1 %v176_v1  ;;  %v177_v3 = vld [vmem:[%s166_s18 + $0x18] sm:$0xff]  ;;  %v178_v4 = vld [vmem:[%s166_s18 + $0x20] sm:$0xff]  ;;  %v179_v5 = vld [vmem:[%s166_s18 + $0x28] sm:$0xff] }
  0x10   : > { %v180_v6 = vld [vmem:[%s166_s18 + $0x30] sm:$0xff]  ;;  %v181_v7 = vld [vmem:[%s166_s18 + $0x38] sm:$0xff] }
  0x13   : > { %186 = vadd.xlane.f32.xlu0 %v175_v2  ;;  %190 = vadd.xlane.f32.xlu1 %v177_v3 }
  0x17   : > { %192 = vadd.xlane.f32.xlu0 %v178_v4  ;;  %194 = vadd.xlane.f32.xlu1 %v179_v5 }
  0x1b   : > { %196 = vadd.xlane.f32.xlu0 %v180_v6  ;;  %198 = vadd.xlane.f32.xlu1 %v181_v7 }
  0x98   : > { %v185_v8 = vpop.xlane.xlu0 %184  ;;  %v189_v9 = vpop.xlane.xlu1 %188 }
  0x99   : > { %v201_v10 = vmul.f32 0.0078125, %v185_v8  ;;  %v203_v11 = vmul.f32 0.0078125, %v189_v9 }
  0x9b   : > { %v446_v12 = vsub.f32 %v174_v0, %v201_v10  ;;  %v448_v13 = vsub.f32 %v176_v1, %v203_v11  ;;  %v374_v0 = vld [vmem:[%s511_s1] ss:$0 sm:$0xff] }
  0x9c   : > { %v187_v14 = vpop.xlane.xlu0 %186  ;;  %v191_v15 = vpop.xlane.xlu1 %190 }
  0x9d   : > { %v202_v16 = vmul.f32 0.0078125, %v187_v14  ;;  %v217_v17 = vmul.f32 %v446_v12, %v446_v12  ;;  %v204_v18 = vmul.f32 0.0078125, %v191_v15  ;;  %v219_v21 = vmul.f32 %v448_v13, %v448_v13 }
  0x9f   : > { %v452_v19 = vsub.f32 %v175_v2, %v202_v16  ;;  %225 = vadd.xlane.f32.xlu0 %v217_v17  ;;  %v454_v20 = vsub.f32 %v177_v3, %v204_v18  ;;  %v375_v3 = vld [vmem:[%s512_s2] ss:$0 sm:$0xff] }
  0xa0   : > { %v193_v22 = vpop.xlane.xlu0 %192  ;;  %v195_v23 = vpop.xlane.xlu1 %194 }
  0xa1   : > { %v205_v24 = vmul.f32 0.0078125, %v193_v22  ;;  %v218_v25 = vmul.f32 %v452_v19, %v452_v19  ;;  %v206_v26 = vmul.f32 0.0078125, %v195_v23  ;;  %v220_v29 = vmul.f32 %v454_v20, %v454_v20 }
  0xa3   : > { %v460_v27 = vsub.f32 %v178_v4, %v205_v24  ;;  %229 = vadd.xlane.f32.xlu0 %v219_v21  ;;  %227 = vadd.xlane.f32.xlu1 %v218_v25  ;;  %v462_v28 = vsub.f32 %v179_v5, %v206_v26 }
  0xa4   : > { %v197_v30 = vpop.xlane.xlu0 %196  ;;  %v199_v31 = vpop.xlane.xlu1 %198 }
  0xa5   : > { %v207_v32 = vmul.f32 0.0078125, %v197_v30  ;;  %v221_v33 = vmul.f32 %v460_v27, %v460_v27  ;;  %v208_v34 = vmul.f32 0.0078125, %v199_v31  ;;  %v222_v37 = vmul.f32 %v462_v28, %v462_v28 }
  0xa7   : > { %v468_v35 = vsub.f32 %v180_v6, %v207_v32  ;;  %231 = vadd.xlane.f32.xlu1 %v220_v29  ;;  %233 = vadd.xlane.f32.xlu0 %v221_v33  ;;  %v470_v36 = vsub.f32 %v181_v7, %v208_v34 }
  0xa9   : > { %v223_v38 = vmul.f32 %v468_v35, %v468_v35  ;;  %v224_v39 = vmul.f32 %v470_v36, %v470_v36 }
  0xab   : > { %235 = vadd.xlane.f32.xlu1 %v222_v37  ;;  %237 = vadd.xlane.f32.xlu0 %v223_v38 }
  0xaf   : > { %239 = vadd.xlane.f32.xlu1 %v224_v39 }
 0x128   : > { %v226_v40 = vpop.xlane.xlu0 %225 }
 0x129   : > { %v241_v41 = vmul.f32 0.0078125, %v226_v40 }
 0x12b   : > { %v249_v42 = vadd.f32 1e-05, %v241_v41 }
 0x12c   : > { %v228_v43 = vpop.xlane.xlu1 %227  ;;  %v230_v44 = vpop.xlane.xlu0 %229 }
 0x12d   : > { %386 = vrsqrt.f32 %v249_v42  ;;  %v242_v45 = vmul.f32 0.0078125, %v228_v43  ;;  %v243_v46 = vmul.f32 0.0078125, %v230_v44 }
 0x12f   : > { %v250_v47 = vadd.f32 1e-05, %v242_v45  ;;  %v251_v48 = vadd.f32 1e-05, %v243_v46 }
 0x130   : > { %v232_v49 = vpop.xlane.xlu1 %231  ;;  %v234_v50 = vpop.xlane.xlu0 %233 }
 0x131   : > { %388 = vrsqrt.f32 %v250_v47  ;;  %v244_v51 = vmul.f32 0.0078125, %v232_v49  ;;  %v245_v52 = vmul.f32 0.0078125, %v234_v50 }
 0x132   : > { %390 = vrsqrt.f32 %v251_v48 }
 0x133   : > { %v252_v53 = vadd.f32 1e-05, %v244_v51  ;;  %v253_v54 = vadd.f32 1e-05, %v245_v52 }
 0x134   : > { %v236_v55 = vpop.xlane.xlu1 %235  ;;  %v238_v56 = vpop.xlane.xlu0 %237 }
 0x135   : > { %392 = vrsqrt.f32 %v252_v53  ;;  %v246_v57 = vmul.f32 0.0078125, %v236_v55  ;;  %v247_v58 = vmul.f32 0.0078125, %v238_v56 }
 0x136   : > { %394 = vrsqrt.f32 %v253_v54 }
 0x137   : > { %v254_v59 = vadd.f32 1e-05, %v246_v57  ;;  %v255_v60 = vadd.f32 1e-05, %v247_v58 }
 0x138   : > { %v240_v61 = vpop.xlane.xlu1 %239 }
 0x139   : > { %396 = vrsqrt.f32 %v254_v59  ;;  %v248_v62 = vmul.f32 0.0078125, %v240_v61 }
 0x13a   : > { %v387_v63 = vpop.eup %386  ;;  %398 = vrsqrt.f32 %v255_v60 }
 0x13b   : > { %v265_v1 = vmul.f32 %v387_v63, %v446_v12  ;;  %v256_v2 = vadd.f32 1e-05, %v248_v62 }
 0x13d   : > { %v279_v4 = vmul.f32 %v374_v0, %v265_v1  ;;  %400 = vrsqrt.f32 %v256_v2 }
 0x13e   : > { %v389_v5 = vpop.eup %388 }
 0x13f   : > { %v391_v6 = vpop.eup %390  ;;  %v293_v7 = vadd.f32 %v375_v3, %v279_v4  ;;  %v266_v8 = vmul.f32 %v389_v5, %v452_v19 }
 0x140   : > { %v267_v9 = vmul.f32 %v391_v6, %v448_v13 }
 0x141   : > { %301 = vst [vmem:[%s490_s25] sm:$0xff] %v293_v7  ;;  %v280_v10 = vmul.f32 %v374_v0, %v266_v8 }
 0x142   : > { %v393_v11 = vpop.eup %392  ;;  %v281_v12 = vmul.f32 %v374_v0, %v267_v9 }
 0x143   : > { %v395_v14 = vpop.eup %394  ;;  %v294_v15 = vadd.f32 %v375_v3, %v280_v10  ;;  %v268_v16 = vmul.f32 %v393_v11, %v454_v20 }
 0x144   : > { %v295_v17 = vadd.f32 %v375_v3, %v281_v12  ;;  %v269_v18 = vmul.f32 %v395_v14, %v460_v27 }
 0x145   : > { %302 = vst [vmem:[%s490_s25 + $0x8] sm:$0xff] %v294_v15  ;;  %v282_v21 = vmul.f32 %v374_v0, %v268_v16 }
 0x146   : > { %v397_v22 = vpop.eup %396  ;;  %303 = vst [vmem:[%s490_s25 + $0x10] sm:$0xff] %v295_v17  ;;  %v283_v19 = vmul.f32 %v374_v0, %v269_v18 }
 0x147   : > { %v399_v13 = vpop.eup %398  ;;  %v296_v23 = vadd.f32 %v375_v3, %v282_v21  ;;  %v270_v24 = vmul.f32 %v397_v22, %v462_v28 }
 0x148   : > { %v297_v25 = vadd.f32 %v375_v3, %v283_v19  ;;  %v271_v26 = vmul.f32 %v399_v13, %v468_v35 }
 0x149   : > { %304 = vst [vmem:[%s490_s25 + $0x18] sm:$0xff] %v296_v23  ;;  %v284_v20 = vmul.f32 %v374_v0, %v270_v24 }
 0x14a   : > { %v401_v29 = vpop.eup %400  ;;  %305 = vst [vmem:[%s490_s25 + $0x20] sm:$0xff] %v297_v25  ;;  %v285_v27 = vmul.f32 %v374_v0, %v271_v26 }
 0x14b   : > { %v298_v30 = vadd.f32 %v375_v3, %v284_v20  ;;  %v272_v31 = vmul.f32 %v401_v29, %v470_v36 }
 0x14c   : > { %v299_v32 = vadd.f32 %v375_v3, %v285_v27 }
 0x14d   : > { %306 = vst [vmem:[%s490_s25 + $0x28] sm:$0xff] %v298_v30  ;;  %v286_v33 = vmul.f32 %v374_v0, %v272_v31 }
 0x14e   : > { %307 = vst [vmem:[%s490_s25 + $0x30] sm:$0xff] %v299_v32 }
 0x14f   : > { %v300_v34 = vadd.f32 %v375_v3, %v286_v33 }
 0x151   : > { %308 = vst [vmem:[%s490_s25 + $0x38] sm:$0xff] %v300_v34 }
 0x152 PF: > { %s13_s12 = sadd.s32 1, %s408_s12  }
 0x153   : > { %p10_p4 = scmp.ge.s32.totalorder %s13_s12, 4  }
 0x155   :  { %12 = sbr.rel (!%p10_p4) target bundleno = 1 (0x1), region = 62 }

// kernel: _lambda_.14
= control target key start
LH: loop header
LB: loop body
LE: loop exit
PB: predicated region body
PF: predicated region fallthrough
CT: control target
= control target key end

     0   :  { %s639_s12 = smov 0   ;;  %s641_s13 = smov 0   ;;  %s678_s0 = inlined_call_operand.vmem [shape: f32[128,5], index: 0, kind: input, shape index: {}]   ;;  %s679_s1 = inlined_call_operand.vmem [shape: bf16[5,128], index: 1, kind: input, shape index: {}]   ;;  %s680_s2 = inlined_call_operand.vmem [shape: f32[1,128], index: 2, kind: input, shape index: {}]   ;;  %s681_s3 = inlined_call_operand.vmem [shape: f32[128,128], index: 3, kind: output, shape index: {}]  }
   0x1   :  { %s643_s14 = smov 0  }
   0x2 LB: > { %s32_s15 = sadd.s32 1, %s612_s13  ;;  %p540_p0 = scmp.ge.s32.totalorder %s616_s14, 1  ;;  %s616_s14 = sphi %s643_s14, %s13_s14   ;;  %s612_s13 = sphi %s641_s13, %s683_s13   ;;  %s608_s12 = sphi %s639_s12, %s682_s12  }
   0x3   : > { %p34_p1 = scmp.ge.s32.totalorder %s32_s15, 2  ;;  %p186_p2 = scmp.lt.s32.totalorder %s616_s14, 3 }
   0x5   : > { %s685_s15 = smov (%p34_p1, %s32_s15), 0  ;;  %p187_p3 = pnand %p540_p0, %p186_p2 }
   0x6   : > { %s541_s18 = sshll.u32 (!%p187_p3), %s608_s12, 3 }
   0x7   : > { %190 = sbr.rel (%p187_p3) target bundleno = 223 (0xdf), region = 32  ;;  %p227_p4 = scmp.lt.s32.totalorder (!%p187_p3), %s541_s18, 15 }
   0xc   : > { %v287_v0 = vld [vmem:[%s679_s1] sm:$0x7]  ;;  %vm301_vm0 = vcmask 1041408   ;;  %vm302_vm1 = vcmask 1042432   ;;  %v618_v1 = vmov 65535   ;;  %s687_s18 = smov (!%p227_p4, %s541_s18), 15 }
   0xd   : > { %v303_v2 = vsel %vm301_vm0, 4294967295, %v618_v1  ;;  %s542_s19 = sshll.u32 %s687_s18, 3  ;;  %vm288_vm2 = vcmask 39936   ;;  %v549_v17 = vld [vmem:[%s680_s2] ss:$0 sm:$0xff] }
   0xe   : > { %v304_v3 = vsel %vm302_vm1, %v303_v2, 0  ;;  %s233_s22 = scalar_lea.vmem %s678_s0, %s542_s19  ;;  %s252_s27 = scalar_lea.vmem %s681_s3, %s542_s19 }
   0xf   : > { %v306_v4 = vand.u32 %v304_v3, %v287_v0  ;;  %v275_v5 = vld [vmem:[%s233_s22] sm:$0xff]  ;;  %v276_v6 = vld [vmem:[%s233_s22 + $0x8] sm:$0xff]  ;;  %v277_v10 = vld [vmem:[%s233_s22 + $0x10] sm:$0xff] }
  0x10   : > { %v279_v7 = vld [vmem:[%s233_s22 + $0x20] sm:$0xff]  ;;  %v283_v8 = vpack.c.bf16 %v276_v6, %v275_v5  ;;  %v280_v9 = vld [vmem:[%s233_s22 + $0x28] sm:$0xff]  ;;  %v278_v11 = vld [vmem:[%s233_s22 + $0x18] sm:$0xff] }
  0x11   : > { %557 = vmatprep.subr.bf16.mxu0 %v306_v4  ;;  %567 = vmatprep.subr.bf16.mxu1 %v306_v4  ;;  %v285_v12 = vpack.c.bf16 %v280_v9, %v279_v7  ;;  %v284_v13 = vpack.c.bf16 %v278_v11, %v277_v10  ;;  %v281_v14 = vld [vmem:[%s233_s22 + $0x30] sm:$0xff]  ;;  %v282_v15 = vld [vmem:[%s233_s22 + $0x38] sm:$0xff] }
  0x12   : > { %558 = vmatpush3.bf16.msra.mxu0 %v306_v4  ;;  %568 = vmatpush3.bf16.msra.mxu1 %v306_v4  ;;  %v286_v16 = vpack.c.bf16 %v282_v15, %v281_v14 }
  0x13   : > { %559 = vmatprep.mubr.msk.bf16.mxu0 %vm288_vm2, %v283_v8  ;;  %563 = vmatprep.mubr.msk.bf16.mxu1 %vm288_vm2, %v285_v12 }
  0x15   : > { %560 = vmatmul.mubr.msk.bf16.vlgmr.msra.gmra.mxu0 %vm288_vm2, %v284_v13  ;;  %564 = vmatmul.mubr.msk.bf16.vlgmr.msra.gmra.mxu1 %vm288_vm2, %v286_v16 }
  0xd5   : > { %v561_v18 = vpop.f32.mrf.mxu0  ;;  %v565_v20 = vpop.f32.mrf.mxu1 }
  0xd6   : > { %v409_v19 = vadd.f32 %v561_v18, %v549_v17  ;;  %v413_v21 = vadd.f32 %v565_v20, %v549_v17 }
  0xd7   : > { %v342_v22 = vpop.f32.mrf.mxu0  ;;  %v358_v24 = vpop.f32.mrf.mxu1 }
  0xd8   : > { %417 = vst [vmem:[%s252_s27 + $0x10] sm:$0xff] %v409_v19  ;;  %v407_v23 = vadd.f32 %v549_v17, %v342_v22  ;;  %421 = vst [vmem:[%s252_s27 + $0x30] sm:$0xff] %v413_v21  ;;  %v411_v25 = vadd.f32 %v549_v17, %v358_v24 }
  0xd9   : > { %v562_v26 = vpop.f32.mrf.mxu0  ;;  %v566_v28 = vpop.f32.mrf.mxu1 }
  0xda   : > { %415 = vst [vmem:[%s252_s27] sm:$0xff] %v407_v23  ;;  %v410_v27 = vadd.f32 %v562_v26, %v549_v17  ;;  %419 = vst [vmem:[%s252_s27 + $0x20] sm:$0xff] %v411_v25  ;;  %v414_v29 = vadd.f32 %v566_v28, %v549_v17 }
  0xdb   : > { %v345_v30 = vpop.f32.mrf.mxu0  ;;  %v361_v32 = vpop.f32.mrf.mxu1 }
  0xdc   : > { %418 = vst [vmem:[%s252_s27 + $0x18] sm:$0xff] %v410_v27  ;;  %v408_v31 = vadd.f32 %v549_v17, %v345_v30  ;;  %422 = vst [vmem:[%s252_s27 + $0x38] sm:$0xff] %v414_v29  ;;  %v412_v33 = vadd.f32 %v549_v17, %v361_v32 }
  0xde   : > { %416 = vst [vmem:[%s252_s27 + $0x8] sm:$0xff] %v408_v31  ;;  %420 = vst [vmem:[%s252_s27 + $0x28] sm:$0xff] %v412_v33 }
  0xdf PF: > { %s13_s14 = sadd.s32 1, %s616_s14   ;;  %s682_s12 = smov %s612_s13 }
  0xe0   : > { %p10_p5 = scmp.ge.s32.totalorder %s13_s14, 4   ;;  %s683_s13 = smov %s685_s15 }
  0xe2   :  { %12 = sbr.rel (!%p10_p5) target bundleno = 2 (0x2), region = 76 }

// kernel: _lambda_.17
= control target key start
LH: loop header
LB: loop body
LE: loop exit
PB: predicated region body
PF: predicated region fallthrough
CT: control target
= control target key end

     0   :  { %s1307_s24 = smov 0   ;;  %s1309_s25 = smov 0   ;;  %s1549_s0 = inlined_call_operand.vmem [shape: f32[128,128], index: 0, kind: input, shape index: {}]   ;;  %s1550_s1 = inlined_call_operand.vmem [shape: bf16[128,256], index: 1, kind: input, shape index: {}]   ;;  %s1551_s2 = inlined_call_operand.vmem [shape: f32[1,256], index: 2, kind: input, shape index: {}]   ;;  %s1552_s3 = inlined_call_operand.vmem [shape: bf16[256,128], index: 3, kind: input, shape index: {}]   ;;  %s1553_s4 = inlined_call_operand.vmem [shape: f32[1,128], index: 4, kind: input, shape index: {}]   ;;  %s1554_s5 = inlined_call_operand.vmem [shape: f32[1,128], index: 5, kind: input, shape index: {}]   ;;  %s1555_s6 = inlined_call_operand.vmem [shape: f32[1,128], index: 6, kind: input, shape index: {}]   ;;  %s1556_s7 = inlined_call_operand.vmem [shape: f32[128,128], index: 7, kind: output, shape index: {}]  }
   0x1   :  { %s1311_s26 = smov 0  }
   0x2 LB: > { %s29_s27 = sadd.s32 1, %s1260_s25  ;;  %p1079_p0 = scmp.ge.s32.totalorder %s1264_s26, 1  ;;  %s1264_s26 = sphi %s1311_s26, %s17_s26   ;;  %s1260_s25 = sphi %s1309_s25, %s1558_s25   ;;  %s1256_s24 = sphi %s1307_s24, %s1557_s24  }
   0x3   : > { %p31_p1 = scmp.ge.s32.totalorder %s29_s27, 2  ;;  %p282_p2 = scmp.lt.s32.totalorder %s1264_s26, 3 }
   0x5   : > { %s1560_s27 = smov (%p31_p1, %s29_s27), 0  ;;  %p283_p3 = pnand %p1079_p0, %p282_p2 }
   0x6   : > { %s1080_s17 = sshll.u32 (!%p283_p3), %s1256_s24, 3 }
   0x7   : > { %286 = sbr.rel (%p283_p3) target bundleno = 787 (0x313), region = 48  ;;  %p329_p4 = scmp.lt.s32.totalorder (!%p283_p3), %s1080_s17, 15 }
   0xc   : > { %v1186_v0 = vld [vmem:[%s1550_s1 + $0x74] ss:$8 sps:$4 sm:$0xff]   ;;  %v1188_v1 = vld [vmem:[%s1550_s1 + $0x70] ss:$8 sps:$4 sm:$0xff]   ;;  %v1266_v2 = vmov 0   ;;  %s1562_s17 = smov (!%p329_p4, %s1080_s17), 15  ;;  %v400_v45 = vlaneseq }
   0xd   : > { %522 = vmatprep.mubr.bf16.mxu0 %v1266_v2  ;;  %490 = vmatprep.subr.bf16.mxu0 %v1186_v0  ;;  %v1189_v3 = vld [vmem:[%s1550_s1 + $0x64] ss:$8 sps:$4 sm:$0xff]   ;;  %v1191_v4 = vld [vmem:[%s1550_s1 + $0x60] ss:$8 sps:$4 sm:$0xff]   ;;  %v1192_v5 = vld [vmem:[%s1550_s1 + $0x54] ss:$8 sps:$4 sm:$0xff]  }
   0xe   : > { %491 = vmatpush1.bf16.msra.mxu0 %v1188_v1  ;;  %v1194_v6 = vld [vmem:[%s1550_s1 + $0x50] ss:$8 sps:$4 sm:$0xff]   ;;  %v1195_v7 = vld [vmem:[%s1550_s1 + $0x44] ss:$8 sps:$4 sm:$0xff]   ;;  %v1197_v8 = vld [vmem:[%s1550_s1 + $0x40] ss:$8 sps:$4 sm:$0xff]  }
   0xf   : > { %492 = vmatprep.subr.bf16.mxu0 %v1189_v3  ;;  %v1198_v9 = vld [vmem:[%s1550_s1 + $0x34] ss:$8 sps:$4 sm:$0xff]   ;;  %v1200_v10 = vld [vmem:[%s1550_s1 + $0x30] ss:$8 sps:$4 sm:$0xff]   ;;  %v1201_v11 = vld [vmem:[%s1550_s1 + $0x24] ss:$8 sps:$4 sm:$0xff]  }
  0x10   : > { %v1210_v12 = vld [vmem:[%s1552_s3 + $0x78] sm:$0xff]   ;;  %v1212_v14 = vld [vmem:[%s1552_s3 + $0x70] sm:$0xff]   ;;  %s1081_s16 = sshll.u32 %s1562_s17, 3  ;;  %v1214_v16 = vld [vmem:[%s1552_s3 + $0x68] sm:$0xff]   ;;  %v401_v46 = vshrl.u32 %v400_v45, 7 }
  0x11   : > { %v1211_v13 = vld [vmem:[%s1552_s3 + $0x38] sm:$0xff]   ;;  %1121 = vmatprep.subr.bf16.mxu1 %v1210_v12  ;;  %v1213_v15 = vld [vmem:[%s1552_s3 + $0x30] sm:$0xff]   ;;  %v1203_v17 = vld [vmem:[%s1550_s1 + $0x20] ss:$8 sps:$4 sm:$0xff]   ;;  %s1397_s10 = scalar_lea.vmem %s1549_s0, %s1081_s16  ;;  %s1523_s9 = scalar_lea.vmem %s1556_s7, %s1081_s16 }
  0x12   : > { %493 = vmatpush1.bf16.msra.mxu0 %v1191_v4  ;;  %1122 = vmatpush3.bf16.msra.mxu1 %v1211_v13  ;;  %v1204_v18 = vld [vmem:[%s1550_s1 + $0x14] ss:$8 sps:$4 sm:$0xff]   ;;  %v1206_v19 = vld [vmem:[%s1550_s1 + $0x10] ss:$8 sps:$4 sm:$0xff]   ;;  %v1215_v20 = vld [vmem:[%s1552_s3 + $0x28] sm:$0xff]   ;;  %v406_v47 = vsub.s32 1, %v401_v46 }
  0x13   : > { %494 = vmatprep.subr.bf16.mxu0 %v1192_v5  ;;  %1123 = vmatprep.subr.bf16.mxu1 %v1212_v14  ;;  %v1216_v21 = vld [vmem:[%s1552_s3 + $0x60] sm:$0xff]   ;;  %v1218_v24 = vld [vmem:[%s1552_s3 + $0x58] sm:$0xff]   ;;  %v1418_v27 = vld [vmem:[%s1397_s10 + $0x8] sm:$0xff]  ;;  %v402_v48 = vsub.s32 0, %v401_v46 }
  0x14   : > { %v1207_v22 = vld [vmem:[%s1550_s1 + $0x4] ss:$8 sps:$4 sm:$0xff]   ;;  %v1209_v25 = vld [vmem:[%s1550_s1] ss:$8 sps:$4 sm:$0xff]   ;;  %v1219_v28 = vld [vmem:[%s1552_s3 + $0x18] sm:$0xff]  }
  0x15   : > { %v1217_v23 = vld [vmem:[%s1552_s3 + $0x20] sm:$0xff]   ;;  %v1427_v30 = vld [vmem:[%s1397_s10 + $0x10] sm:$0xff]  ;;  %v1430_v31 = vld [vmem:[%s1397_s10 + $0x18] sm:$0xff] }
  0x16   : > { %495 = vmatpush1.bf16.msra.mxu0 %v1194_v6  ;;  %1124 = vmatpush3.bf16.msra.mxu1 %v1213_v15  ;;  %v1415_v26 = vld [vmem:[%s1397_s10] sm:$0xff]  ;;  %v379_v32 = vpack.c.bf16 %v1430_v31, %v1427_v30  ;;  %v1439_v34 = vld [vmem:[%s1397_s10 + $0x28] sm:$0xff]  ;;  %v1445_v36 = vld [vmem:[%s1397_s10 + $0x30] sm:$0xff] }
  0x17   : > { %496 = vmatprep.subr.bf16.mxu0 %v1195_v7  ;;  %1125 = vmatprep.subr.bf16.mxu1 %v1214_v16  ;;  %v378_v29 = vpack.c.bf16 %v1418_v27, %v1415_v26  ;;  %v1436_v33 = vld [vmem:[%s1397_s10 + $0x20] sm:$0xff]  ;;  %v1448_v37 = vld [vmem:[%s1397_s10 + $0x38] sm:$0xff]  ;;  %v1220_v39 = vld [vmem:[%s1552_s3 + $0x50] sm:$0xff]  }
  0x18   : > { %v380_v35 = vpack.c.bf16 %v1439_v34, %v1436_v33  ;;  %v381_v38 = vpack.c.bf16 %v1448_v37, %v1445_v36  ;;  %v1221_v40 = vld [vmem:[%s1552_s3 + $0x10] sm:$0xff]   ;;  %v1222_v41 = vld [vmem:[%s1552_s3 + $0x48] sm:$0xff]   ;;  %v1224_v43 = vld [vmem:[%s1552_s3 + $0x40] sm:$0xff]  }
  0x19   : > { %v1223_v42 = vld [vmem:[%s1552_s3 + $0x8] sm:$0xff]   ;;  %v1225_v44 = vld [vmem:[%s1552_s3] sm:$0xff]  }
  0x1a   : > { %497 = vmatpush1.bf16.msra.mxu0 %v1197_v8  ;;  %1126 = vmatpush3.bf16.msra.mxu1 %v1215_v20  ;;  %v398_v49 = vld [vmem:[%s1551_s2] sm:$0x3] }
  0x1b   : > { %498 = vmatprep.subr.bf16.mxu0 %v1198_v9  ;;  %1127 = vmatprep.subr.bf16.mxu1 %v1216_v21  ;;  %v407_v51 = vrot.slane %v398_v49, %v406_v47  ;;  %v403_v52 = vrot.slane %v398_v49, %v402_v48 }
  0x1e   : > { %499 = vmatpush1.bf16.msra.mxu0 %v1200_v10  ;;  %1128 = vmatpush3.bf16.msra.mxu1 %v1217_v23 }
  0x1f   : > { %500 = vmatprep.subr.bf16.mxu0 %v1201_v11  ;;  %1129 = vmatprep.subr.bf16.mxu1 %v1218_v24 }
  0x22   : > { %501 = vmatpush1.bf16.msra.mxu0 %v1203_v17  ;;  %1130 = vmatpush3.bf16.msra.mxu1 %v1219_v28 }
  0x23   : > { %502 = vmatprep.subr.bf16.mxu0 %v1204_v18  ;;  %1131 = vmatprep.subr.bf16.mxu1 %v1220_v39 }
  0x26   : > { %503 = vmatpush1.bf16.msra.mxu0 %v1206_v19  ;;  %1132 = vmatpush3.bf16.msra.mxu1 %v1221_v40 }
  0x27   : > { %504 = vmatprep.subr.bf16.mxu0 %v1207_v22  ;;  %1133 = vmatprep.subr.bf16.mxu1 %v1222_v41 }
  0x2a   : > { %505 = vmatpush1.bf16.msra.mxu0 %v1209_v25  ;;  %1134 = vmatpush3.bf16.msra.mxu1 %v1223_v42 }
  0x2b   : > { %1135 = vmatprep.subr.bf16.mxu1 %v1224_v43 }
  0x2d   : > { %523 = vmatmul.mubr.bf16.vlgmr.msra.gmra.mxu0 %v378_v29 }
  0x2e   : > { %532 = vmatprep.mubr.bf16.mxu0 %v1266_v2  ;;  %1136 = vmatpush3.bf16.msra.mxu1 %v1225_v44 }
  0x35   : > { %533 = vmatmul.mubr.bf16.gmra.mxu0 %v379_v32 }
  0x36   : > { %542 = vmatprep.mubr.bf16.mxu0 %v1266_v2 }
  0x3d   : > { %543 = vmatmul.mubr.bf16.gmra.mxu0 %v380_v35 }
  0x3e   : > { %552 = vmatprep.mubr.bf16.mxu0 %v1266_v2 }
  0x45   : > { %553 = vmatmul.mubr.bf16.gmra.mxu0 %v381_v38 }
  0xed   : > { %v524_v50 = vpop.f32.mrf.mxu0 }
  0xee   : > { %v525_v57 = vadd.f32 %v524_v50, %v403_v52 }
  0xef   : > { %v526_v53 = vpop.f32.mrf.mxu0 }
  0xf0   : > { %v527_v55 = vadd.f32 %v526_v53, %v407_v51  ;;  %v563_v0 = vmax.f32 %v525_v57, 0.0 }
  0xf1   : > { %v528_v54 = vpop.f32.mrf.mxu0 }
  0xf2   : > { %v529_v56 = vadd.f32 %v528_v54, %v403_v52  ;;  %v564_v62 = vmax.f32 %v527_v55, 0.0 }
  0xf3   : > { %v530_v58 = vpop.f32.mrf.mxu0 }
  0xf4   : > { %v531_v59 = vadd.f32 %v530_v58, %v407_v51  ;;  %v565_v60 = vmax.f32 %v529_v56, 0.0  ;;  %v1116_v56 = vld [vmem:[%s1553_s4] ss:$0 sm:$0xff] }
  0xf5   : > { %v534_v61 = vpop.f32.mrf.mxu0 }
  0xf6   : > { %v566_v63 = vmax.f32 %v531_v59, 0.0  ;;  %v587_v3 = vpack.c.bf16 %v565_v60, %v563_v0  ;;  %v535_v7 = vadd.f32 %v534_v61, %v403_v52 }
  0xf7   : > { %v536_v1 = vpop.f32.mrf.mxu0 }
  0xf8   : > { %v588_v2 = vpack.c.bf16 %v566_v63, %v564_v62  ;;  %v537_v5 = vadd.f32 %v536_v1, %v407_v51  ;;  %v567_v14 = vmax.f32 %v535_v7, 0.0 }
  0xf9   : > { %v538_v4 = vpop.f32.mrf.mxu0 }
  0xfa   : > { %v539_v6 = vadd.f32 %v538_v4, %v403_v52  ;;  %755 = vmatprep.mubr.bf16.mxu1 %v588_v2  ;;  %v568_v12 = vmax.f32 %v537_v5, 0.0 }
  0xfb   : > { %v540_v8 = vpop.f32.mrf.mxu0  ;;  %756 = vmatmul.mubr.bf16.vlgmr.msra.gmra.mxu1 %v587_v3 }
  0xfc   : > { %v541_v9 = vadd.f32 %v540_v8, %v407_v51  ;;  %v569_v10 = vmax.f32 %v539_v6, 0.0 }
  0xfd   : > { %v544_v11 = vpop.f32.mrf.mxu0 }
  0xfe   : > { %v570_v13 = vmax.f32 %v541_v9, 0.0  ;;  %v589_v17 = vpack.c.bf16 %v569_v10, %v567_v14  ;;  %v545_v21 = vadd.f32 %v544_v11, %v403_v52 }
  0xff   : > { %v546_v15 = vpop.f32.mrf.mxu0 }
 0x100   : > { %v590_v16 = vpack.c.bf16 %v570_v13, %v568_v12  ;;  %v547_v19 = vadd.f32 %v546_v15, %v407_v51  ;;  %v571_v32 = vmax.f32 %v545_v21, 0.0 }
 0x101   : > { %v548_v18 = vpop.f32.mrf.mxu0 }
 0x102   : > { %v549_v20 = vadd.f32 %v548_v18, %v403_v52  ;;  %763 = vmatprep.mubr.bf16.mxu1 %v590_v16  ;;  %v572_v28 = vmax.f32 %v547_v19, 0.0 }
 0x103   : > { %v550_v22 = vpop.f32.mrf.mxu0  ;;  %764 = vmatmul.mubr.bf16.gmra.mxu1 %v589_v17 }
 0x104   : > { %v551_v23 = vadd.f32 %v550_v22, %v407_v51  ;;  %v573_v24 = vmax.f32 %v549_v20, 0.0 }
 0x105   : > { %v554_v25 = vpop.f32.mrf.mxu0 }
 0x106   : > { %v574_v29 = vmax.f32 %v551_v23, 0.0  ;;  %v591_v39 = vpack.c.bf16 %v573_v24, %v571_v32  ;;  %v555_v43 = vadd.f32 %v554_v25, %v403_v52 }
 0x107   : > { %v556_v35 = vpop.f32.mrf.mxu0 }
 0x108   : > { %v592_v38 = vpack.c.bf16 %v574_v29, %v572_v28  ;;  %v557_v41 = vadd.f32 %v556_v35, %v407_v51  ;;  %v575_v49 = vmax.f32 %v555_v43, 0.0 }
 0x109   : > { %v558_v40 = vpop.f32.mrf.mxu0 }
 0x10a   : > { %v559_v42 = vadd.f32 %v558_v40, %v403_v52  ;;  %771 = vmatprep.mubr.bf16.mxu1 %v592_v38  ;;  %v576_v47 = vmax.f32 %v557_v41, 0.0 }
 0x10b   : > { %v560_v44 = vpop.f32.mrf.mxu0  ;;  %772 = vmatmul.mubr.bf16.gmra.mxu1 %v591_v39 }
 0x10c   : > { %v561_v45 = vadd.f32 %v560_v44, %v407_v51  ;;  %v577_v46 = vmax.f32 %v559_v42, 0.0 }
 0x10e   : > { %v578_v48 = vmax.f32 %v561_v45, 0.0  ;;  %v593_v53 = vpack.c.bf16 %v577_v46, %v575_v49 }
 0x110   : > { %v594_v50 = vpack.c.bf16 %v578_v48, %v576_v47 }
 0x112   : > { %779 = vmatprep.mubr.bf16.mxu1 %v594_v50 }
 0x113   : > { %780 = vmatmul.mubr.bf16.gmra.mxu1 %v593_v53 }
 0x1bb   : > { %v1137_v54 = vpop.f32.mrf.mxu1 }
 0x1bd   : > { %v1138_v55 = vpop.f32.mrf.mxu1 }
 0x1be   : > { %v1139_v57 = vadd.f32 %v1138_v55, %v1137_v54 }
 0x1bf   : > { %v1140_v58 = vpop.f32.mrf.mxu1 }
 0x1c0   : > { %v822_v52 = vadd.f32 %v1139_v57, %v1116_v56 }
 0x1c1   : > { %v1141_v59 = vpop.f32.mrf.mxu1 }
 0x1c2   : > { %v1142_v60 = vadd.f32 %v1141_v59, %v1140_v58  ;;  %v830_v51 = vadd.f32 %v822_v52, %v1415_v26 }
 0x1c3   : > { %v1143_v61 = vpop.f32.mrf.mxu1 }
 0x1c4   : > { %v823_v62 = vadd.f32 %v1142_v60, %v1116_v56  ;;  %840 = vadd.xlane.f32.xlu0 %v830_v51 }
 0x1c5   : > { %v1144_v63 = vpop.f32.mrf.mxu1 }
 0x1c6   : > { %v1145_v0 = vadd.f32 %v1144_v63, %v1143_v61  ;;  %v831_v1 = vadd.f32 %v823_v62, %v1418_v27 }
 0x1c7   : > { %v1146_v2 = vpop.f32.mrf.mxu1 }
 0x1c8   : > { %v824_v3 = vadd.f32 %v1145_v0, %v1116_v56  ;;  %842 = vadd.xlane.f32.xlu0 %v831_v1 }
 0x1c9   : > { %v1147_v4 = vpop.f32.mrf.mxu1 }
 0x1ca   : > { %v1148_v5 = vadd.f32 %v1147_v4, %v1146_v2  ;;  %v832_v6 = vadd.f32 %v824_v3, %v1427_v30 }
 0x1cb   : > { %v1149_v7 = vpop.f32.mrf.mxu1 }
 0x1cc   : > { %v825_v8 = vadd.f32 %v1148_v5, %v1116_v56  ;;  %844 = vadd.xlane.f32.xlu1 %v832_v6 }
 0x1cd   : > { %v1150_v9 = vpop.f32.mrf.mxu1 }
 0x1ce   : > { %v1151_v10 = vadd.f32 %v1150_v9, %v1149_v7  ;;  %v833_v26 = vadd.f32 %v825_v8, %v1430_v31 }
 0x1cf   : > { %v1152_v11 = vpop.f32.mrf.mxu1 }
 0x1d0   : > { %v826_v12 = vadd.f32 %v1151_v10, %v1116_v56  ;;  %846 = vadd.xlane.f32.xlu1 %v833_v26 }
 0x1d1   : > { %v1153_v13 = vpop.f32.mrf.mxu1 }
 0x1d2   : > { %v1154_v14 = vadd.f32 %v1153_v13, %v1152_v11  ;;  %v834_v27 = vadd.f32 %v826_v12, %v1436_v33  ;;  %v1117_v11 = vld [vmem:[%s1554_s5] ss:$0 sm:$0xff] }
 0x1d3   : > { %v1155_v15 = vpop.f32.mrf.mxu1 }
 0x1d4   : > { %v827_v16 = vadd.f32 %v1154_v14, %v1116_v56  ;;  %848 = vadd.xlane.f32.xlu0 %v834_v27  ;;  %v1118_v14 = vld [vmem:[%s1555_s6] ss:$0 sm:$0xff] }
 0x1d5   : > { %v1156_v17 = vpop.f32.mrf.mxu1 }
 0x1d6   : > { %v1157_v18 = vadd.f32 %v1156_v17, %v1155_v15  ;;  %v835_v30 = vadd.f32 %v827_v16, %v1439_v34 }
 0x1d7   : > { %v1158_v19 = vpop.f32.mrf.mxu1 }
 0x1d8   : > { %v828_v20 = vadd.f32 %v1157_v18, %v1116_v56  ;;  %850 = vadd.xlane.f32.xlu1 %v835_v30 }
 0x1d9   : > { %v1159_v21 = vpop.f32.mrf.mxu1 }
 0x1da   : > { %v1160_v22 = vadd.f32 %v1159_v21, %v1158_v19  ;;  %v836_v31 = vadd.f32 %v828_v20, %v1445_v36 }
 0x1dc   : > { %v829_v23 = vadd.f32 %v1160_v22, %v1116_v56  ;;  %852 = vadd.xlane.f32.xlu0 %v836_v31 }
 0x1de   : > { %v837_v24 = vadd.f32 %v829_v23, %v1448_v37 }
 0x1e0   : > { %854 = vadd.xlane.f32.xlu1 %v837_v24 }
 0x24d   : > { %v841_v33 = vpop.xlane.xlu0 %840 }
 0x24e   : > { %v857_v25 = vmul.f32 0.0078125, %v841_v33 }
 0x250   : > { %v865_v28 = vsub.f32 %v830_v51, %v857_v25 }
 0x251   : > { %v843_v29 = vpop.xlane.xlu0 %842 }
 0x252   : > { %v858_v32 = vmul.f32 0.0078125, %v843_v29  ;;  %v873_v35 = vmul.f32 %v865_v28, %v865_v28 }
 0x254   : > { %v1484_v38 = vsub.f32 %v831_v1, %v858_v32  ;;  %881 = vadd.xlane.f32.xlu0 %v873_v35 }
 0x255   : > { %v845_v34 = vpop.xlane.xlu1 %844 }
 0x256   : > { %v859_v39 = vmul.f32 0.0078125, %v845_v34  ;;  %v874_v40 = vmul.f32 %v1484_v38, %v1484_v38 }
 0x258   : > { %v1488_v36 = vsub.f32 %v832_v6, %v859_v39  ;;  %883 = vadd.xlane.f32.xlu1 %v874_v40 }
 0x259   : > { %v847_v41 = vpop.xlane.xlu1 %846 }
 0x25a   : > { %v860_v37 = vmul.f32 0.0078125, %v847_v41  ;;  %v875_v42 = vmul.f32 %v1488_v36, %v1488_v36 }
 0x25c   : > { %v1492_v43 = vsub.f32 %v833_v26, %v860_v37  ;;  %885 = vadd.xlane.f32.xlu0 %v875_v42 }
 0x25d   : > { %v849_v44 = vpop.xlane.xlu0 %848 }
 0x25e   : > { %v861_v45 = vmul.f32 0.0078125, %v849_v44  ;;  %v876_v46 = vmul.f32 %v1492_v43, %v1492_v43 }
 0x260   : > { %v1496_v47 = vsub.f32 %v834_v27, %v861_v45  ;;  %887 = vadd.xlane.f32.xlu1 %v876_v46 }
 0x261   : > { %v851_v48 = vpop.xlane.xlu1 %850 }
 0x262   : > { %v862_v49 = vmul.f32 0.0078125, %v851_v48  ;;  %v877_v50 = vmul.f32 %v1496_v47, %v1496_v47 }
 0x264   : > { %v1500_v53 = vsub.f32 %v835_v30, %v862_v49  ;;  %889 = vadd.xlane.f32.xlu0 %v877_v50 }
 0x265   : > { %v853_v54 = vpop.xlane.xlu0 %852 }
 0x266   : > { %v863_v55 = vmul.f32 0.0078125, %v853_v54  ;;  %v878_v56 = vmul.f32 %v1500_v53, %v1500_v53 }
 0x268   : > { %v1504_v57 = vsub.f32 %v836_v31, %v863_v55  ;;  %891 = vadd.xlane.f32.xlu1 %v878_v56 }
 0x269   : > { %v855_v58 = vpop.xlane.xlu1 %854 }
 0x26a   : > { %v864_v52 = vmul.f32 0.0078125, %v855_v58  ;;  %v879_v59 = vmul.f32 %v1504_v57, %v1504_v57 }
 0x26c   : > { %v1508_v60 = vsub.f32 %v837_v24, %v864_v52  ;;  %893 = vadd.xlane.f32.xlu0 %v879_v59 }
 0x26e   : > { %v880_v51 = vmul.f32 %v1508_v60, %v1508_v60 }
 0x270   : > { %895 = vadd.xlane.f32.xlu1 %v880_v51 }
 0x2dd   : > { %v882_v61 = vpop.xlane.xlu0 %881 }
 0x2de   : > { %v897_v62 = vmul.f32 0.0078125, %v882_v61 }
 0x2e0   : > { %v905_v63 = vadd.f32 1e-05, %v897_v62 }
 0x2e1   : > { %v884_v0 = vpop.xlane.xlu1 %883 }
 0x2e2   : > { %1226 = vrsqrt.f32 %v905_v63  ;;  %v898_v1 = vmul.f32 0.0078125, %v884_v0 }
 0x2e4   : > { %v906_v2 = vadd.f32 1e-05, %v898_v1 }
 0x2e5   : > { %v886_v3 = vpop.xlane.xlu0 %885 }
 0x2e6   : > { %1228 = vrsqrt.f32 %v906_v2  ;;  %v899_v4 = vmul.f32 0.0078125, %v886_v3 }
 0x2e8   : > { %v907_v5 = vadd.f32 1e-05, %v899_v4 }
 0x2e9   : > { %v888_v6 = vpop.xlane.xlu1 %887 }
 0x2ea   : > { %1230 = vrsqrt.f32 %v907_v5  ;;  %v900_v7 = vmul.f32 0.0078125, %v888_v6 }
 0x2ec   : > { %v908_v8 = vadd.f32 1e-05, %v900_v7 }
 0x2ed   : > { %v890_v9 = vpop.xlane.xlu0 %889 }
 0x2ee   : > { %1232 = vrsqrt.f32 %v908_v8  ;;  %v901_v10 = vmul.f32 0.0078125, %v890_v9 }
 0x2ef   : > { %v1227_v26 = vpop.eup %1226 }
 0x2f0   : > { %v921_v12 = vmul.f32 %v1227_v26, %v865_v28  ;;  %v909_v13 = vadd.f32 1e-05, %v901_v10 }
 0x2f1   : > { %v892_v27 = vpop.xlane.xlu1 %891 }
 0x2f2   : > { %v935_v15 = vmul.f32 %v1117_v11, %v921_v12  ;;  %1234 = vrsqrt.f32 %v909_v13  ;;  %v902_v16 = vmul.f32 0.0078125, %v892_v27 }
 0x2f3   : > { %v1229_v17 = vpop.eup %1228 }
 0x2f4   : > { %v949_v18 = vadd.f32 %v1118_v14, %v935_v15  ;;  %v922_v30 = vmul.f32 %v1229_v17, %v1484_v38  ;;  %v910_v19 = vadd.f32 1e-05, %v902_v16 }
 0x2f5   : > { %v894_v20 = vpop.xlane.xlu0 %893 }
 0x2f6   : > { %957 = vst [vmem:[%s1523_s9] sm:$0xff] %v949_v18  ;;  %v936_v21 = vmul.f32 %v1117_v11, %v922_v30  ;;  %1236 = vrsqrt.f32 %v910_v19  ;;  %v903_v22 = vmul.f32 0.0078125, %v894_v20 }
 0x2f7   : > { %v1231_v31 = vpop.eup %1230 }
 0x2f8   : > { %v950_v23 = vadd.f32 %v1118_v14, %v936_v21  ;;  %v923_v24 = vmul.f32 %v1231_v31, %v1488_v36  ;;  %v911_v33 = vadd.f32 1e-05, %v903_v22 }
 0x2f9   : > { %v896_v25 = vpop.xlane.xlu1 %895 }
 0x2fa   : > { %958 = vst [vmem:[%s1523_s9 + $0x8] sm:$0xff] %v950_v23  ;;  %v937_v28 = vmul.f32 %v1117_v11, %v923_v24  ;;  %1238 = vrsqrt.f32 %v911_v33  ;;  %v904_v29 = vmul.f32 0.0078125, %v896_v25 }
 0x2fb   : > { %v1233_v32 = vpop.eup %1232 }
 0x2fc   : > { %v951_v35 = vadd.f32 %v1118_v14, %v937_v28  ;;  %v924_v38 = vmul.f32 %v1233_v32, %v1492_v43  ;;  %v912_v34 = vadd.f32 1e-05, %v904_v29 }
 0x2fe   : > { %959 = vst [vmem:[%s1523_s9 + $0x10] sm:$0xff] %v951_v35  ;;  %v938_v39 = vmul.f32 %v1117_v11, %v924_v38  ;;  %1240 = vrsqrt.f32 %v912_v34 }
 0x2ff   : > { %v1235_v40 = vpop.eup %1234 }
 0x300   : > { %v952_v41 = vadd.f32 %v1118_v14, %v938_v39  ;;  %v925_v36 = vmul.f32 %v1235_v40, %v1496_v47 }
 0x302   : > { %960 = vst [vmem:[%s1523_s9 + $0x18] sm:$0xff] %v952_v41  ;;  %v939_v37 = vmul.f32 %v1117_v11, %v925_v36 }
 0x303   : > { %v1237_v42 = vpop.eup %1236 }
 0x304   : > { %v953_v44 = vadd.f32 %v1118_v14, %v939_v37  ;;  %v926_v45 = vmul.f32 %v1237_v42, %v1500_v53 }
 0x306   : > { %961 = vst [vmem:[%s1523_s9 + $0x20] sm:$0xff] %v953_v44  ;;  %v940_v46 = vmul.f32 %v1117_v11, %v926_v45 }
 0x307   : > { %v1239_v43 = vpop.eup %1238 }
 0x308   : > { %v954_v48 = vadd.f32 %v1118_v14, %v940_v46  ;;  %v927_v49 = vmul.f32 %v1239_v43, %v1504_v57 }
 0x30a   : > { %962 = vst [vmem:[%s1523_s9 + $0x28] sm:$0xff] %v954_v48  ;;  %v941_v50 = vmul.f32 %v1117_v11, %v927_v49 }
 0x30b   : > { %v1241_v54 = vpop.eup %1240 }
 0x30c   : > { %v955_v55 = vadd.f32 %v1118_v14, %v941_v50  ;;  %v928_v47 = vmul.f32 %v1241_v54, %v1508_v60 }
 0x30e   : > { %963 = vst [vmem:[%s1523_s9 + $0x30] sm:$0xff] %v955_v55  ;;  %v942_v56 = vmul.f32 %v1117_v11, %v928_v47 }
 0x310   : > { %v956_v58 = vadd.f32 %v1118_v14, %v942_v56 }
 0x312   : > { %964 = vst [vmem:[%s1523_s9 + $0x38] sm:$0xff] %v956_v58 }
 0x313 PF: > { %s17_s26 = sadd.s32 1, %s1264_s26   ;;  %s1557_s24 = smov %s1260_s25 }
 0x314   : > { %p14_p5 = scmp.ge.s32.totalorder %s17_s26, 4   ;;  %s1558_s25 = smov %s1560_s27 }
 0x316   :  { %16 = sbr.rel (!%p14_p5) target bundleno = 2 (0x2), region = 95 }

// kernel: _lambda_.27
= control target key start
LH: loop header
LB: loop body
LE: loop exit
PB: predicated region body
PF: predicated region fallthrough
CT: control target
= control target key end

     0   :  { %8 = vsyncpa [#allocation4], 0  ;;  %s983_s0 = inlined_call_operand.vmem [shape: f32[128,128], index: 0, kind: input, shape index: {}]   ;;  %s984_s1 = inlined_call_operand.vmem [shape: bf16[128,128], index: 1, kind: input, shape index: {}]   ;;  %s985_s2 = inlined_call_operand.vmem [shape: f32[1,128], index: 2, kind: input, shape index: {}]   ;;  %s986_s3 = inlined_call_operand.hbm [shape: f32[128,128], index: 3, kind: output, shape index: {}]  }
   0x1   :  { %10 = vsyncpa [#allocation4 + $0x1], 0  ;;  %s829_s12 = smov 0   ;;  %s831_s13 = smov 0  }
   0x2   :  { %s833_s14 = smov 0   ;;  %s835_s15 = smov 0  }
   0x3   :  { %s837_s16 = smov 0   ;;  %s839_s17 = smov 0  }
   0x4 LB: > { %s586_s18 = sadd.s32 4294967295, %s804_s17   ;;  %s587_s19 = sadd.s32 4294967294, %s804_s17   ;;  %s804_s17 = sphi %s839_s17, %s16_s17   ;;  %s800_s16 = sphi %s837_s16, %s993_s16   ;;  %s796_s15 = sphi %s835_s15, %s992_s15   ;;  %s792_s14 = sphi %s833_s14, %s991_s14   ;;  %s788_s13 = sphi %s831_s13, %s990_s13   ;;  %s784_s12 = sphi %s829_s12, %s989_s12  }
   0x5   : > { %s35_s20 = sadd.s32 1, %s800_s16  ;;  %s126_s21 = sadd.s32 1, %s792_s14 }
   0x6   : > { %p37_p0 = scmp.ge.s32.totalorder %s35_s20, 2  ;;  %p136_p1 = scmp.ne.s32.totalorder %s792_s14, %s788_s13 }
   0x7   : > { %p137_p2 = scmp.eq.s32.totalorder %s586_s18, 1  ;;  %p142_p3 = scmp.ne.s32.totalorder %s788_s13, %s784_s12 }
   0x8   : > { %s995_s20 = smov (%p37_p0, %s35_s20), 0  ;;  %p143_p5 = scmp.eq.s32.totalorder %s587_s19, 1 }
   0x9   : > { %p869_p4 = por %p137_p2, %p136_p1  ;;  %s121_s23 = ssub.s32 %s800_s16, %s995_s20 }
   0xa   : > { %p592_p6 = scmp.ge.s32.totalorder %s804_s17, 1  ;;  %p124_p7 = scmp.eq.s32.totalorder %s121_s23, 0 }
   0xb   : > { %p876_p8 = por %p143_p5, %p142_p3  ;;  %p191_p9 = scmp.lt.s32.totalorder %s804_s17, 3 }
   0xc   : > { %s882_s25 = scalar_select %p124_p7, %s792_s14, %s126_s21  }
   0xd   : > { %p192_p10 = pnand %p592_p6, %p191_p9 }
   0xe   : > { %s594_s28 = sshll.u32 (!%p192_p10), %s796_s15, 3  ;;  %s226_s30 = sand.u32 (!%p192_p10), 1, %s788_s13  }
   0xf   : > { %195 = sbr.rel (%p192_p10) target bundleno = 268 (0x10c), region = 32  ;;  %p230_p11 = scmp.lt.s32.totalorder (!%p192_p10), %s594_s28, 15 }
  0x10   : > { %s593_s4 = sshll.u32 (!%p192_p10), %s226_s30, 6  ;;  %s610_s8 = sshll.u32 (!%p192_p10), %s796_s15, 10 }
  0x11   : > { %s228_s7 = scalar_lea.vmem (!%p192_p10), [#allocation3], %s593_s4  ;;  %s932_s18 = scalar_lea.hbm (!%p192_p10), %s986_s3, %s610_s8 }
  0x12   : > { %s938_s15 = scalar_lea.sflag (!%p192_p10), [#allocation4], %s226_s30  ;;  %s806_s21 = smov (!%p192_p10), [#allocation3]  }
  0x13   : > { %s732_s23 = sshll.u32 (!%p192_p10), %s806_s21, 4  ;;  %s733_s23 = int_to_ptr.vmem [resolvable:$false] %s732_s23 }
  0x14   : > { %v720_v0 = vld [vmem:[%s984_s1 + $0x38] sm:$0xff]   ;;  %v721_v1 = vld [vmem:[%s984_s1 + $0x30] sm:$0xff]   ;;  %s997_s28 = smov (!%p230_p11, %s594_s28), 15  ;;  %v722_v2 = vld [vmem:[%s984_s1 + $0x28] sm:$0xff]   ;;  %s734_s26 = scalar_lea.vmem %s733_s23, 2048 }
  0x15   : > { %623 = vmatprep.subr.bf16.mxu0 %v720_v0  ;;  %647 = vmatprep.subr.bf16.mxu1 %v720_v0  ;;  %s595_s6 = sshll.u32 %s997_s28, 3  ;;  %v723_v3 = vld [vmem:[%s984_s1 + $0x20] sm:$0xff]   ;;  %v724_v10 = vld [vmem:[%s984_s1 + $0x18] sm:$0xff]   ;;  %v725_v11 = vld [vmem:[%s984_s1 + $0x10] sm:$0xff]  }
  0x16   : > { %624 = vmatpush3.bf16.msra.mxu0 %v720_v0  ;;  %655 = vmatpush3.bf16.msra.mxu1 %v720_v0  ;;  %s897_s9 = scalar_lea.vmem %s983_s0, %s595_s6  ;;  %v726_v12 = vld [vmem:[%s984_s1 + $0x8] sm:$0xff]   ;;  %v727_v13 = vld [vmem:[%s984_s1] sm:$0xff]  }
  0x17   : > { %625 = vmatprep.subr.bf16.mxu0 %v721_v1  ;;  %648 = vmatprep.subr.bf16.mxu1 %v721_v1  ;;  %v272_v4 = vld [vmem:[%s897_s9] sm:$0xff]  ;;  %v273_v5 = vld [vmem:[%s897_s9 + $0x8] sm:$0xff]  ;;  %v274_v14 = vld [vmem:[%s897_s9 + $0x10] sm:$0xff] }
  0x18   : > { %v276_v6 = vld [vmem:[%s897_s9 + $0x20] sm:$0xff]  ;;  %v280_v7 = vpack.c.bf16 %v273_v5, %v272_v4  ;;  %v277_v8 = vld [vmem:[%s897_s9 + $0x28] sm:$0xff]  ;;  %v275_v15 = vld [vmem:[%s897_s9 + $0x18] sm:$0xff] }
  0x19   : > { %v282_v9 = vpack.c.bf16 %v277_v8, %v276_v6  ;;  %v278_v16 = vld [vmem:[%s897_s9 + $0x30] sm:$0xff]  ;;  %v279_v17 = vld [vmem:[%s897_s9 + $0x38] sm:$0xff]  ;;  %v281_v18 = vpack.c.bf16 %v275_v15, %v274_v14  ;;  %v604_v20 = vld [vmem:[%s985_s2] ss:$0 sm:$0xff]  ;;  %s478_s9 = sshll.u32 %s228_s7, 4  ;;  %s934_s9 = int_to_ptr.vmem [resolvable:$true] %s478_s9 }
  0x1a   : > { %626 = vmatpush3.bf16.msra.mxu0 %v721_v1  ;;  %656 = vmatpush3.bf16.msra.mxu1 %v721_v1  ;;  %v283_v19 = vpack.c.bf16 %v279_v17, %v278_v16  ;;  %s728_s19 = scalar_lea.vmem %s934_s9, 1024  ;;  %p735_p1 = scmp.lt.s32.totalorder %s934_s9, %s733_s23 }
  0x1b   : > { %627 = vmatprep.subr.bf16.mxu0 %v722_v2  ;;  %649 = vmatprep.subr.bf16.mxu1 %v722_v2  ;;  %p729_p12 = scmp.ne.s32.totalorder %s934_s9, %s728_s19  ;;  %p736_p2 = scmp.lt.s32.totalorder %s734_s26, %s728_s19 }
  0x1c   : > { %639 = vmatprep.mubr.bf16.mxu0 %v280_v7  ;;  %643 = vmatprep.mubr.bf16.mxu1 %v282_v9 }
  0x1d   : > { %p730_p13 = pnand %p729_p12, %p869_p4  ;;  %p737_p3 = por %p736_p2, %p735_p1 }
  0x1e   : > { %628 = vmatpush3.bf16.msra.mxu0 %v722_v2  ;;  %657 = vmatpush3.bf16.msra.mxu1 %v722_v2 }
  0x1f   : > { %629 = vmatprep.subr.bf16.mxu0 %v723_v3  ;;  %650 = vmatprep.subr.bf16.mxu1 %v723_v3  ;;  %p731_p0 = pneg %p730_p13 }
  0x21   : > { %p738_p5 = pnand %p737_p3, %p731_p0 }
  0x22   : > { %630 = vmatpush3.bf16.msra.mxu0 %v723_v3  ;;  %658 = vmatpush3.bf16.msra.mxu1 %v723_v3 }
  0x23   : > { %631 = vmatprep.subr.bf16.mxu0 %v724_v10  ;;  %651 = vmatprep.subr.bf16.mxu1 %v724_v10 }
  0x26   : > { %632 = vmatpush3.bf16.msra.mxu0 %v724_v10  ;;  %659 = vmatpush3.bf16.msra.mxu1 %v724_v10 }
  0x27   : > { %633 = vmatprep.subr.bf16.mxu0 %v725_v11  ;;  %652 = vmatprep.subr.bf16.mxu1 %v725_v11 }
  0x2a   : > { %634 = vmatpush3.bf16.msra.mxu0 %v725_v11  ;;  %660 = vmatpush3.bf16.msra.mxu1 %v725_v11 }
  0x2b   : > { %635 = vmatprep.subr.bf16.mxu0 %v726_v12  ;;  %653 = vmatprep.subr.bf16.mxu1 %v726_v12 }
  0x2e   : > { %636 = vmatpush3.bf16.msra.mxu0 %v726_v12  ;;  %661 = vmatpush3.bf16.msra.mxu1 %v726_v12 }
  0x2f   : > { %637 = vmatprep.subr.bf16.mxu0 %v727_v13  ;;  %654 = vmatprep.subr.bf16.mxu1 %v727_v13 }
  0x32   : > { %638 = vmatpush3.bf16.msra.mxu0 %v727_v13  ;;  %662 = vmatpush3.bf16.msra.mxu1 %v727_v13 }
  0x35   : > { %640 = vmatmul.mubr.bf16.vlgmr.msra.gmra.mxu0 %v281_v18  ;;  %644 = vmatmul.mubr.bf16.vlgmr.msra.gmra.mxu1 %v283_v19 }
  0xf5   : > { %v641_v21 = vpop.f32.mrf.mxu0  ;;  %v645_v22 = vpop.f32.mrf.mxu1 }
  0xf6   : > { %v449_v23 = vadd.f32 %v641_v21, %v604_v20  ;;  %v453_v24 = vadd.f32 %v645_v22, %v604_v20 }
  0xf7   : > { %v382_v25 = vpop.f32.mrf.mxu0  ;;  %v398_v26 = vpop.f32.mrf.mxu1 }
  0xf8   : > { %457 = vst [vmem:[%s228_s7 + $0x10] sm:$0xff] %v449_v23  ;;  %461 = vst [vmem:[%s228_s7 + $0x30] sm:$0xff] %v453_v24  ;;  %v447_v27 = vadd.f32 %v604_v20, %v382_v25  ;;  %v451_v28 = vadd.f32 %v604_v20, %v398_v26 }
  0xf9   : > { %v642_v29 = vpop.f32.mrf.mxu0  ;;  %v646_v30 = vpop.f32.mrf.mxu1 }
  0xfa   : > { %455 = vst [vmem:[%s228_s7] sm:$0xff] %v447_v27  ;;  %459 = vst [vmem:[%s228_s7 + $0x20] sm:$0xff] %v451_v28  ;;  %v450_v31 = vadd.f32 %v642_v29, %v604_v20  ;;  %v454_v32 = vadd.f32 %v646_v30, %v604_v20 }
  0xfb   : > { %v385_v33 = vpop.f32.mrf.mxu0  ;;  %v401_v34 = vpop.f32.mrf.mxu1 }
  0xfc   : > { %458 = vst [vmem:[%s228_s7 + $0x18] sm:$0xff] %v450_v31  ;;  %462 = vst [vmem:[%s228_s7 + $0x38] sm:$0xff] %v454_v32  ;;  %v448_v35 = vadd.f32 %v604_v20, %v385_v33  ;;  %v452_v36 = vadd.f32 %v604_v20, %v401_v34 }
  0xfe   : > { %456 = vst [vmem:[%s228_s7 + $0x8] sm:$0xff] %v448_v35  ;;  %460 = vst [vmem:[%s228_s7 + $0x28] sm:$0xff] %v452_v36 }
  0xff   : > { %741 = shalt.err (!%p738_p5)
}
 0x100   : > { %s742_s27 = scalar_lea.hbm %s932_s18, 1024  ;;  %s746_s30 = scalar_lea.hbm %s986_s3, 2048 }
 0x101   : > { %p743_p6 = scmp.ne.s32.totalorder %s932_s18, %s742_s27  ;;  %p747_p10 = scmp.lt.s32.totalorder %s932_s18, %s986_s3 }
 0x102   : > { %p748_p11 = scmp.lt.s32.totalorder %s746_s30, %s742_s27 }
 0x103   : > { %p744_p7 = pnand %p743_p6, %p869_p4 }
 0x104   : > { %p749_p12 = por %p748_p11, %p747_p10 }
 0x105   : > { %p745_p9 = pneg %p744_p7 }
 0x107   : > { %p750_p13 = pnand %p749_p12, %p745_p9 }
 0x109   : > { %753 = shalt.err (!%p750_p13)
}
 0x10a   : > { %s807_s6 = smov 128   ;;  %s808_s7 = smov 8  }
 0x10b   : > { %663 = dma.vmem_to_hbm [thread:$0]  (%p869_p4), %s934_s9, 1024, %s932_s18, %s938_s15, %s807_s6, %s807_s6, %s808_s7  }
 0x10c PF: > { %p669_p0 = scmp.ge.s32.totalorder %s804_s17, 2  ;;  %s493_s8 = sand.u32 1, %s784_s12  }
 0x10d   : > { %s494_s10 = scalar_lea.sflag [#allocation4], %s493_s8 }
 0x10e   : > { %p666_p1 = pnand %p669_p0, %p876_p8 }
 0x110   : > { %p667_p2 = pneg %p666_p1 }
 0x112   : > { %779 = dma.done.wait (%p667_p2), %s494_s10, 1024  }
 0x113   : > { %781 = vsyncadd (%p667_p2), %s494_s10, 4294966272  ;;  %s16_s17 = sadd.s32 1, %s804_s17   ;;  %s989_s12 = smov %s788_s13 }
 0x114   : > { %p13_p3 = scmp.ge.s32.totalorder %s16_s17, 4   ;;  %s990_s13 = smov %s792_s14 }
 0x115   : > { %s991_s14 = smov %s882_s25  ;;  %s992_s15 = smov %s800_s16 }
 0x116   : > { %s993_s16 = smov %s995_s20  ;;  %15 = sbr.rel (!%p13_p3) target bundleno = 4 (0x4), region = 81 }
 0x11b   :  { %499 = vsyncpa [#allocation4], 1 }
 0x11c   :  { %501 = vsyncpa [#allocation4 + $0x1], 1 }

// kernel: _lambda_.16
= control target key start
LH: loop header
LB: loop body
LE: loop exit
PB: predicated region body
PF: predicated region fallthrough
CT: control target
= control target key end

     0   :  { %s2617_s13 = smov 0   ;;  %s2619_s14 = smov 0   ;;  %s3064_s0 = inlined_call_operand.vmem [shape: f32[2,64,128], index: 0, kind: input, shape index: {}, may-alias: {0,1}]   ;;  %s3065_s1 = inlined_call_operand.vmem [shape: f32[2,64,128], index: 1, kind: input, shape index: {}, may-alias: {0,1}]   ;;  %s3066_s2 = inlined_call_operand.vmem [shape: bf16[128,128], index: 2, kind: input, shape index: {}]   ;;  %s3067_s3 = inlined_call_operand.vmem [shape: f32[1,128], index: 3, kind: input, shape index: {}]   ;;  %s3068_s4 = inlined_call_operand.vmem [shape: bf16[128,256], index: 4, kind: input, shape index: {}]   ;;  %s3069_s5 = inlined_call_operand.vmem [shape: f32[1,256], index: 5, kind: input, shape index: {}]   ;;  %s3070_s6 = inlined_call_operand.vmem [shape: bf16[128,128], index: 6, kind: input, shape index: {}]   ;;  %s3071_s7 = inlined_call_operand.vmem [shape: f32[1,128], index: 7, kind: input, shape index: {}]   ;;  %s3072_s8 = inlined_call_operand.vmem [shape: f32[1,128], index: 8, kind: input, shape index: {}]   ;;  %s3073_s9 = inlined_call_operand.vmem [shape: f32[1,128], index: 9, kind: input, shape index: {}]   ;;  %s3074_s10 = inlined_call_operand.vmem [shape: f32[2,64,128], index: 10, kind: output, shape index: {}]  }
   0x1   :  { %s2621_s15 = smov 0   ;;  %s2623_s16 = smov 0  }
   0x2   :  { %s2625_s17 = smov 0  }
   0x3 LB: > { %s29_s18 = sadd.s32 1, %s2548_s15  ;;  %s32_s19 = sadd.s32 1, %s2552_s16  ;;  %s2556_s17 = sphi %s2625_s17, %s20_s17   ;;  %s2552_s16 = sphi %s2623_s16, %s3080_s16   ;;  %s2548_s15 = sphi %s2621_s15, %s3079_s15   ;;  %s2544_s14 = sphi %s2619_s14, %s3078_s14   ;;  %s2540_s13 = sphi %s2617_s13, %s3077_s13  }
   0x4   : > { %p30_p0 = scmp.ge.s32.totalorder %s29_s18, 2  ;;  %p2033_p1 = scmp.ge.s32.totalorder %s2556_s17, 1 }
   0x5   : > { %p343_p2 = scmp.lt.s32.totalorder %s2556_s17, 5 }
   0x6   : > { %s3082_s18 = smov (%p30_p0, %s29_s18), 0  ;;  %s3084_s19 = smov (!%p30_p0, %s32_s19), %s2552_s16 }
   0x7   : > { %p344_p3 = pnand %p2033_p1, %p343_p2  ;;  %p34_p4 = scmp.ge.s32.totalorder %s3084_s19, 2 }
   0x8   : > { %s2034_s20 = sshll.u32 (!%p344_p3), %s2540_s13, 2  ;;  %p395_p5 = scmp.lt.s32.totalorder (!%p344_p3), %s2544_s14, 1 }
   0x9   : > { %s3086_s19 = smov (%p34_p4, %s3084_s19), 0  ;;  %347 = sbr.rel (%p344_p3) target bundleno = 3370 (0xd2a), region = 60 }
   0xa   : > { %3075 = sst [smem:[#allocation4_spill]] %s3086_s19  ;;  %p397_p6 = scmp.lt.s32.totalorder (!%p344_p3), %s2034_s20, 7 }
   0xb   : > { %p2042_p7 = scmp.ne.s32.totalorder (!%p344_p3), %s2540_s13, 0 }
   0xe   : > { %s3088_s14 = smov (!%p395_p5, %s2544_s14), 1  ;;  %s3090_s20 = smov (!%p397_p6, %s2034_s20), 7 }
   0xf   : > { %s2035_s21 = sshll.u32 %s3088_s14, 3  ;;  %s2105_s22 = sshll.u32 %s3088_s14, 6 }
  0x10   : > { %s400_s23 = sadd.s32 %s2035_s21, %s3090_s20  ;;  %s2650_s26 = scalar_lea.vmem %s3065_s1, %s2105_s22 }
  0x11   : > { %s2036_s27 = sshll.u32 %s400_s23, 3  ;;  %423 = sbr.rel (%p2042_p7) target bundleno = 266 (0x10a), region = 64 }
  0x12   : > { %s2655_s30 = scalar_lea.vmem %s3064_s0, %s2036_s27  ;;  %s2660_s19 = scalar_lea.vmem %s3074_s10, %s2036_s27 }
  0x16   : > { %v2404_v0 = vld [vmem:[%s3068_s4 + $0x74] ss:$8 sps:$4 sm:$0xff]   ;;  %v2406_v1 = vld [vmem:[%s3068_s4 + $0x70] ss:$8 sps:$4 sm:$0xff]   ;;  %v2558_v2 = vmov 0   ;;  %v424_v17 = vld [vmem:[%s2650_s26] sm:$0xff]  ;;  %v454_v29 = vlaneseq }
  0x17   : > { %576 = vmatprep.mubr.bf16.mxu0 %v2558_v2  ;;  %596 = vmatprep.mubr.bf16.mxu1 %v2558_v2  ;;  %v2407_v3 = vld [vmem:[%s3068_s4 + $0x64] ss:$8 sps:$4 sm:$0xff]   ;;  %v2409_v4 = vld [vmem:[%s3068_s4 + $0x60] ss:$8 sps:$4 sm:$0xff]   ;;  %v2410_v5 = vld [vmem:[%s3068_s4 + $0x54] ss:$8 sps:$4 sm:$0xff]  }
  0x18   : > { %544 = vmatprep.subr.bf16.mxu0 %v2404_v0  ;;  %2328 = vmatprep.subr.bf16.mxu1 %v2404_v0  ;;  %v2412_v6 = vld [vmem:[%s3068_s4 + $0x50] ss:$8 sps:$4 sm:$0xff]   ;;  %v2413_v7 = vld [vmem:[%s3068_s4 + $0x44] ss:$8 sps:$4 sm:$0xff]   ;;  %v2415_v8 = vld [vmem:[%s3068_s4 + $0x40] ss:$8 sps:$4 sm:$0xff]  }
  0x19   : > { %545 = vmatpush1.bf16.msra.mxu0 %v2406_v1  ;;  %2336 = vmatpush1.bf16.msra.mxu1 %v2406_v1  ;;  %v2416_v9 = vld [vmem:[%s3068_s4 + $0x34] ss:$8 sps:$4 sm:$0xff]   ;;  %v2418_v10 = vld [vmem:[%s3068_s4 + $0x30] ss:$8 sps:$4 sm:$0xff]   ;;  %v2419_v11 = vld [vmem:[%s3068_s4 + $0x24] ss:$8 sps:$4 sm:$0xff]  }
  0x1a   : > { %546 = vmatprep.subr.bf16.mxu0 %v2407_v3  ;;  %2329 = vmatprep.subr.bf16.mxu1 %v2407_v3  ;;  %v2421_v12 = vld [vmem:[%s3068_s4 + $0x20] ss:$8 sps:$4 sm:$0xff]   ;;  %v2422_v13 = vld [vmem:[%s3068_s4 + $0x14] ss:$8 sps:$4 sm:$0xff]   ;;  %v2424_v14 = vld [vmem:[%s3068_s4 + $0x10] ss:$8 sps:$4 sm:$0xff]  }
  0x1b   : > { %v2425_v15 = vld [vmem:[%s3068_s4 + $0x4] ss:$8 sps:$4 sm:$0xff]   ;;  %v2427_v16 = vld [vmem:[%s3068_s4] ss:$8 sps:$4 sm:$0xff]   ;;  %v426_v23 = vld [vmem:[%s2650_s26 + $0x10] sm:$0xff]  ;;  %v455_v30 = vshrl.u32 %v454_v29, 7 }
  0x1c   : > { %v425_v18 = vld [vmem:[%s2650_s26 + $0x8] sm:$0xff]  ;;  %v428_v19 = vld [vmem:[%s2650_s26 + $0x20] sm:$0xff]  ;;  %v427_v24 = vld [vmem:[%s2650_s26 + $0x18] sm:$0xff] }
  0x1d   : > { %547 = vmatpush1.bf16.msra.mxu0 %v2409_v4  ;;  %2337 = vmatpush1.bf16.msra.mxu1 %v2409_v4  ;;  %v429_v20 = vld [vmem:[%s2650_s26 + $0x28] sm:$0xff]  ;;  %v432_v21 = vpack.c.bf16 %v425_v18, %v424_v17  ;;  %v430_v25 = vld [vmem:[%s2650_s26 + $0x30] sm:$0xff]  ;;  %v431_v26 = vld [vmem:[%s2650_s26 + $0x38] sm:$0xff]  ;;  %v433_v27 = vpack.c.bf16 %v427_v24, %v426_v23  ;;  %v456_v31 = vsub.s32 0, %v455_v30  ;;  %v460_v33 = vsub.s32 1, %v455_v30 }
  0x1e   : > { %548 = vmatprep.subr.bf16.mxu0 %v2410_v5  ;;  %2330 = vmatprep.subr.bf16.mxu1 %v2410_v5  ;;  %v434_v22 = vpack.c.bf16 %v429_v20, %v428_v19  ;;  %v435_v28 = vpack.c.bf16 %v431_v26, %v430_v25  ;;  %v452_v32 = vld [vmem:[%s3069_s5] sm:$0x3] }
  0x1f   : > { %v457_v34 = vrot.slane %v452_v32, %v456_v31  ;;  %v461_v35 = vrot.slane %v452_v32, %v460_v33 }
  0x21   : > { %549 = vmatpush1.bf16.msra.mxu0 %v2412_v6  ;;  %2338 = vmatpush1.bf16.msra.mxu1 %v2412_v6 }
  0x22   : > { %550 = vmatprep.subr.bf16.mxu0 %v2413_v7  ;;  %2331 = vmatprep.subr.bf16.mxu1 %v2413_v7 }
  0x25   : > { %551 = vmatpush1.bf16.msra.mxu0 %v2415_v8  ;;  %2339 = vmatpush1.bf16.msra.mxu1 %v2415_v8 }
  0x26   : > { %552 = vmatprep.subr.bf16.mxu0 %v2416_v9  ;;  %2332 = vmatprep.subr.bf16.mxu1 %v2416_v9 }
  0x29   : > { %553 = vmatpush1.bf16.msra.mxu0 %v2418_v10  ;;  %2340 = vmatpush1.bf16.msra.mxu1 %v2418_v10 }
  0x2a   : > { %554 = vmatprep.subr.bf16.mxu0 %v2419_v11  ;;  %2333 = vmatprep.subr.bf16.mxu1 %v2419_v11 }
  0x2d   : > { %555 = vmatpush1.bf16.msra.mxu0 %v2421_v12  ;;  %2341 = vmatpush1.bf16.msra.mxu1 %v2421_v12 }
  0x2e   : > { %556 = vmatprep.subr.bf16.mxu0 %v2422_v13  ;;  %2334 = vmatprep.subr.bf16.mxu1 %v2422_v13 }
  0x31   : > { %557 = vmatpush1.bf16.msra.mxu0 %v2424_v14  ;;  %2342 = vmatpush1.bf16.msra.mxu1 %v2424_v14 }
  0x32   : > { %558 = vmatprep.subr.bf16.mxu0 %v2425_v15  ;;  %2335 = vmatprep.subr.bf16.mxu1 %v2425_v15 }
  0x35   : > { %559 = vmatpush1.bf16.msra.mxu0 %v2427_v16  ;;  %2343 = vmatpush1.bf16.msra.mxu1 %v2427_v16 }
  0x38   : > { %577 = vmatmul.mubr.bf16.vlgmr.msra.gmra.mxu0 %v432_v21  ;;  %597 = vmatmul.mubr.bf16.vlgmr.msra.gmra.mxu1 %v434_v22 }
  0x39   : > { %586 = vmatprep.mubr.bf16.mxu0 %v2558_v2  ;;  %606 = vmatprep.mubr.bf16.mxu1 %v2558_v2 }
  0x40   : > { %587 = vmatmul.mubr.bf16.gmra.mxu0 %v433_v27  ;;  %607 = vmatmul.mubr.bf16.gmra.mxu1 %v435_v28 }
  0xf8   : > { %v578_v36 = vpop.f32.mrf.mxu0  ;;  %v598_v37 = vpop.f32.mrf.mxu1 }
  0xf9   : > { %v579_v38 = vadd.f32 %v578_v36, %v457_v34  ;;  %v599_v39 = vadd.f32 %v598_v37, %v457_v34 }
  0xfa   : > { %v580_v40 = vpop.f32.mrf.mxu0  ;;  %v600_v41 = vpop.f32.mrf.mxu1 }
  0xfb   : > { %617 = vst [vmem:[#allocation2 + $0x30] sm:$0xff] %v579_v38  ;;  %621 = vst [vmem:[#allocation2 + $0x8] sm:$0xff] %v599_v39  ;;  %v581_v42 = vadd.f32 %v580_v40, %v461_v35  ;;  %v601_v43 = vadd.f32 %v600_v41, %v461_v35 }
  0xfc   : > { %v582_v44 = vpop.f32.mrf.mxu0  ;;  %v602_v45 = vpop.f32.mrf.mxu1 }
  0xfd   : > { %625 = vst [vmem:[#allocation3] sm:$0xff] %v581_v42  ;;  %629 = vst [vmem:[#allocation3 + $0x28] sm:$0xff] %v601_v43  ;;  %v583_v46 = vadd.f32 %v582_v44, %v457_v34  ;;  %v603_v47 = vadd.f32 %v602_v45, %v457_v34 }
  0xfe   : > { %v584_v48 = vpop.f32.mrf.mxu0  ;;  %v604_v49 = vpop.f32.mrf.mxu1 }
  0xff   : > { %618 = vst [vmem:[#allocation2] sm:$0xff] %v583_v46  ;;  %622 = vst [vmem:[#allocation2 + $0x20] sm:$0xff] %v603_v47  ;;  %v585_v50 = vadd.f32 %v584_v48, %v461_v35  ;;  %v605_v51 = vadd.f32 %v604_v49, %v461_v35 }
 0x100   : > { %v588_v52 = vpop.f32.mrf.mxu0  ;;  %v608_v53 = vpop.f32.mrf.mxu1 }
 0x101   : > { %626 = vst [vmem:[#allocation3 + $0x18] sm:$0xff] %v585_v50  ;;  %630 = vst [vmem:[#allocation3 + $0x8] sm:$0xff] %v605_v51  ;;  %v589_v54 = vadd.f32 %v588_v52, %v457_v34  ;;  %v609_v55 = vadd.f32 %v608_v53, %v457_v34 }
 0x102   : > { %v590_v56 = vpop.f32.mrf.mxu0  ;;  %v610_v57 = vpop.f32.mrf.mxu1 }
 0x103   : > { %619 = vst [vmem:[#allocation2 + $0x18] sm:$0xff] %v589_v54  ;;  %623 = vst [vmem:[#allocation2 + $0x28] sm:$0xff] %v609_v55  ;;  %v591_v58 = vadd.f32 %v590_v56, %v461_v35  ;;  %v611_v59 = vadd.f32 %v610_v57, %v461_v35 }
 0x104   : > { %v592_v60 = vpop.f32.mrf.mxu0  ;;  %v612_v61 = vpop.f32.mrf.mxu1 }
 0x105   : > { %627 = vst [vmem:[#allocation3 + $0x10] sm:$0xff] %v591_v58  ;;  %631 = vst [vmem:[#allocation3 + $0x30] sm:$0xff] %v611_v59  ;;  %v593_v62 = vadd.f32 %v592_v60, %v457_v34  ;;  %v613_v63 = vadd.f32 %v612_v61, %v457_v34 }
 0x106   : > { %v594_v0 = vpop.f32.mrf.mxu0  ;;  %v614_v1 = vpop.f32.mrf.mxu1 }
 0x107   : > { %620 = vst [vmem:[#allocation2 + $0x10] sm:$0xff] %v593_v62  ;;  %624 = vst [vmem:[#allocation2 + $0x38] sm:$0xff] %v613_v63  ;;  %v595_v2 = vadd.f32 %v594_v0, %v461_v35  ;;  %v615_v3 = vadd.f32 %v614_v1, %v461_v35 }
 0x109   : > { %628 = vst [vmem:[#allocation3 + $0x20] sm:$0xff] %v595_v2  ;;  %632 = vst [vmem:[#allocation3 + $0x38] sm:$0xff] %v615_v3 }
 0x10a PF: > { %v2428_v4 = vld [vmem:[%s3066_s2 + $0x38] sm:$0xff]   ;;  %v2429_v5 = vld [vmem:[%s3066_s2 + $0x30] sm:$0xff]   ;;  %v2430_v6 = vld [vmem:[%s3066_s2 + $0x28] sm:$0xff]   ;;  %vm797_vm0 = vcmask 261120   ;;  %s2559_s23 = smov 96   ;;  %vm865_vm1 = vcmask 523264  }
 0x10b   : > { %2180 = vmatprep.subr.bf16.mxu0 %v2428_v4  ;;  %v2431_v7 = vld [vmem:[%s3066_s2 + $0x20] sm:$0xff]   ;;  %v634_v9 = vld [vmem:[%s2655_s30 + $0x8] sm:$0xff]  ;;  %v761_v16 = vld [vmem:[#allocation2 + $0x18] sm:$0xff]  ;;  %s2560_s12 = smov 64   ;;  %s2561_s26 = smov 32  }
 0x10c   : > { %2181 = vmatpush3.bf16.msra.mxu0 %v2428_v4  ;;  %v633_v8 = vld [vmem:[%s2655_s30] sm:$0xff]  ;;  %v765_v11 = vld [vmem:[#allocation2 + $0x28] sm:$0xff]  ;;  %v2432_v19 = vld [vmem:[%s3066_s2 + $0x18] sm:$0xff]  }
 0x10d   : > { %2182 = vmatprep.subr.bf16.mxu0 %v2429_v5  ;;  %v637_v10 = vpack.c.bf16 %v634_v9, %v633_v8  ;;  %v763_v14 = vld [vmem:[#allocation2 + $0x8] sm:$0xff]  ;;  %v764_v15 = vld [vmem:[#allocation2 + $0x20] sm:$0xff]  ;;  %v2433_v22 = vld [vmem:[%s3066_s2 + $0x10] sm:$0xff]  }
 0x10e   : > { %v766_v12 = vld [vmem:[#allocation2 + $0x38] sm:$0xff]  ;;  %v2737_v17 = vpack.c.bf16 %v764_v15, %v763_v14  ;;  %v762_v18 = vld [vmem:[#allocation2 + $0x10] sm:$0xff]  ;;  %v2434_v24 = vld [vmem:[%s3066_s2 + $0x8] sm:$0xff]  }
 0x10f   : > { %v2735_v13 = vpack.c.bf16 %v766_v12, %v765_v11  ;;  %2196 = vmatprep.mubr.bf16.mxu0 %v637_v10  ;;  %v2746_v21 = vpack.c.bf16 %v762_v18, %v761_v16  ;;  %v2435_v25 = vld [vmem:[%s3066_s2] sm:$0xff]   ;;  %v2770_v26 = vld [vmem:[%s2655_s30 + $0x10] sm:$0xff]  ;;  %v2773_v27 = vld [vmem:[%s2655_s30 + $0x18] sm:$0xff] }
 0x110   : > { %2183 = vmatpush3.bf16.msra.mxu0 %v2429_v5  ;;  %v811_v23 = vsel %vm797_vm0, %v2737_v17, 0  ;;  %v638_v29 = vpack.c.bf16 %v2773_v27, %v2770_v26  ;;  %v759_v30 = vld [vmem:[#allocation2 + $0x30] sm:$0xff]  ;;  %v760_v31 = vld [vmem:[#allocation2] sm:$0xff]  ;;  %v774_v56 = vld [vmem:[#allocation3 + $0x38] sm:$0xff] }
 0x111   : > { %2184 = vmatprep.subr.bf16.mxu0 %v2430_v6  ;;  %989 = vrot.lane.b32.xlu0 %v2735_v13, %s2559_s23  ;;  %v814_v20 = vsel %vm797_vm0, %v2735_v13, 0  ;;  %v808_v28 = vsel %vm797_vm0, %v2746_v21, 0  ;;  %v2779_v32 = vpack.c.bf16 %v760_v31, %v759_v30  ;;  %v2059_v36 = vld [vmem:[%s3067_s3] ss:$0 sm:$0xff]  ;;  %v773_v55 = vld [vmem:[#allocation3 + $0x30] sm:$0xff] }
 0x112   : > { %2344 = vmatprep.subr.msk.bf16.mxu1 %vm797_vm0, %v2735_v13  ;;  %985 = vrot.lane.b32.xlu1 %v2746_v21, %s2559_s23  ;;  %v2812_v58 = vpack.c.bf16 %v774_v56, %v773_v55 }
 0x113   : > { %2201 = vmatpush3.bf16.xpose.msra.mxu1 %v814_v20  ;;  %v805_v33 = vsel %vm797_vm0, %v2779_v32, 0 }
 0x114   : > { %2185 = vmatpush3.bf16.msra.mxu0 %v2430_v6  ;;  %2345 = vmatprep.subr.msk.bf16.mxu1 %vm797_vm0, %v2737_v17 }
 0x115   : > { %2186 = vmatprep.subr.bf16.mxu0 %v2431_v7  ;;  %987 = vrot.lane.b32.xlu0 %v2737_v17, %s2559_s23 }
 0x116   : > { %983 = vrot.lane.b32.xlu1 %v2779_v32, %s2559_s23 }
 0x118   : > { %2187 = vmatpush3.bf16.msra.mxu0 %v2431_v7 }
 0x119   : > { %2188 = vmatprep.subr.bf16.mxu0 %v2432_v19 }
 0x11b   : > { %2203 = vmatpush3.bf16.xpose.msra.mxu1 %v811_v23 }
 0x11c   : > { %2189 = vmatpush3.bf16.msra.mxu0 %v2432_v19  ;;  %2346 = vmatprep.subr.msk.bf16.mxu1 %vm797_vm0, %v2746_v21 }
 0x11d   : > { %2190 = vmatprep.subr.bf16.mxu0 %v2433_v22 }
 0x120   : > { %2191 = vmatpush3.bf16.msra.mxu0 %v2433_v22 }
 0x121   : > { %2192 = vmatprep.subr.bf16.mxu0 %v2434_v24 }
 0x123   : > { %2205 = vmatpush3.bf16.xpose.msra.mxu1 %v808_v28 }
 0x124   : > { %2193 = vmatpush3.bf16.msra.mxu0 %v2434_v24  ;;  %2347 = vmatprep.subr.msk.bf16.mxu1 %vm797_vm0, %v2779_v32 }
 0x125   : > { %2194 = vmatprep.subr.bf16.mxu0 %v2435_v25 }
 0x128   : > { %2195 = vmatpush3.bf16.msra.mxu0 %v2435_v25 }
 0x129   : > { %2212 = vmatprep.subr.bf16.mxu0 %v2812_v58 }
 0x12b   : > { %2197 = vmatmul.mubr.bf16.vlgmr.msra.gmra.mxu0 %v638_v29  ;;  %2207 = vmatpush3.bf16.xpose.msra.mxu1 %v805_v33 }
 0x12c   : > { %2213 = vmatpush3.bf16.msra.mxu0 %v2812_v58 }
 0x183   : > { %v990_v34 = vpop.permute.xlu0 %989 }
 0x184   : > { %2348 = vmatprep.subr.msk.bf16.mxu1 %vm797_vm0, %v990_v34  ;;  %v1007_v46 = vsel %vm797_vm0, %v990_v34, 0  ;;  %v986_v49 = vpop.permute.xlu1 %985 }
 0x185   : > { %v1001_v50 = vsel %vm797_vm0, %v986_v49, 0 }
 0x187   : > { %v988_v47 = vpop.permute.xlu0 %987 }
 0x188   : > { %v1004_v48 = vsel %vm797_vm0, %v988_v47, 0  ;;  %v984_v51 = vpop.permute.xlu1 %983 }
 0x189   : > { %v998_v52 = vsel %vm797_vm0, %v984_v51, 0 }
 0x1eb   : > { %v2198_v35 = vpop.f32.mrf.mxu0 }
 0x1ec   : > { %v753_v39 = vadd.f32 %v2198_v35, %v2059_v36 }
 0x1ed   : > { %v744_v37 = vpop.f32.mrf.mxu0 }
 0x1ee   : > { %v745_v42 = vadd.f32 %v2059_v36, %v744_v37  ;;  %v770_v37 = vld [vmem:[#allocation3 + $0x20] sm:$0xff] }
 0x1ef   : > { %v2199_v38 = vpop.f32.mrf.mxu0 }
 0x1f0   : > { %v756_v40 = vadd.f32 %v2199_v38, %v2059_v36  ;;  %v771_v38 = vld [vmem:[#allocation3 + $0x28] sm:$0xff] }
 0x1f1   : > { %v747_v41 = vpop.f32.mrf.mxu0 }
 0x1f2   : > { %v2791_v43 = vpack.c.bf16 %v756_v40, %v753_v39  ;;  %v748_v44 = vadd.f32 %v2059_v36, %v747_v41  ;;  %v769_v36 = vld [vmem:[#allocation3 + $0x10] sm:$0xff]  ;;  %v772_v39 = vld [vmem:[#allocation3 + $0x8] sm:$0xff] }
 0x1f3   : > { %v2848_v40 = vpack.c.bf16 %v772_v39, %v771_v38  ;;  %v2850_v41 = vpack.c.bf16 %v770_v37, %v769_v36 }
 0x1f4   : > { %v2793_v45 = vpack.c.bf16 %v748_v44, %v745_v42  ;;  %977 = vrot.lane.b32.xlu1 %v2791_v43, %s2559_s23  ;;  %v767_v42 = vld [vmem:[#allocation3] sm:$0xff]  ;;  %v768_v44 = vld [vmem:[#allocation3 + $0x18] sm:$0xff] }
 0x1f5   : > { %2214 = vmatprep.subr.bf16.mxu0 %v2848_v40 }
 0x1f6   : > { %975 = vrot.lane.b32.xlu0 %v2793_v45, %s2559_s23  ;;  %2208 = vmatprep.mubr.msk.bf16.mxu1 %vm797_vm0, %v2793_v45 }
 0x1f7   : > { %2209 = vmatmul.mubr.msk.bf16.vlgmr.msra.gmra.mxu1 %vm797_vm0, %v2791_v43  ;;  %2215 = vmatpush3.bf16.msra.mxu0 %v2848_v40 }
 0x1f8   : > { %2225 = vmatpush3.bf16.xpose.msra.mxu1 %v1007_v46  ;;  %2216 = vmatprep.subr.bf16.mxu0 %v2850_v41  ;;  %v2855_v46 = vpack.c.bf16 %v768_v44, %v767_v42 }
 0x1f9   : > { %2349 = vmatprep.subr.msk.bf16.mxu1 %vm797_vm0, %v988_v47 }
 0x1fb   : > { %2217 = vmatpush3.bf16.msra.mxu0 %v2850_v41 }
 0x1fc   : > { %2218 = vmatprep.subr.bf16.mxu0 %v2855_v46 }
 0x1ff   : > { %2219 = vmatpush3.bf16.msra.mxu0 %v2855_v46 }
 0x200   : > { %2227 = vmatpush3.bf16.xpose.msra.mxu1 %v1004_v48 }
 0x201   : > { %2350 = vmatprep.subr.msk.bf16.mxu1 %vm797_vm0, %v986_v49 }
 0x208   : > { %2229 = vmatpush3.bf16.xpose.msra.mxu1 %v1001_v50 }
 0x209   : > { %2351 = vmatprep.subr.msk.bf16.mxu1 %vm797_vm0, %v984_v51 }
 0x210   : > { %2231 = vmatpush3.bf16.xpose.msra.mxu1 %v998_v52 }
 0x266   : > { %v978_v54 = vpop.permute.xlu1 %977 }
 0x268   : > { %v976_v53 = vpop.permute.xlu0 %975 }
 0x269   : > { %2232 = vmatprep.mubr.msk.bf16.mxu1 %vm797_vm0, %v976_v53 }
 0x26a   : > { %2233 = vmatmul.mubr.msk.bf16.vlgmr.msra.gmra.mxu1 %vm797_vm0, %v978_v54 }
 0x2b7   : > { %v2210_v57 = vpop.f32.mrf.mxu1 }
 0x2b8   : > { %v872_v63 = vsel %vm865_vm1, %v2210_v57, -inf }
 0x2b9   : > { %v850_v59 = vpop.f32.mrf.mxu1 }
 0x2ba   : > { %v866_v60 = vsel %vm865_vm1, %v850_v59, -inf }
 0x2bb   : > { %867 = vmax.xlane.f32.xlu0 %v866_v60  ;;  %v2211_v61 = vpop.f32.mrf.mxu1 }
 0x2bc   : > { %v875_v1 = vsel %vm865_vm1, %v2211_v61, -inf }
 0x2bd   : > { %v853_v62 = vpop.f32.mrf.mxu1 }
 0x2be   : > { %v869_v0 = vsel %vm865_vm1, %v853_v62, -inf }
 0x2bf   : > { %873 = vmax.xlane.f32.xlu0 %v872_v63  ;;  %870 = vmax.xlane.f32.xlu1 %v869_v0 }
 0x2c3   : > { %876 = vmax.xlane.f32.xlu0 %v875_v1 }
 0x32a   : > { %v2234_v2 = vpop.f32.mrf.mxu1 }
 0x32b   : > { %v1064_v8 = vsel %vm865_vm1, %v2234_v2, -inf }
 0x32c   : > { %v1043_v3 = vpop.f32.mrf.mxu1 }
 0x32d   : > { %v1058_v4 = vsel %vm865_vm1, %v1043_v3, -inf }
 0x32e   : > { %v2821_v5 = vpop.f32.mrf.mxu1  ;;  %1059 = vmax.xlane.f32.xlu1 %v1058_v4 }
 0x32f   : > { %v1067_v9 = vsel %vm865_vm1, %v2821_v5, -inf }
 0x330   : > { %v2823_v6 = vpop.f32.mrf.mxu1 }
 0x331   : > { %v1061_v7 = vsel %vm865_vm1, %v2823_v6, -inf }
 0x332   : > { %1062 = vmax.xlane.f32.xlu0 %v1061_v7  ;;  %1065 = vmax.xlane.f32.xlu1 %v1064_v8 }
 0x336   : > { %1068 = vmax.xlane.f32.xlu0 %v1067_v9 }
 0x343   : > { %1114 = vrot.lane.b32.xlu1 %v2812_v58, %s2559_s23 }
 0x344   : > { %v868_v10 = vpop.xlane.xlu0 %867 }
 0x345   : > { %v878_v22 = vsub.f32 %v850_v59, %v868_v10 }
 0x347   : > { %v882_v24 = vmul.f32 1.442695, %v878_v22  ;;  %v2436_v22 = vld [vmem:[%s3070_s6 + $0x8] sm:$0xff]  }
 0x348   : > { %v874_v11 = vpop.xlane.xlu0 %873  ;;  %v871_v12 = vpop.xlane.xlu1 %870  ;;  %2256 = vmatprep.subr.bf16.mxu1 %v2436_v22 }
 0x349   : > { %v879_v14 = vsub.f32 %v853_v62, %v871_v12  ;;  %v880_v18 = vsub.f32 %v2210_v57, %v874_v11  ;;  %2257 = vmatpush3.bf16.msra.mxu1 %v2436_v22 }
 0x34b   : > { %v884_v19 = vmul.f32 1.442695, %v879_v14  ;;  %v886_v23 = vmul.f32 1.442695, %v880_v18 }
 0x34c   : > { %v877_v15 = vpop.xlane.xlu0 %876 }
 0x34d   : > { %v881_v16 = vsub.f32 %v2211_v61, %v877_v15 }
 0x34f   : > { %v888_v20 = vmul.f32 1.442695, %v881_v16 }
 0x351   : > { %2444 = vpow2.f32 %v888_v20 }
 0x352   : > { %2446 = vpow2.f32 %v884_v19 }
 0x353   : > { %2448 = vpow2.f32 %v886_v23  ;;  %v2437_v23 = vld [vmem:[%s3070_s6] sm:$0xff]  }
 0x354   : > { %2450 = vpow2.f32 %v882_v24  ;;  %2258 = vmatprep.subr.bf16.mxu1 %v2437_v23 }
 0x355   : > { %2259 = vmatpush3.bf16.msra.mxu1 %v2437_v23 }
 0x35e   : > { %v2832_v25 = vpop.eup %2444 }
 0x35f   : > { %v899_v28 = vsel %vm865_vm1, %v2832_v25, 0.0  ;;  %v2836_v29 = vpop.eup %2446 }
 0x360   : > { %900 = vadd.xlane.f32.xlu0 %v899_v28  ;;  %v2838_v30 = vpop.eup %2448  ;;  %v893_v31 = vsel %vm865_vm1, %v2836_v29, 0.0 }
 0x361   : > { %v896_v33 = vsel %vm865_vm1, %v2838_v30, 0.0  ;;  %v2844_v34 = vpop.eup %2450 }
 0x362   : > { %v890_v35 = vsel %vm865_vm1, %v2844_v34, 0.0 }
 0x364   : > { %894 = vadd.xlane.f32.xlu0 %v893_v31 }
 0x367   : > { %897 = vadd.xlane.f32.xlu1 %v896_v33 }
 0x36b   : > { %891 = vadd.xlane.f32.xlu1 %v890_v35 }
 0x3b7   : > { %v1060_v47 = vpop.xlane.xlu1 %1059 }
 0x3b8   : > { %v1070_v48 = vsub.f32 %v1043_v3, %v1060_v47 }
 0x3ba   : > { %v1074_v54 = vmul.f32 1.442695, %v1070_v48 }
 0x3bb   : > { %v1063_v49 = vpop.xlane.xlu0 %1062  ;;  %v1066_v50 = vpop.xlane.xlu1 %1065 }
 0x3bc   : > { %v1072_v51 = vsub.f32 %v2234_v2, %v1066_v50  ;;  %v1071_v52 = vsub.f32 %v2823_v6, %v1063_v49  ;;  %v2438_v49 = vld [vmem:[%s3070_s6 + $0x18] sm:$0xff]   ;;  %v2439_v50 = vld [vmem:[%s3070_s6 + $0x10] sm:$0xff]  }
 0x3be   : > { %v1078_v53 = vmul.f32 1.442695, %v1072_v51  ;;  %v1076_v59 = vmul.f32 1.442695, %v1071_v52 }
 0x3bf   : > { %v1069_v55 = vpop.xlane.xlu0 %1068  ;;  %v1115_v56 = vpop.permute.xlu1 %1114 }
 0x3c0   : > { %v1073_v57 = vsub.f32 %v2821_v5, %v1069_v55  ;;  %2236 = vmatprep.subr.bf16.mxu0 %v1115_v56  ;;  %2452 = vpow2.f32 %v1078_v53 }
 0x3c1   : > { %2454 = vpow2.f32 %v1074_v54 }
 0x3c2   : > { %v1080_v60 = vmul.f32 1.442695, %v1073_v57 }
 0x3c4   : > { %2456 = vpow2.f32 %v1080_v60 }
 0x3c5   : > { %2458 = vpow2.f32 %v1076_v59 }
 0x3cd   : > { %v2862_v61 = vpop.eup %2452 }
 0x3ce   : > { %v1088_v62 = vsel %vm865_vm1, %v2862_v61, 0.0  ;;  %v2866_v63 = vpop.eup %2454 }
 0x3cf   : > { %1089 = vadd.xlane.f32.xlu1 %v1088_v62  ;;  %v1082_v3 = vsel %vm865_vm1, %v2866_v63, 0.0 }
 0x3d1   : > { %v2868_v0 = vpop.eup %2456 }
 0x3d2   : > { %v1091_v1 = vsel %vm865_vm1, %v2868_v0, 0.0  ;;  %v2872_v2 = vpop.eup %2458 }
 0x3d3   : > { %1092 = vadd.xlane.f32.xlu0 %v1091_v1  ;;  %1083 = vadd.xlane.f32.xlu1 %v1082_v3  ;;  %v1085_v4 = vsel %vm865_vm1, %v2872_v2, 0.0 }
 0x3d7   : > { %1086 = vadd.xlane.f32.xlu0 %v1085_v4 }
 0x3e4   : > { %1110 = vrot.lane.b32.xlu1 %v2850_v41, %s2559_s23 }
 0x3e8   : > { %1108 = vrot.lane.b32.xlu1 %v2855_v46, %s2559_s23 }
 0x3e9   : > { %v901_v5 = vpop.xlane.xlu0 %900 }
 0x3ec   : > { %1319 = vrot.lane.b32.xlu1 %v2737_v17, %s2560_s12 }
 0x3ed   : > { %1112 = vrot.lane.b32.xlu0 %v2848_v40, %s2559_s23  ;;  %v895_v6 = vpop.xlane.xlu0 %894 }
 0x3f0   : > { %v898_v7 = vpop.xlane.xlu1 %897  ;;  %1315 = vrot.lane.b32.xlu1 %v2779_v32, %s2560_s12 }
 0x3f1   : > { %1321 = vrot.lane.b32.xlu0 %v2735_v13, %s2560_s12  ;;  %2460 = vrcp.f32 %v898_v7 }
 0x3f2   : > { %2462 = vrcp.f32 %v895_v6 }
 0x3f3   : > { %2464 = vrcp.f32 %v901_v5 }
 0x3f4   : > { %v892_v8 = vpop.xlane.xlu1 %891  ;;  %1313 = vrot.lane.b32.xlu1 %v2791_v43, %s2560_s12 }
 0x3f5   : > { %2466 = vrcp.f32 %v892_v8  ;;  %1317 = vrot.lane.b32.xlu0 %v2746_v21, %s2560_s12 }
 0x3f9   : > { %1311 = vrot.lane.b32.xlu0 %v2793_v45, %s2560_s12 }
 0x3fe   : > { %v2461_v9 = vpop.eup %2460 }
 0x3ff   : > { %v2463_v10 = vpop.eup %2462  ;;  %v908_v14 = vmul.f32 %v2461_v9, %v2838_v30 }
 0x400   : > { %v2465_v11 = vpop.eup %2464  ;;  %v907_v16 = vmul.f32 %v2463_v10, %v2836_v29 }
 0x401   : > { %v909_v18 = vmul.f32 %v2465_v11, %v2832_v25 }
 0x402   : > { %v2467_v12 = vpop.eup %2466 }
 0x403   : > { %v906_v15 = vmul.f32 %v2467_v12, %v2844_v34  ;;  %v911_v20 = vpack.c.bf16 %v909_v18, %v908_v14 }
 0x405   : > { %v910_v19 = vpack.c.bf16 %v907_v16, %v906_v15 }
 0x407   : > { %2220 = vmatprep.mubr.msk.bf16.mxu0 %vm865_vm1, %v910_v19 }
 0x408   : > { %2221 = vmatmul.mubr.msk.bf16.vlgmr.msra.gmra.mxu0 %vm865_vm1, %v911_v20 }
 0x409   : > { %2237 = vmatpush3.bf16.msra.mxu0 %v1115_v56 }
 0x458   : > { %v1090_v24 = vpop.xlane.xlu1 %1089 }
 0x45c   : > { %v1093_v25 = vpop.xlane.xlu0 %1092  ;;  %v1084_v28 = vpop.xlane.xlu1 %1083 }
 0x45d   : > { %2468 = vrcp.f32 %v1093_v25 }
 0x45e   : > { %2470 = vrcp.f32 %v1084_v28 }
 0x45f   : > { %2472 = vrcp.f32 %v1090_v24 }
 0x460   : > { %v1087_v29 = vpop.xlane.xlu0 %1086  ;;  %v1111_v30 = vpop.permute.xlu1 %1110 }
 0x461   : > { %2474 = vrcp.f32 %v1087_v29 }
 0x464   : > { %v1113_v31 = vpop.permute.xlu0 %1112  ;;  %v1109_v33 = vpop.permute.xlu1 %1108 }
 0x465   : > { %2238 = vmatprep.subr.bf16.mxu0 %v1113_v31 }
 0x466   : > { %2239 = vmatpush3.bf16.msra.mxu0 %v1113_v31 }
 0x467   : > { %2240 = vmatprep.subr.bf16.mxu0 %v1111_v30 }
 0x468   : > { %v1322_v51 = vpop.permute.xlu0 %1321  ;;  %v1320_v4 = vpop.permute.xlu1 %1319 }
 0x469   : > { %v1339_v1 = vsel %vm797_vm0, %v1322_v51, 0  ;;  %v1336_v5 = vsel %vm797_vm0, %v1320_v4, 0 }
 0x46a   : > { %2241 = vmatpush3.bf16.msra.mxu0 %v1111_v30  ;;  %v2469_v34 = vpop.eup %2468 }
 0x46b   : > { %2242 = vmatprep.subr.bf16.mxu0 %v1109_v33  ;;  %v2471_v35 = vpop.eup %2470  ;;  %v1101_v38 = vmul.f32 %v2469_v34, %v2868_v0 }
 0x46c   : > { %v2473_v36 = vpop.eup %2472  ;;  %v1098_v39 = vmul.f32 %v2471_v35, %v2866_v63  ;;  %v1316_v7 = vpop.permute.xlu1 %1315 }
 0x46d   : > { %v1100_v44 = vmul.f32 %v2473_v36, %v2862_v61  ;;  %v1318_v61 = vpop.permute.xlu0 %1317  ;;  %v1330_v8 = vsel %vm797_vm0, %v1316_v7, 0 }
 0x46e   : > { %v2475_v37 = vpop.eup %2474  ;;  %2243 = vmatpush3.bf16.msra.mxu0 %v1109_v33  ;;  %v1333_v6 = vsel %vm797_vm0, %v1318_v61, 0 }
 0x46f   : > { %v1099_v42 = vmul.f32 %v2475_v37, %v2872_v2  ;;  %v1103_v48 = vpack.c.bf16 %v1101_v38, %v1100_v44  ;;  %2248 = vmatprep.subr.bf16.mxu0 %v2438_v49 }
 0x470   : > { %v1314_v9 = vpop.permute.xlu1 %1313 }
 0x471   : > { %v1102_v47 = vpack.c.bf16 %v1099_v42, %v1098_v39  ;;  %v1312_v3 = vpop.permute.xlu0 %1311 }
 0x473   : > { %2244 = vmatprep.mubr.msk.bf16.mxu0 %vm865_vm1, %v1102_v47 }
 0x474   : > { %2245 = vmatmul.mubr.msk.bf16.vlgmr.msra.gmra.mxu0 %vm865_vm1, %v1103_v48 }
 0x475   : > { %2249 = vmatpush3.bf16.msra.mxu0 %v2438_v49 }
 0x476   : > { %2250 = vmatprep.subr.bf16.mxu0 %v2439_v50 }
 0x479   : > { %2251 = vmatpush3.bf16.msra.mxu0 %v2439_v50 }
 0x47a   : > { %2352 = vmatprep.subr.msk.bf16.mxu0 %vm797_vm0, %v1322_v51 }
 0x4c8   : > { %v2222_v52 = vpop.f32.mrf.mxu0 }
 0x4ca   : > { %v956_v53 = vpop.f32.mrf.mxu0 }
 0x4cc   : > { %v2223_v54 = vpop.f32.mrf.mxu0 }
 0x4cd   : > { %v972_v57 = vpack.c.bf16 %v2223_v54, %v2222_v52 }
 0x4ce   : > { %v959_v55 = vpop.f32.mrf.mxu0 }
 0x4cf   : > { %v971_v56 = vpack.c.bf16 %v959_v55, %v956_v53 }
 0x4d1   : > { %2260 = vmatprep.mubr.msk.bf16.mxu1 %vm797_vm0, %v971_v56 }
 0x4d2   : > { %2261 = vmatmul.mubr.msk.bf16.vlgmr.msra.gmra.mxu1 %vm797_vm0, %v972_v57 }
 0x534   : > { %v2246_v59 = vpop.f32.mrf.mxu0 }
 0x536   : > { %v1160_v60 = vpop.f32.mrf.mxu0 }
 0x538   : > { %v2247_v62 = vpop.f32.mrf.mxu0 }
 0x539   : > { %v1176_v2 = vpack.c.bf16 %v2247_v62, %v2246_v59 }
 0x53a   : > { %v1163_v63 = vpop.f32.mrf.mxu0 }
 0x53b   : > { %v1175_v0 = vpack.c.bf16 %v1163_v63, %v1160_v60 }
 0x53d   : > { %2252 = vmatprep.mubr.msk.bf16.mxu0 %vm797_vm0, %v1175_v0 }
 0x53e   : > { %2253 = vmatmul.mubr.msk.bf16.vlgmr.msra.gmra.mxu0 %vm797_vm0, %v1176_v2  ;;  %v2440_v2 = vld [vmem:[%s3070_s6 + $0x28] sm:$0xff]  }
 0x53f   : > { %2265 = vmatpush3.bf16.xpose.msra.mxu0 %v1339_v1  ;;  %2272 = vmatprep.mubr.msk.bf16.mxu0 %vm797_vm0, %v1312_v3  ;;  %v2441_v3 = vld [vmem:[%s3070_s6 + $0x20] sm:$0xff]  }
 0x540   : > { %2353 = vmatprep.subr.msk.bf16.mxu0 %vm797_vm0, %v1320_v4 }
 0x547   : > { %2267 = vmatpush3.bf16.xpose.msra.mxu0 %v1336_v5 }
 0x548   : > { %2354 = vmatprep.subr.msk.bf16.mxu0 %vm797_vm0, %v1318_v61 }
 0x54f   : > { %2269 = vmatpush3.bf16.xpose.msra.mxu0 %v1333_v6 }
 0x550   : > { %2355 = vmatprep.subr.msk.bf16.mxu0 %vm797_vm0, %v1316_v7 }
 0x557   : > { %2271 = vmatpush3.bf16.xpose.msra.mxu0 %v1330_v8 }
 0x55e   : > { %2273 = vmatmul.mubr.msk.bf16.vlgmr.msra.gmra.mxu0 %vm797_vm0, %v1314_v9 }
 0x592   : > { %v2262_v5 = vpop.f32.mrf.mxu1 }
 0x594   : > { %v1296_v6 = vpop.f32.mrf.mxu1 }
 0x596   : > { %v2263_v7 = vpop.f32.mrf.mxu1 }
 0x598   : > { %v1299_v8 = vpop.f32.mrf.mxu1 }
 0x5fe   : > { %v2934_v10 = vpop.f32.mrf.mxu0 }
 0x600   : > { %v2936_v11 = vpop.f32.mrf.mxu0 }
 0x602   : > { %v2938_v12 = vpop.f32.mrf.mxu0 }
 0x604   : > { %v2940_v14 = vpop.f32.mrf.mxu0 }
 0x61e   : > { %v2274_v15 = vpop.f32.mrf.mxu0 }
 0x61f   : > { %v1396_v22 = vsel %vm865_vm1, %v2274_v15, -inf }
 0x620   : > { %v1375_v16 = vpop.f32.mrf.mxu0 }
 0x621   : > { %v1390_v18 = vsel %vm865_vm1, %v1375_v16, -inf }
 0x622   : > { %1391 = vmax.xlane.f32.xlu0 %v1390_v18  ;;  %v2275_v19 = vpop.f32.mrf.mxu0 }
 0x623   : > { %v1399_v24 = vsel %vm865_vm1, %v2275_v19, -inf }
 0x624   : > { %v1378_v20 = vpop.f32.mrf.mxu0 }
 0x625   : > { %v1393_v23 = vsel %vm865_vm1, %v1378_v20, -inf }
 0x626   : > { %1397 = vmax.xlane.f32.xlu0 %v1396_v22  ;;  %1394 = vmax.xlane.f32.xlu1 %v1393_v23 }
 0x62a   : > { %1400 = vmax.xlane.f32.xlu0 %v1399_v24 }
 0x637   : > { %1442 = vrot.lane.b32.xlu1 %v2812_v58, %s2560_s12 }
 0x6ab   : > { %v1392_v25 = vpop.xlane.xlu0 %1391 }
 0x6ac   : > { %v1402_v28 = vsub.f32 %v1375_v16, %v1392_v25 }
 0x6ae   : > { %v1406_v33 = vmul.f32 1.442695, %v1402_v28 }
 0x6af   : > { %v1398_v29 = vpop.xlane.xlu0 %1397  ;;  %v1395_v30 = vpop.xlane.xlu1 %1394 }
 0x6b0   : > { %v1404_v31 = vsub.f32 %v2274_v15, %v1398_v29  ;;  %v1403_v35 = vsub.f32 %v1378_v20, %v1395_v30 }
 0x6b2   : > { %v1410_v34 = vmul.f32 1.442695, %v1404_v31  ;;  %v1408_v39 = vmul.f32 1.442695, %v1403_v35 }
 0x6b3   : > { %v1401_v36 = vpop.xlane.xlu0 %1400  ;;  %v1443_v37 = vpop.permute.xlu1 %1442 }
 0x6b4   : > { %2476 = vpow2.f32 %v1410_v34  ;;  %v1405_v38 = vsub.f32 %v2275_v19, %v1401_v36  ;;  %2276 = vmatprep.subr.bf16.mxu1 %v1443_v37  ;;  %v1305_v34 = vadd.f32 %v2262_v5, %v2934_v10  ;;  %v1297_v36 = vadd.f32 %v1296_v6, %v2936_v11 }
 0x6b5   : > { %2277 = vmatpush3.bf16.msra.mxu1 %v1443_v37  ;;  %2478 = vpow2.f32 %v1406_v33 }
 0x6b6   : > { %v1412_v42 = vmul.f32 1.442695, %v1405_v38 }
 0x6b8   : > { %2480 = vpow2.f32 %v1412_v42 }
 0x6b9   : > { %2482 = vpow2.f32 %v1408_v39  ;;  %v1308_v39 = vadd.f32 %v2263_v7, %v2938_v12 }
 0x6c1   : > { %v2477_v44 = vpop.eup %2476 }
 0x6c2   : > { %v1420_v47 = vsel %vm865_vm1, %v2477_v44, 0.0  ;;  %v2479_v48 = vpop.eup %2478 }
 0x6c3   : > { %1421 = vadd.xlane.f32.xlu1 %v1420_v47  ;;  %v1414_v51 = vsel %vm865_vm1, %v2479_v48, 0.0  ;;  %v1300_v47 = vadd.f32 %v1299_v8, %v2940_v14 }
 0x6c5   : > { %v2481_v49 = vpop.eup %2480 }
 0x6c6   : > { %v1423_v50 = vsel %vm865_vm1, %v2481_v49, 0.0  ;;  %v2483_v52 = vpop.eup %2482 }
 0x6c7   : > { %1424 = vadd.xlane.f32.xlu0 %v1423_v50  ;;  %1415 = vadd.xlane.f32.xlu1 %v1414_v51  ;;  %v1417_v53 = vsel %vm865_vm1, %v2483_v52, 0.0 }
 0x6cb   : > { %1418 = vadd.xlane.f32.xlu0 %v1417_v53 }
 0x6d8   : > { %1438 = vrot.lane.b32.xlu1 %v2850_v41, %s2560_s12 }
 0x6dc   : > { %1436 = vrot.lane.b32.xlu1 %v2855_v46, %s2560_s12 }
 0x6e0   : > { %1584 = vrot.lane.b32.xlu1 %v2737_v17, %s2561_s26 }
 0x6e1   : > { %1440 = vrot.lane.b32.xlu0 %v2848_v40, %s2560_s12 }
 0x6e4   : > { %1580 = vrot.lane.b32.xlu1 %v2779_v32, %s2561_s26 }
 0x6e5   : > { %1586 = vrot.lane.b32.xlu0 %v2735_v13, %s2561_s26 }
 0x6e8   : > { %1578 = vrot.lane.b32.xlu1 %v2791_v43, %s2561_s26 }
 0x6e9   : > { %1582 = vrot.lane.b32.xlu0 %v2746_v21, %s2561_s26 }
 0x6ed   : > { %1576 = vrot.lane.b32.xlu0 %v2793_v45, %s2561_s26 }
 0x74c   : > { %v1422_v54 = vpop.xlane.xlu1 %1421 }
 0x750   : > { %v1425_v17 = vpop.xlane.xlu0 %1424  ;;  %v1416_v55 = vpop.xlane.xlu1 %1415 }
 0x751   : > { %2484 = vrcp.f32 %v1425_v17 }
 0x752   : > { %2486 = vrcp.f32 %v1416_v55 }
 0x753   : > { %2488 = vrcp.f32 %v1422_v54 }
 0x754   : > { %v1419_v56 = vpop.xlane.xlu0 %1418  ;;  %v1439_v32 = vpop.permute.xlu1 %1438 }
 0x755   : > { %2490 = vrcp.f32 %v1419_v56 }
 0x758   : > { %v1441_v57 = vpop.permute.xlu0 %1440  ;;  %v1437_v13 = vpop.permute.xlu1 %1436 }
 0x759   : > { %2278 = vmatprep.subr.bf16.mxu1 %v1441_v57 }
 0x75a   : > { %2279 = vmatpush3.bf16.msra.mxu1 %v1441_v57 }
 0x75b   : > { %2280 = vmatprep.subr.bf16.mxu1 %v1439_v32 }
 0x75c   : > { %v1587_v4 = vpop.permute.xlu0 %1586  ;;  %v1585_v25 = vpop.permute.xlu1 %1584 }
 0x75d   : > { %v1604_v22 = vsel %vm797_vm0, %v1587_v4, 0  ;;  %v1601_v28 = vsel %vm797_vm0, %v1585_v25, 0 }
 0x75e   : > { %2281 = vmatpush3.bf16.msra.mxu1 %v1439_v32  ;;  %v2485_v43 = vpop.eup %2484 }
 0x75f   : > { %2282 = vmatprep.subr.bf16.mxu1 %v1437_v13  ;;  %v2487_v21 = vpop.eup %2486  ;;  %v1433_v60 = vmul.f32 %v2485_v43, %v2481_v49 }
 0x760   : > { %v2489_v59 = vpop.eup %2488  ;;  %v1430_v61 = vmul.f32 %v2487_v21, %v2479_v48  ;;  %v1583_v16 = vpop.permute.xlu0 %1582 }
 0x761   : > { %v1432_v63 = vmul.f32 %v2489_v59, %v2477_v44  ;;  %v1598_v29 = vsel %vm797_vm0, %v1583_v16, 0  ;;  %v1581_v30 = vpop.permute.xlu1 %1580 }
 0x762   : > { %v2491_v45 = vpop.eup %2490  ;;  %2283 = vmatpush3.bf16.msra.mxu1 %v1437_v13  ;;  %v1595_v31 = vsel %vm797_vm0, %v1581_v30, 0 }
 0x763   : > { %v1431_v62 = vmul.f32 %v2491_v45, %v2483_v52  ;;  %v1435_v1 = vpack.c.bf16 %v1433_v60, %v1432_v63  ;;  %2288 = vmatprep.subr.bf16.mxu1 %v2440_v2 }
 0x764   : > { %v1577_v24 = vpop.permute.xlu0 %1576 }
 0x765   : > { %v1434_v0 = vpack.c.bf16 %v1431_v62, %v1430_v61  ;;  %v1579_v33 = vpop.permute.xlu1 %1578 }
 0x767   : > { %2284 = vmatprep.mubr.msk.bf16.mxu1 %vm865_vm1, %v1434_v0 }
 0x768   : > { %2285 = vmatmul.mubr.msk.bf16.vlgmr.msra.gmra.mxu1 %vm865_vm1, %v1435_v1 }
 0x769   : > { %2289 = vmatpush3.bf16.msra.mxu1 %v2440_v2 }
 0x76a   : > { %2290 = vmatprep.subr.bf16.mxu1 %v2441_v3 }
 0x76d   : > { %2291 = vmatpush3.bf16.msra.mxu1 %v2441_v3 }
 0x76e   : > { %2356 = vmatprep.subr.msk.bf16.mxu1 %vm797_vm0, %v1587_v4 }
 0x828   : > { %v2286_v9 = vpop.f32.mrf.mxu1 }
 0x82a   : > { %v1488_v15 = vpop.f32.mrf.mxu1 }
 0x82c   : > { %v2287_v18 = vpop.f32.mrf.mxu1 }
 0x82d   : > { %v1504_v23 = vpack.c.bf16 %v2287_v18, %v2286_v9 }
 0x82e   : > { %v1491_v19 = vpop.f32.mrf.mxu1 }
 0x82f   : > { %v1503_v20 = vpack.c.bf16 %v1491_v19, %v1488_v15 }
 0x831   : > { %2292 = vmatprep.mubr.msk.bf16.mxu1 %vm797_vm0, %v1503_v20 }
 0x832   : > { %2293 = vmatmul.mubr.msk.bf16.vlgmr.msra.gmra.mxu1 %vm797_vm0, %v1504_v23 }
 0x833   : > { %2297 = vmatpush3.bf16.xpose.msra.mxu1 %v1604_v22  ;;  %2304 = vmatprep.mubr.msk.bf16.mxu1 %vm797_vm0, %v1577_v24 }
 0x834   : > { %2357 = vmatprep.subr.msk.bf16.mxu1 %vm797_vm0, %v1585_v25 }
 0x83b   : > { %2299 = vmatpush3.bf16.xpose.msra.mxu1 %v1601_v28 }
 0x83c   : > { %2358 = vmatprep.subr.msk.bf16.mxu1 %vm797_vm0, %v1583_v16 }
 0x843   : > { %2301 = vmatpush3.bf16.xpose.msra.mxu1 %v1598_v29  ;;  %v2442_v29 = vld [vmem:[%s3070_s6 + $0x38] sm:$0xff]  }
 0x844   : > { %2359 = vmatprep.subr.msk.bf16.mxu1 %vm797_vm0, %v1581_v30  ;;  %v2443_v30 = vld [vmem:[%s3070_s6 + $0x30] sm:$0xff]  }
 0x84b   : > { %2303 = vmatpush3.bf16.xpose.msra.mxu1 %v1595_v31 }
 0x852   : > { %2305 = vmatmul.mubr.msk.bf16.vlgmr.msra.gmra.mxu1 %vm797_vm0, %v1579_v33 }
 0x8f2   : > { %v2294_v35 = vpop.f32.mrf.mxu1 }
 0x8f3   : > { %v2992_v37 = vadd.f32 %v2294_v35, %v1305_v34 }
 0x8f4   : > { %v1557_v38 = vpop.f32.mrf.mxu1 }
 0x8f5   : > { %v2995_v42 = vadd.f32 %v1557_v38, %v1297_v36 }
 0x8f6   : > { %v2295_v44 = vpop.f32.mrf.mxu1 }
 0x8f7   : > { %v2998_v48 = vadd.f32 %v2295_v44, %v1308_v39 }
 0x8f8   : > { %v1560_v49 = vpop.f32.mrf.mxu1 }
 0x8f9   : > { %v3000_v50 = vadd.f32 %v1560_v49, %v1300_v47 }
 0x912   : > { %v2306_v51 = vpop.f32.mrf.mxu1 }
 0x913   : > { %v1661_v54 = vsel %vm865_vm1, %v2306_v51, -inf }
 0x914   : > { %v1640_v10 = vpop.f32.mrf.mxu1 }
 0x915   : > { %v1655_v52 = vsel %vm865_vm1, %v1640_v10, -inf }
 0x916   : > { %1656 = vmax.xlane.f32.xlu0 %v1655_v52  ;;  %v2307_v11 = vpop.f32.mrf.mxu1 }
 0x917   : > { %v1664_v14 = vsel %vm865_vm1, %v2307_v11, -inf }
 0x918   : > { %v1643_v53 = vpop.f32.mrf.mxu1 }
 0x919   : > { %v1658_v12 = vsel %vm865_vm1, %v1643_v53, -inf }
 0x91a   : > { %1662 = vmax.xlane.f32.xlu0 %v1661_v54  ;;  %1659 = vmax.xlane.f32.xlu1 %v1658_v12 }
 0x91e   : > { %1665 = vmax.xlane.f32.xlu0 %v1664_v14  ;;  %v2516_v14 = vld [vmem:[%s2655_s30] sm:$0xff] }
 0x92b   : > { %1707 = vrot.lane.b32.xlu1 %v2812_v58, %s2561_s26 }
 0x99f   : > { %v1657_v17 = vpop.xlane.xlu0 %1656 }
 0x9a0   : > { %v1667_v55 = vsub.f32 %v1640_v10, %v1657_v17 }
 0x9a2   : > { %v1671_v13 = vmul.f32 1.442695, %v1667_v55 }
 0x9a3   : > { %v1663_v56 = vpop.xlane.xlu0 %1662  ;;  %v1660_v32 = vpop.xlane.xlu1 %1659 }
 0x9a4   : > { %v1669_v57 = vsub.f32 %v2306_v51, %v1663_v56  ;;  %v1668_v21 = vsub.f32 %v1643_v53, %v1660_v32  ;;  %v2100_v51 = vld [vmem:[%s3071_s7] ss:$0 sm:$0xff] }
 0x9a6   : > { %v1675_v43 = vmul.f32 1.442695, %v1669_v57  ;;  %v1673_v61 = vmul.f32 1.442695, %v1668_v21 }
 0x9a7   : > { %v1666_v59 = vpop.xlane.xlu0 %1665  ;;  %v1708_v45 = vpop.permute.xlu1 %1707 }
 0x9a8   : > { %2492 = vpow2.f32 %v1675_v43  ;;  %v1670_v60 = vsub.f32 %v2307_v11, %v1666_v59  ;;  %2308 = vmatprep.subr.bf16.mxu0 %v1708_v45 }
 0x9a9   : > { %2309 = vmatpush3.bf16.msra.mxu0 %v1708_v45  ;;  %2494 = vpow2.f32 %v1671_v13 }
 0x9aa   : > { %v1677_v62 = vmul.f32 1.442695, %v1670_v60 }
 0x9ac   : > { %2496 = vpow2.f32 %v1677_v62 }
 0x9ad   : > { %2498 = vpow2.f32 %v1673_v61 }
 0x9b5   : > { %v2493_v58 = vpop.eup %2492 }
 0x9b6   : > { %v1685_v63 = vsel %vm865_vm1, %v2493_v58, 0.0  ;;  %v2495_v0 = vpop.eup %2494 }
 0x9b7   : > { %1686 = vadd.xlane.f32.xlu1 %v1685_v63  ;;  %v1679_v3 = vsel %vm865_vm1, %v2495_v0, 0.0 }
 0x9b9   : > { %v2497_v1 = vpop.eup %2496 }
 0x9ba   : > { %v1688_v2 = vsel %vm865_vm1, %v2497_v1, 0.0  ;;  %v2499_v4 = vpop.eup %2498 }
 0x9bb   : > { %1689 = vadd.xlane.f32.xlu0 %v1688_v2  ;;  %1680 = vadd.xlane.f32.xlu1 %v1679_v3  ;;  %v1682_v5 = vsel %vm865_vm1, %v2499_v4, 0.0 }
 0x9bf   : > { %1683 = vadd.xlane.f32.xlu0 %v1682_v5 }
 0x9cc   : > { %1703 = vrot.lane.b32.xlu1 %v2850_v41, %s2561_s26 }
 0x9d0   : > { %1701 = vrot.lane.b32.xlu1 %v2855_v46, %s2561_s26 }
 0x9d5   : > { %1705 = vrot.lane.b32.xlu0 %v2848_v40, %s2561_s26 }
 0xa40   : > { %v1687_v6 = vpop.xlane.xlu1 %1686 }
 0xa44   : > { %v1690_v7 = vpop.xlane.xlu0 %1689  ;;  %v1681_v8 = vpop.xlane.xlu1 %1680 }
 0xa45   : > { %2500 = vrcp.f32 %v1690_v7 }
 0xa46   : > { %2502 = vrcp.f32 %v1681_v8 }
 0xa47   : > { %2504 = vrcp.f32 %v1687_v6 }
 0xa48   : > { %v1684_v9 = vpop.xlane.xlu0 %1683  ;;  %v1704_v15 = vpop.permute.xlu1 %1703 }
 0xa49   : > { %2506 = vrcp.f32 %v1684_v9 }
 0xa4c   : > { %v1706_v16 = vpop.permute.xlu0 %1705  ;;  %v1702_v41 = vpop.permute.xlu1 %1701 }
 0xa4d   : > { %2310 = vmatprep.subr.bf16.mxu0 %v1706_v16 }
 0xa4e   : > { %2311 = vmatpush3.bf16.msra.mxu0 %v1706_v16 }
 0xa4f   : > { %2312 = vmatprep.subr.bf16.mxu0 %v1704_v15 }
 0xa52   : > { %2313 = vmatpush3.bf16.msra.mxu0 %v1704_v15  ;;  %v2501_v18 = vpop.eup %2500 }
 0xa53   : > { %2314 = vmatprep.subr.bf16.mxu0 %v1702_v41  ;;  %v2503_v46 = vpop.eup %2502  ;;  %v1698_v20 = vmul.f32 %v2501_v18, %v2497_v1 }
 0xa54   : > { %v2505_v19 = vpop.eup %2504  ;;  %v1695_v22 = vmul.f32 %v2503_v46, %v2495_v0 }
 0xa55   : > { %v1697_v24 = vmul.f32 %v2505_v19, %v2493_v58  ;;  %v2101_v19 = vld [vmem:[%s3072_s8] ss:$0 sm:$0xff] }
 0xa56   : > { %v2507_v40 = vpop.eup %2506  ;;  %2315 = vmatpush3.bf16.msra.mxu0 %v1702_v41 }
 0xa57   : > { %v1696_v23 = vmul.f32 %v2507_v40, %v2499_v4  ;;  %v1700_v28 = vpack.c.bf16 %v1698_v20, %v1697_v24  ;;  %2320 = vmatprep.subr.bf16.mxu0 %v2442_v29  ;;  %v2102_v20 = vld [vmem:[%s3073_s9] ss:$0 sm:$0xff] }
 0xa59   : > { %v1699_v25 = vpack.c.bf16 %v1696_v23, %v1695_v22 }
 0xa5b   : > { %2316 = vmatprep.mubr.msk.bf16.mxu0 %vm865_vm1, %v1699_v25 }
 0xa5c   : > { %2317 = vmatmul.mubr.msk.bf16.vlgmr.msra.gmra.mxu0 %vm865_vm1, %v1700_v28 }
 0xa5d   : > { %2321 = vmatpush3.bf16.msra.mxu0 %v2442_v29 }
 0xa5e   : > { %2322 = vmatprep.subr.bf16.mxu0 %v2443_v30 }
 0xa61   : > { %2323 = vmatpush3.bf16.msra.mxu0 %v2443_v30 }
 0xb1c   : > { %v2318_v31 = vpop.f32.mrf.mxu0 }
 0xb1e   : > { %v1753_v33 = vpop.f32.mrf.mxu0 }
 0xb20   : > { %v2319_v34 = vpop.f32.mrf.mxu0 }
 0xb21   : > { %v1769_v38 = vpack.c.bf16 %v2319_v34, %v2318_v31 }
 0xb22   : > { %v1756_v35 = vpop.f32.mrf.mxu0 }
 0xb23   : > { %v1768_v36 = vpack.c.bf16 %v1756_v35, %v1753_v33 }
 0xb25   : > { %2324 = vmatprep.mubr.msk.bf16.mxu0 %vm797_vm0, %v1768_v36 }
 0xb26   : > { %2325 = vmatmul.mubr.msk.bf16.vlgmr.msra.gmra.mxu0 %vm797_vm0, %v1769_v38 }
 0xbe6   : > { %v2326_v39 = vpop.f32.mrf.mxu0 }
 0xbe7   : > { %v1839_v47 = vadd.f32 %v2326_v39, %v2992_v37 }
 0xbe8   : > { %v1822_v44 = vpop.f32.mrf.mxu0 }
 0xbe9   : > { %v1837_v49 = vadd.f32 %v1822_v44, %v2995_v42  ;;  %v1850_v53 = vadd.f32 %v2100_v51, %v1839_v47  ;;  %v2517_v42 = vld [vmem:[%s2655_s30 + $0x8] sm:$0xff] }
 0xbea   : > { %v2327_v10 = vpop.f32.mrf.mxu0 }
 0xbeb   : > { %v1848_v52 = vadd.f32 %v2100_v51, %v1837_v49  ;;  %v1840_v54 = vadd.f32 %v2327_v10, %v2998_v48  ;;  %v1854_v37 = vadd.f32 %v1850_v53, %v2770_v26 }
 0xbec   : > { %v1825_v11 = vpop.f32.mrf.mxu0 }
 0xbed   : > { %v1838_v12 = vadd.f32 %v1825_v11, %v3000_v50  ;;  %v1852_v17 = vadd.f32 %v2516_v14, %v1848_v52  ;;  %v1851_v56 = vadd.f32 %v2100_v51, %v1840_v54 }
 0xbef   : > { %v1849_v55 = vadd.f32 %v2100_v51, %v1838_v12  ;;  %1858 = vadd.xlane.f32.xlu0 %v1852_v17  ;;  %v1855_v57 = vadd.f32 %v1851_v56, %v2773_v27 }
 0xbf1   : > { %v1853_v32 = vadd.f32 %v2517_v42, %v1849_v55 }
 0xbf3   : > { %1862 = vadd.xlane.f32.xlu0 %v1854_v37  ;;  %1860 = vadd.xlane.f32.xlu1 %v1853_v32 }
 0xbf7   : > { %1864 = vadd.xlane.f32.xlu0 %v1855_v57 }
 0xc78   : > { %v1859_v13 = vpop.xlane.xlu0 %1858 }
 0xc79   : > { %v1867_v43 = vmul.f32 0.0078125, %v1859_v13 }
 0xc7b   : > { %v1871_v21 = vsub.f32 %v1852_v17, %v1867_v43 }
 0xc7c   : > { %v1863_v48 = vpop.xlane.xlu0 %1862  ;;  %v1861_v59 = vpop.xlane.xlu1 %1860 }
 0xc7d   : > { %v1869_v50 = vmul.f32 0.0078125, %v1863_v48  ;;  %v1868_v45 = vmul.f32 0.0078125, %v1861_v59  ;;  %v1875_v60 = vmul.f32 %v1871_v21, %v1871_v21 }
 0xc7f   : > { %v1873_v61 = vsub.f32 %v1854_v37, %v1869_v50  ;;  %v1872_v62 = vsub.f32 %v1853_v32, %v1868_v45  ;;  %1879 = vadd.xlane.f32.xlu1 %v1875_v60 }
 0xc80   : > { %v1865_v58 = vpop.xlane.xlu0 %1864 }
 0xc81   : > { %v1870_v26 = vmul.f32 0.0078125, %v1865_v58  ;;  %v1877_v63 = vmul.f32 %v1873_v61, %v1873_v61  ;;  %v1876_v0 = vmul.f32 %v1872_v62, %v1872_v62 }
 0xc83   : > { %v1874_v1 = vsub.f32 %v1855_v57, %v1870_v26  ;;  %1883 = vadd.xlane.f32.xlu1 %v1877_v63  ;;  %1881 = vadd.xlane.f32.xlu0 %v1876_v0 }
 0xc85   : > { %v1878_v27 = vmul.f32 %v1874_v1, %v1874_v1 }
 0xc87   : > { %1885 = vadd.xlane.f32.xlu0 %v1878_v27 }
 0xd08   : > { %v1880_v2 = vpop.xlane.xlu1 %1879 }
 0xd09   : > { %v1887_v3 = vmul.f32 0.0078125, %v1880_v2 }
 0xd0b   : > { %v1891_v4 = vadd.f32 1e-05, %v1887_v3 }
 0xd0c   : > { %v1882_v5 = vpop.xlane.xlu0 %1881  ;;  %v1884_v6 = vpop.xlane.xlu1 %1883 }
 0xd0d   : > { %2508 = vrsqrt.f32 %v1891_v4  ;;  %v1888_v7 = vmul.f32 0.0078125, %v1882_v5  ;;  %v1889_v8 = vmul.f32 0.0078125, %v1884_v6 }
 0xd0f   : > { %v1892_v9 = vadd.f32 1e-05, %v1888_v7  ;;  %v1893_v15 = vadd.f32 1e-05, %v1889_v8 }
 0xd10   : > { %v1886_v16 = vpop.xlane.xlu0 %1885 }
 0xd11   : > { %2510 = vrsqrt.f32 %v1892_v9  ;;  %v1890_v41 = vmul.f32 0.0078125, %v1886_v16 }
 0xd12   : > { %2512 = vrsqrt.f32 %v1893_v15 }
 0xd13   : > { %v1894_v18 = vadd.f32 1e-05, %v1890_v41 }
 0xd15   : > { %2514 = vrsqrt.f32 %v1894_v18 }
 0xd1a   : > { %v2509_v46 = vpop.eup %2508 }
 0xd1b   : > { %v1899_v40 = vmul.f32 %v2509_v46, %v1871_v21 }
 0xd1d   : > { %v1909_v22 = vmul.f32 %v2101_v19, %v1899_v40 }
 0xd1e   : > { %v2511_v23 = vpop.eup %2510 }
 0xd1f   : > { %v2513_v24 = vpop.eup %2512  ;;  %v1919_v25 = vadd.f32 %v2102_v20, %v1909_v22  ;;  %v1900_v28 = vmul.f32 %v2511_v23, %v1872_v62 }
 0xd20   : > { %v1901_v29 = vmul.f32 %v2513_v24, %v1873_v61 }
 0xd21   : > { %1923 = vst [vmem:[%s2660_s19] sm:$0xff] %v1919_v25  ;;  %v1910_v30 = vmul.f32 %v2101_v19, %v1900_v28 }
 0xd22   : > { %v2515_v31 = vpop.eup %2514  ;;  %v1911_v33 = vmul.f32 %v2101_v19, %v1901_v29 }
 0xd23   : > { %v1920_v34 = vadd.f32 %v2102_v20, %v1910_v30  ;;  %v1902_v35 = vmul.f32 %v2515_v31, %v1874_v1 }
 0xd24   : > { %v1921_v36 = vadd.f32 %v2102_v20, %v1911_v33 }
 0xd25   : > { %1924 = vst [vmem:[%s2660_s19 + $0x8] sm:$0xff] %v1920_v34  ;;  %v1912_v38 = vmul.f32 %v2101_v19, %v1902_v35 }
 0xd26   : > { %1925 = vst [vmem:[%s2660_s19 + $0x10] sm:$0xff] %v1921_v36 }
 0xd27   : > { %v1922_v39 = vadd.f32 %v2102_v20, %v1912_v38 }
 0xd29   : > { %1926 = vst [vmem:[%s2660_s19 + $0x18] sm:$0xff] %v1922_v39 }
 0xd2a PF: > { %s20_s17 = sadd.s32 1, %s2556_s17   ;;  %s3076_s26 = sld [smem:[#allocation4_spill]] }
 0xd2b   : > { %p17_p8 = scmp.ge.s32.totalorder %s20_s17, 6   ;;  %s3077_s13 = smov %s2548_s15 }
 0xd2c   : > { %s3078_s14 = smov %s2552_s16  ;;  %s3079_s15 = smov %s3082_s18 }
 0xd2d   :  { %19 = sbr.rel (!%p17_p8) target bundleno = 3 (0x3), region = 97 }
 0xd30   : > { %s3080_s16 = smov %s3076_s26 }

</bundles_post_ra>
